<compile_context>
chip_gen: v7x
topology: tpu7x:2x2x1
jax: 0.10.0
libtpu: 0.0.40
codegen_flags: <defaults>
</compile_context>

<pallas_src>
import math
from functools import partial

import jax
import jax.numpy as jnp
from jax import lax
from jax.experimental import pallas as pl
from jax.experimental.pallas import tpu as pltpu  # noqa: F401  (kept for TPU-specific tuning hooks)


LN_EPS = 1e-5          # PyTorch LayerNorm default
NEG_INF = -1e30        # large-negative instead of -inf (NaN-safe if a row were fully masked)


# ----------------------------- in-kernel helpers ---------------------------- #

def _layer_norm(x, gamma, beta):
    mu = jnp.mean(x, axis=-1, keepdims=True)
    var = jnp.mean(jnp.square(x - mu), axis=-1, keepdims=True)
    return (x - mu) * lax.rsqrt(var + LN_EPS) * gamma + beta


def _causal_mask(sq, skv):
    ri = lax.broadcasted_iota(jnp.int32, (sq, skv), 0)
    ci = lax.broadcasted_iota(jnp.int32, (sq, skv), 1)
    return jnp.where(ri >= ci, 0.0, NEG_INF).astype(jnp.float32)


def _mha(x_q, x_kv, wq_ref, bq_ref, wk_ref, bk_ref, wv_ref, bv_ref, wo_ref, bo_ref,
         mask, *, B, Sq, Skv, nh):
    """All-heads multi-head attention + output projection, fully VMEM-resident.

    x_q: (B*Sq, E), x_kv: (B*Skv, E); per-head weight refs:
      wq/wk/wv: (nh, E, Dh), bq/bk/bv: (nh, 1, Dh), wo: (nh, Dh, E), bo: (1, E).
    The head/batch loops are static Python unrolls (B*nh is tiny); per-head output
    projections are summed so the head merge never needs a lane-dim concat.
    """
    acc = [None] * B
    for h in range(nh):
        q_all = jnp.dot(x_q, wq_ref[h], preferred_element_type=jnp.float32) + bq_ref[h]
        k_all = jnp.dot(x_kv, wk_ref[h], preferred_element_type=jnp.float32) + bk_ref[h]
        v_all = jnp.dot(x_kv, wv_ref[h], preferred_element_type=jnp.float32) + bv_ref[h]
        scale = 1.0 / math.sqrt(q_all.shape[-1])
        wo_h = wo_ref[h]
        for b in range(B):
            qb = q_all[b * Sq:(b + 1) * Sq, :]
            kb = k_all[b * Skv:(b + 1) * Skv, :]
            vb = v_all[b * Skv:(b + 1) * Skv, :]
            s = jnp.dot(qb, kb.T, preferred_element_type=jnp.float32) * scale
            if mask is not None:
                s = s + mask
            mx = jnp.max(s, axis=-1, keepdims=True)
            p = jnp.exp(s - mx)
            p = p / jnp.sum(p, axis=-1, keepdims=True)
            ob = jnp.dot(p, vb, preferred_element_type=jnp.float32)            # (Sq, Dh)
            proj = jnp.dot(ob, wo_h, preferred_element_type=jnp.float32)       # (Sq, E)
            acc[b] = proj if acc[b] is None else acc[b] + proj
    out = jnp.concatenate(acc, axis=0) if B > 1 else acc[0]
    return out + bo_ref[...]


# ----------------------------- fused layer kernels -------------------------- #

def _encoder_layer_kernel(x_ref,
                          wq_ref, bq_ref, wk_ref, bk_ref, wv_ref, bv_ref, wo_ref, bo_ref,
                          ln1g_ref, ln1b_ref,
                          w1_ref, b1_ref, w2_ref, b2_ref,
                          ln2g_ref, ln2b_ref,
                          o_ref, *, B, S, nh):
    x = x_ref[...]                                           # (B*S, E)
    mask = _causal_mask(S, S)
    a = _mha(x, x, wq_ref, bq_ref, wk_ref, bk_ref, wv_ref, bv_ref, wo_ref, bo_ref,
             mask, B=B, Sq=S, Skv=S, nh=nh)
    x = _layer_norm(x + a, ln1g_ref[...], ln1b_ref[...])
    h = jnp.maximum(
        jnp.dot(x, w1_ref[...], preferred_element_type=jnp.float32) + b1_ref[...], 0.0)
    f = jnp.dot(h, w2_ref[...], preferred_element_type=jnp.float32) + b2_ref[...]
    o_ref[...] = _layer_norm(x + f, ln2g_ref[...], ln2b_ref[...])


def _decoder_layer_kernel(x_ref, mem_ref,
                          swq, sbq, swk, sbk, swv, sbv, swo, sbo,
                          ln1g_ref, ln1b_ref,
                          cwq, cbq, cwk, cbk, cwv, cbv, cwo, cbo,
                          ln2g_ref, ln2b_ref,
                          w1_ref, b1_ref, w2_ref, b2_ref,
                          ln3g_ref, ln3b_ref,
                          o_ref, *, B, S, nh):
    x = x_ref[...]                                           # (B*S, E)
    mem = mem_ref[...]                                       # (B*S, E)
    # masked self-attention + add & LN
    mask = _causal_mask(S, S)
    a = _mha(x, x, swq, sbq, swk, sbk, swv, sbv, swo, sbo,
             mask, B=B, Sq=S, Skv=S, nh=nh)
    x = _layer_norm(x + a, ln1g_ref[...], ln1b_ref[...])
    # cross-attention (memory_mask=None in the PyTorch forward) + add & LN
    c = _mha(x, mem, cwq, cbq, cwk, cbk, cwv, cbv, cwo, cbo,
             None, B=B, Sq=S, Skv=S, nh=nh)
    x = _layer_norm(x + c, ln2g_ref[...], ln2b_ref[...])
    # FFN + add & LN
    h = jnp.maximum(
        jnp.dot(x, w1_ref[...], preferred_element_type=jnp.float32) + b1_ref[...], 0.0)
    f = jnp.dot(h, w2_ref[...], preferred_element_type=jnp.float32) + b2_ref[...]
    o_ref[...] = _layer_norm(x + f, ln3g_ref[...], ln3b_ref[...])


def _layernorm_kernel(x_ref, g_ref, b_ref, o_ref):
    o_ref[...] = _layer_norm(x_ref[...], g_ref[...], b_ref[...])


def _final_head_kernel(x_ref, g_ref, b_ref, w_ref, bias_ref, o_ref):
    y = _layer_norm(x_ref[...], g_ref[...], b_ref[...])
    o_ref[...] = jnp.dot(y, w_ref[...], preferred_element_type=jnp.float32) + bias_ref[...]


# ----------------------------- pallas_call wrappers -------------------------- #

def _attn_args(p):
    return (p["wq"], p["bq"], p["wk"], p["bk"], p["wv"], p["bv"], p["wo"], p["bo"])


def encoder_layer(x2d, p, *, B, S, nh):
    E = x2d.shape[-1]
    return pl.pallas_call(
        partial(_encoder_layer_kernel, B=B, S=S, nh=nh),
        out_shape=jax.ShapeDtypeStruct((B * S, E), jnp.float32),
    )(x2d, *_attn_args(p["attn"]),
      p["ln1_g"], p["ln1_b"],
      p["w1"], p["b1"], p["w2"], p["b2"],
      p["ln2_g"], p["ln2_b"])


def decoder_layer(x2d, mem2d, p, *, B, S, nh):
    E = x2d.shape[-1]
    return pl.pallas_call(
        partial(_decoder_layer_kernel, B=B, S=S, nh=nh),
        out_shape=jax.ShapeDtypeStruct((B * S, E), jnp.float32),
    )(x2d, mem2d,
      *_attn_args(p["self_attn"]),
      p["ln1_g"], p["ln1_b"],
      *_attn_args(p["cross_attn"]),
      p["ln2_g"], p["ln2_b"],
      p["w1"], p["b1"], p["w2"], p["b2"],
      p["ln3_g"], p["ln3_b"])


def plain_layernorm(x2d, g, b):
    return pl.pallas_call(
        _layernorm_kernel,
        out_shape=jax.ShapeDtypeStruct(x2d.shape, jnp.float32),
    )(x2d, g, b)


def final_head(y2d, g, b, w_pad, b_pad):
    M = y2d.shape[0]
    Vp = w_pad.shape[1]
    return pl.pallas_call(
        _final_head_kernel,
        out_shape=jax.ShapeDtypeStruct((M, Vp), jnp.float32),
    )(y2d, g, b, w_pad, b_pad)


# ----------------------------- model forward -------------------------------- #

def char_transformer_forward(params, src, *, num_heads):
    B, S = src.shape
    V, E = params["embedding"].shape

    # embedding * sqrt(E) + positional encoding (dropout = identity, eval mode)
    x = jnp.take(params["embedding"], src, axis=0) * jnp.float32(math.sqrt(E))
    x = x + params["pe"][:S][None, :, :]
    x2d = x.reshape(B * S, E)

    # encoder stack + final encoder LayerNorm
    h = x2d
    for lp in params["enc_layers"]:
        h = encoder_layer(h, lp, B=B, S=S, nh=num_heads)
    memory = plain_layernorm(h, params["enc_norm_g"], params["enc_norm_b"])

    # decoder stack (tgt = embed, as in the PyTorch forward)
    y = x2d
    for lp in params["dec_layers"]:
        y = decoder_layer(y, memory, lp, B=B, S=S, nh=num_heads)

    # final decoder LayerNorm + classifier (vocab padded to 128 lanes, sliced back)
    logits_pad = final_head(y, params["dec_norm_g"], params["dec_norm_b"],
                            params["fc_w_pad"], params["fc_b_pad"])
    return logits_pad[:, :V].reshape(B, S, V)


# ----------------------------- parameter init ------------------------------- #

def _init_linear(key, n_in, n_out):
    k1, k2 = jax.random.split(key)
    w = jax.random.normal(k1, (n_in, n_out), jnp.float32) * 0.02
    b = jax.random.normal(k2, (n_out,), jnp.float32) * 0.02
    return w, b


def _init_mha(key, E, nh):
    """Init an (E,E) q/k/v/out projection and store it in per-head blocks."""
    Dh = E // nh
    ks = jax.random.split(key, 4)
    wq, bq = _init_linear(ks[0], E, E)
    wk, bk = _init_linear(ks[1], E, E)
    wv, bv = _init_linear(ks[2], E, E)
    wo, bo = _init_linear(ks[3], E, E)

    def heads_in(w):   # (E, E) -> (nh, E, Dh): per-head output-column blocks
        return jnp.stack([w[:, h * Dh:(h + 1) * Dh] for h in range(nh)])

    def heads_b(b):    # (E,) -> (nh, 1, Dh)
        return jnp.stack([b[h * Dh:(h + 1) * Dh].reshape(1, Dh) for h in range(nh)])

    wo_h = jnp.stack([wo[h * Dh:(h + 1) * Dh, :] for h in range(nh)])  # (nh, Dh, E)
    return dict(wq=heads_in(wq), bq=heads_b(bq),
                wk=heads_in(wk), bk=heads_b(bk),
                wv=heads_in(wv), bv=heads_b(bv),
                wo=wo_h, bo=bo.reshape(1, E))


def _init_enc_layer(key, E, H, nh):
    ks = jax.random.split(key, 3)
    w1, b1 = _init_linear(ks[1], E, H)
    w2, b2 = _init_linear(ks[2], H, E)
    return dict(attn=_init_mha(ks[0], E, nh),
                w1=w1, b1=b1.reshape(1, H), w2=w2, b2=b2.reshape(1, E),
                ln1_g=jnp.ones((1, E), jnp.float32), ln1_b=jnp.zeros((1, E), jnp.float32),
                ln2_g=jnp.ones((1, E), jnp.float32), ln2_b=jnp.zeros((1, E), jnp.float32))


def _init_dec_layer(key, E, H, nh):
    ks = jax.random.split(key, 4)
    w1, b1 = _init_linear(ks[2], E, H)
    w2, b2 = _init_linear(ks[3], H, E)
    return dict(self_attn=_init_mha(ks[0], E, nh),
                cross_attn=_init_mha(ks[1], E, nh),
                w1=w1, b1=b1.reshape(1, H), w2=w2, b2=b2.reshape(1, E),
                ln1_g=jnp.ones((1, E), jnp.float32), ln1_b=jnp.zeros((1, E), jnp.float32),
                ln2_g=jnp.ones((1, E), jnp.float32), ln2_b=jnp.zeros((1, E), jnp.float32),
                ln3_g=jnp.ones((1, E), jnp.float32), ln3_b=jnp.zeros((1, E), jnp.float32))


def _make_positional_encoding(E, max_len=5000):
    pos = jnp.arange(max_len, dtype=jnp.float32)[:, None]
    div = jnp.exp(jnp.arange(0, E, 2, dtype=jnp.float32) * (-math.log(10000.0) / E))
    pe = jnp.zeros((max_len, E), jnp.float32)
    pe = pe.at[:, 0::2].set(jnp.sin(pos * div))
    if E % 2 == 1:
        pe = pe.at[:, 1::2].set(jnp.cos(pos * div[:-1]))
    else:
        pe = pe.at[:, 1::2].set(jnp.cos(pos * div))
    return pe


def init_params(key, vocab_size, embed_size, num_heads, hidden_dim, num_layers):
    ks = jax.random.split(key, 2 * num_layers + 2)
    enc_layers = [_init_enc_layer(ks[i], embed_size, hidden_dim, num_heads)
                  for i in range(num_layers)]
    dec_layers = [_init_dec_layer(ks[num_layers + i], embed_size, hidden_dim, num_heads)
                  for i in range(num_layers)]
    emb = jax.random.normal(ks[-2], (vocab_size, embed_size), jnp.float32) * 0.02
    fc_w, fc_b = _init_linear(ks[-1], embed_size, vocab_size)
    v_pad = ((vocab_size + 127) // 128) * 128                 # lane-dense classifier width
    fc_w_pad = jnp.zeros((embed_size, v_pad), jnp.float32).at[:, :vocab_size].set(fc_w)
    fc_b_pad = jnp.zeros((1, v_pad), jnp.float32).at[:, :vocab_size].set(fc_b)
    return dict(
        embedding=emb,
        pe=_make_positional_encoding(embed_size),
        enc_layers=enc_layers,
        dec_layers=dec_layers,
        enc_norm_g=jnp.ones((1, embed_size), jnp.float32),
        enc_norm_b=jnp.zeros((1, embed_size), jnp.float32),
        dec_norm_g=jnp.ones((1, embed_size), jnp.float32),
        dec_norm_b=jnp.zeros((1, embed_size), jnp.float32),
        fc_w_pad=fc_w_pad, fc_b_pad=fc_b_pad,
    )


# ----------------------------------- main ----------------------------------- #

if __name__ == "__main__":
    vocab_size, embed_size, num_heads, hidden_dim, num_layers = 50, 32, 2, 64, 2
    batch, seq = 2, 8

    root = jax.random.PRNGKey(0)
    k_params, k_src = jax.random.split(root)
    params = init_params(k_params, vocab_size, embed_size, num_heads, hidden_dim, num_layers)
    src = jax.random.randint(k_src, (batch, seq), 0, vocab_size, dtype=jnp.int32)

    fwd = jax.jit(partial(char_transformer_forward, num_heads=num_heads))
    logits = fwd(params, src)
    jax.block_until_ready(logits)

    assert logits.shape == (batch, seq, vocab_size)
    assert bool(jnp.all(jnp.isfinite(logits)))
    print("KERNEL_OK")
</pallas_src>

<mosaic_0001>
module attributes {stable_mosaic.version = 11 : i64} {
  func.func @_layernorm_kernel(%arg0: memref<16x32xf32, #tpu.memory_space<vmem>>, %arg1: memref<1x32xf32, #tpu.memory_space<vmem>>, %arg2: memref<1x32xf32, #tpu.memory_space<vmem>>, %arg3: memref<16x32xf32, #tpu.memory_space<vmem>>) attributes {dimension_semantics = [], scalar_prefetch = 0 : i64, scratch_operands = 0 : i64, tpu.core_type = #tpu.core_type<tc>} {
    %c0 = arith.constant 0 : index
    %c0_0 = arith.constant 0 : index
    %0 = vector.load %arg0[%c0, %c0_0] : memref<16x32xf32, #tpu.memory_space<vmem>>, vector<16x32xf32>
    %c0_1 = arith.constant 0 : index
    %c0_2 = arith.constant 0 : index
    %1 = vector.load %arg1[%c0_1, %c0_2] : memref<1x32xf32, #tpu.memory_space<vmem>>, vector<1x32xf32>
    %c0_3 = arith.constant 0 : index
    %c0_4 = arith.constant 0 : index
    %2 = vector.load %arg2[%c0_3, %c0_4] : memref<1x32xf32, #tpu.memory_space<vmem>>, vector<1x32xf32>
    %cst = arith.constant dense<0.000000e+00> : vector<16xf32>
    %3 = vector.multi_reduction <add>, %0, %cst [1] : vector<16x32xf32> to vector<16xf32>
    %4 = vector.shape_cast %3 : vector<16xf32> to vector<16x1xf32>
    %cst_5 = arith.constant 3.200000e+01 : f32
    %5 = vector.broadcast %cst_5 : f32 to vector<16x1xf32>
    %6 = arith.divf %4, %5 : vector<16x1xf32>
    %7 = vector.broadcast %6 : vector<16x1xf32> to vector<16x32xf32>
    %8 = arith.subf %0, %7 : vector<16x32xf32>
    %9 = arith.mulf %8, %8 : vector<16x32xf32>
    %cst_6 = arith.constant dense<0.000000e+00> : vector<16xf32>
    %10 = vector.multi_reduction <add>, %9, %cst_6 [1] : vector<16x32xf32> to vector<16xf32>
    %11 = vector.shape_cast %10 : vector<16xf32> to vector<16x1xf32>
    %cst_7 = arith.constant 3.200000e+01 : f32
    %12 = vector.broadcast %cst_7 : f32 to vector<16x1xf32>
    %13 = arith.divf %11, %12 : vector<16x1xf32>
    %14 = vector.broadcast %6 : vector<16x1xf32> to vector<16x32xf32>
    %15 = arith.subf %0, %14 : vector<16x32xf32>
    %cst_8 = arith.constant 9.99999974E-6 : f32
    %16 = vector.broadcast %cst_8 : f32 to vector<16x1xf32>
    %17 = arith.addf %13, %16 : vector<16x1xf32>
    %18 = math.rsqrt %17 : vector<16x1xf32>
    %19 = vector.broadcast %18 : vector<16x1xf32> to vector<16x32xf32>
    %20 = arith.mulf %15, %19 : vector<16x32xf32>
    %21 = vector.broadcast %1 : vector<1x32xf32> to vector<16x32xf32>
    %22 = arith.mulf %20, %21 : vector<16x32xf32>
    %23 = vector.broadcast %2 : vector<1x32xf32> to vector<16x32xf32>
    %24 = arith.addf %22, %23 : vector<16x32xf32>
    %c0_9 = arith.constant 0 : index
    %c0_10 = arith.constant 0 : index
    %25 = vector.load %arg3[%c0_9, %c0_10] : memref<16x32xf32, #tpu.memory_space<vmem>>, vector<16x32xf32>
    tpu.vector_store %arg3[%c0_9, %c0_10], %24 {strides = array<i32>} : memref<16x32xf32, #tpu.memory_space<vmem>>, vector<16x32xf32>,
    return
  }
}

module attributes {stable_mosaic.version = 11 : i64} {
  func.func @_decoder_layer_kernel(%arg0: memref<16x32xf32, #tpu.memory_space<vmem>>, %arg1: memref<16x32xf32, #tpu.memory_space<vmem>>, %arg2: memref<2x32x16xf32, #tpu.memory_space<vmem>>, %arg3: memref<2x1x16xf32, #tpu.memory_space<vmem>>, %arg4: memref<2x32x16xf32, #tpu.memory_space<vmem>>, %arg5: memref<2x1x16xf32, #tpu.memory_space<vmem>>, %arg6: memref<2x32x16xf32, #tpu.memory_space<vmem>>, %arg7: memref<2x1x16xf32, #tpu.memory_space<vmem>>, %arg8: memref<2x16x32xf32, #tpu.memory_space<vmem>>, %arg9: memref<1x32xf32, #tpu.memory_space<vmem>>, %arg10: memref<1x32xf32, #tpu.memory_space<vmem>>, %arg11: memref<1x32xf32, #tpu.memory_space<vmem>>, %arg12: memref<2x32x16xf32, #tpu.memory_space<vmem>>, %arg13: memref<2x1x16xf32, #tpu.memory_space<vmem>>, %arg14: memref<2x32x16xf32, #tpu.memory_space<vmem>>, %arg15: memref<2x1x16xf32, #tpu.memory_space<vmem>>, %arg16: memref<2x32x16xf32, #tpu.memory_space<vmem>>, %arg17: memref<2x1x16xf32, #tpu.memory_space<vmem>>, %arg18: memref<2x16x32xf32, #tpu.memory_space<vmem>>, %arg19: memref<1x32xf32, #tpu.memory_space<vmem>>, %arg20: memref<1x32xf32, #tpu.memory_space<vmem>>, %arg21: memref<1x32xf32, #tpu.memory_space<vmem>>, %arg22: memref<32x64xf32, #tpu.memory_space<vmem>>, %arg23: memref<1x64xf32, #tpu.memory_space<vmem>>, %arg24: memref<64x32xf32, #tpu.memory_space<vmem>>, %arg25: memref<1x32xf32, #tpu.memory_space<vmem>>, %arg26: memref<1x32xf32, #tpu.memory_space<vmem>>, %arg27: memref<1x32xf32, #tpu.memory_space<vmem>>, %arg28: memref<16x32xf32, #tpu.memory_space<vmem>>) attributes {dimension_semantics = [], scalar_prefetch = 0 : i64, scratch_operands = 0 : i64, tpu.core_type = #tpu.core_type<tc>} {
    %c0 = arith.constant 0 : index
    %c0_0 = arith.constant 0 : index
    %0 = vector.load %arg0[%c0, %c0_0] : memref<16x32xf32, #tpu.memory_space<vmem>>, vector<16x32xf32>
    %c0_1 = arith.constant 0 : index
    %c0_2 = arith.constant 0 : index
    %1 = vector.load %arg1[%c0_1, %c0_2] : memref<16x32xf32, #tpu.memory_space<vmem>>, vector<16x32xf32>
    %2 = tpu.iota {dimensions = array<i32: 0>} : vector<8x8xi32>
    %3 = tpu.iota {dimensions = array<i32: 1>} : vector<8x8xi32>
    %4 = arith.cmpi sge, %2, %3 : vector<8x8xi32>
    %cst = arith.constant 0.000000e+00 : f32
    %cst_3 = arith.constant -1.000000e+30 : f32
    %5 = vector.broadcast %cst : f32 to vector<8x8xf32>
    %6 = vector.broadcast %cst_3 : f32 to vector<8x8xf32>
    %7 = arith.select %4, %5, %6 : vector<8x8xi1>, vector<8x8xf32>
    %c0_4 = arith.constant 0 : index
    %c0_5 = arith.constant 0 : index
    %c0_6 = arith.constant 0 : index
    %8 = vector.load %arg2[%c0_4, %c0_5, %c0_6] : memref<2x32x16xf32, #tpu.memory_space<vmem>>, vector<1x32x16xf32>
    %9 = vector.shape_cast %8 : vector<1x32x16xf32> to vector<32x16xf32>
    %cst_7 = arith.constant dense<0.000000e+00> : vector<16x16xf32>
    %10 = tpu.matmul %0, %9, %cst_7 {dimension_numbers = #tpu.dot_dimension_numbers<[1], [0], [0], [1], [0, 0, 1, 1], [], []>} : vector<16x32xf32>, vector<32x16xf32>, vector<16x16xf32> -> vector<16x16xf32>
    %c0_8 = arith.constant 0 : index
    %c0_9 = arith.constant 0 : index
    %c0_10 = arith.constant 0 : index
    %11 = vector.load %arg3[%c0_8, %c0_9, %c0_10] : memref<2x1x16xf32, #tpu.memory_space<vmem>>, vector<1x1x16xf32>
    %12 = vector.shape_cast %11 : vector<1x1x16xf32> to vector<1x16xf32>
    %13 = vector.broadcast %12 : vector<1x16xf32> to vector<16x16xf32>
    %14 = arith.addf %10, %13 : vector<16x16xf32>
    %c0_11 = arith.constant 0 : index
    %c0_12 = arith.constant 0 : index
    %c0_13 = arith.constant 0 : index
    %15 = vector.load %arg4[%c0_11, %c0_12, %c0_13] : memref<2x32x16xf32, #tpu.memory_space<vmem>>, vector<1x32x16xf32>
    %16 = vector.shape_cast %15 : vector<1x32x16xf32> to vector<32x16xf32>
    %cst_14 = arith.constant dense<0.000000e+00> : vector<16x16xf32>
    %17 = tpu.matmul %0, %16, %cst_14 {dimension_numbers = #tpu.dot_dimension_numbers<[1], [0], [0], [1], [0, 0, 1, 1], [], []>} : vector<16x32xf32>, vector<32x16xf32>, vector<16x16xf32> -> vector<16x16xf32>
    %c0_15 = arith.constant 0 : index
    %c0_16 = arith.constant 0 : index
    %c0_17 = arith.constant 0 : index
    %18 = vector.load %arg5[%c0_15, %c0_16, %c0_17] : memref<2x1x16xf32, #tpu.memory_space<vmem>>, vector<1x1x16xf32>
    %19 = vector.shape_cast %18 : vector<1x1x16xf32> to vector<1x16xf32>
    %20 = vector.broadcast %19 : vector<1x16xf32> to vector<16x16xf32>
    %21 = arith.addf %17, %20 : vector<16x16xf32>
    %c0_18 = arith.constant 0 : index
    %c0_19 = arith.constant 0 : index
    %c0_20 = arith.constant 0 : index
    %22 = vector.load %arg6[%c0_18, %c0_19, %c0_20] : memref<2x32x16xf32, #tpu.memory_space<vmem>>, vector<1x32x16xf32>
    %23 = vector.shape_cast %22 : vector<1x32x16xf32> to vector<32x16xf32>
    %cst_21 = arith.constant dense<0.000000e+00> : vector<16x16xf32>
    %24 = tpu.matmul %0, %23, %cst_21 {dimension_numbers = #tpu.dot_dimension_numbers<[1], [0], [0], [1], [0, 0, 1, 1], [], []>} : vector<16x32xf32>, vector<32x16xf32>, vector<16x16xf32> -> vector<16x16xf32>
    %c0_22 = arith.constant 0 : index
    %c0_23 = arith.constant 0 : index
    %c0_24 = arith.constant 0 : index
    %25 = vector.load %arg7[%c0_22, %c0_23, %c0_24] : memref<2x1x16xf32, #tpu.memory_space<vmem>>, vector<1x1x16xf32>
    %26 = vector.shape_cast %25 : vector<1x1x16xf32> to vector<1x16xf32>
    %27 = vector.broadcast %26 : vector<1x16xf32> to vector<16x16xf32>
    %28 = arith.addf %24, %27 : vector<16x16xf32>
    %c0_25 = arith.constant 0 : index
    %c0_26 = arith.constant 0 : index
    %c0_27 = arith.constant 0 : index
    %29 = vector.load %arg8[%c0_25, %c0_26, %c0_27] : memref<2x16x32xf32, #tpu.memory_space<vmem>>, vector<1x16x32xf32>
    %30 = vector.shape_cast %29 : vector<1x16x32xf32> to vector<16x32xf32>
    %31 = vector.extract_strided_slice %14 {offsets = [0, 0], sizes = [8, 16], strides = [1, 1]} : vector<16x16xf32> to vector<8x16xf32>
    %32 = vector.extract_strided_slice %21 {offsets = [0, 0], sizes = [8, 16], strides = [1, 1]} : vector<16x16xf32> to vector<8x16xf32>
    %33 = vector.extract_strided_slice %28 {offsets = [0, 0], sizes = [8, 16], strides = [1, 1]} : vector<16x16xf32> to vector<8x16xf32>
    %34 = tpu.transpose %32, [1, 0] : vector<8x16xf32> -> vector<16x8xf32>
    %cst_28 = arith.constant dense<0.000000e+00> : vector<8x8xf32>
    %35 = tpu.matmul %31, %34, %cst_28 {dimension_numbers = #tpu.dot_dimension_numbers<[1], [0], [0], [1], [0, 0, 1, 1], [], []>} : vector<8x16xf32>, vector<16x8xf32>, vector<8x8xf32> -> vector<8x8xf32>
    %cst_29 = arith.constant 2.500000e-01 : f32
    %36 = vector.broadcast %cst_29 : f32 to vector<8x8xf32>
    %37 = arith.mulf %35, %36 : vector<8x8xf32>
    %38 = arith.addf %37, %7 : vector<8x8xf32>
    %cst_30 = arith.constant dense<0xFF800000> : vector<8xf32>
    %39 = vector.multi_reduction <maximumf>, %38, %cst_30 [1] : vector<8x8xf32> to vector<8xf32>
    %40 = vector.shape_cast %39 : vector<8xf32> to vector<8x1xf32>
    %41 = vector.broadcast %40 : vector<8x1xf32> to vector<8x8xf32>
    %42 = arith.subf %38, %41 : vector<8x8xf32>
    %43 = math.exp %42 : vector<8x8xf32>
    %cst_31 = arith.constant dense<0.000000e+00> : vector<8xf32>
    %44 = vector.multi_reduction <add>, %43, %cst_31 [1] : vector<8x8xf32> to vector<8xf32>
    %45 = vector.shape_cast %44 : vector<8xf32> to vector<8x1xf32>
    %46 = vector.broadcast %45 : vector<8x1xf32> to vector<8x8xf32>
    %47 = arith.divf %43, %46 : vector<8x8xf32>
    %cst_32 = arith.constant dense<0.000000e+00> : vector<8x16xf32>
    %48 = tpu.matmul %47, %33, %cst_32 {dimension_numbers = #tpu.dot_dimension_numbers<[1], [0], [0], [1], [0, 0, 1, 1], [], []>} : vector<8x8xf32>, vector<8x16xf32>, vector<8x16xf32> -> vector<8x16xf32>
    %cst_33 = arith.constant dense<0.000000e+00> : vector<8x32xf32>
    %49 = tpu.matmul %48, %30, %cst_33 {dimension_numbers = #tpu.dot_dimension_numbers<[1], [0], [0], [1], [0, 0, 1, 1], [], []>} : vector<8x16xf32>, vector<16x32xf32>, vector<8x32xf32> -> vector<8x32xf32>
    %50 = vector.extract_strided_slice %14 {offsets = [8, 0], sizes = [8, 16], strides = [1, 1]} : vector<16x16xf32> to vector<8x16xf32>
    %51 = vector.extract_strided_slice %21 {offsets = [8, 0], sizes = [8, 16], strides = [1, 1]} : vector<16x16xf32> to vector<8x16xf32>
    %52 = vector.extract_strided_slice %28 {offsets = [8, 0], sizes = [8, 16], strides = [1, 1]} : vector<16x16xf32> to vector<8x16xf32>
    %53 = tpu.transpose %51, [1, 0] : vector<8x16xf32> -> vector<16x8xf32>
    %cst_34 = arith.constant dense<0.000000e+00> : vector<8x8xf32>
    %54 = tpu.matmul %50, %53, %cst_34 {dimension_numbers = #tpu.dot_dimension_numbers<[1], [0], [0], [1], [0, 0, 1, 1], [], []>} : vector<8x16xf32>, vector<16x8xf32>, vector<8x8xf32> -> vector<8x8xf32>
    %cst_35 = arith.constant 2.500000e-01 : f32
    %55 = vector.broadcast %cst_35 : f32 to vector<8x8xf32>
    %56 = arith.mulf %54, %55 : vector<8x8xf32>
    %57 = arith.addf %56, %7 : vector<8x8xf32>
    %cst_36 = arith.constant dense<0xFF800000> : vector<8xf32>
    %58 = vector.multi_reduction <maximumf>, %57, %cst_36 [1] : vector<8x8xf32> to vector<8xf32>
    %59 = vector.shape_cast %58 : vector<8xf32> to vector<8x1xf32>
    %60 = vector.broadcast %59 : vector<8x1xf32> to vector<8x8xf32>
    %61 = arith.subf %57, %60 : vector<8x8xf32>
    %62 = math.exp %61 : vector<8x8xf32>
    %cst_37 = arith.constant dense<0.000000e+00> : vector<8xf32>
    %63 = vector.multi_reduction <add>, %62, %cst_37 [1] : vector<8x8xf32> to vector<8xf32>
    %64 = vector.shape_cast %63 : vector<8xf32> to vector<8x1xf32>
    %65 = vector.broadcast %64 : vector<8x1xf32> to vector<8x8xf32>
    %66 = arith.divf %62, %65 : vector<8x8xf32>
    %cst_38 = arith.constant dense<0.000000e+00> : vector<8x16xf32>
    %67 = tpu.matmul %66, %52, %cst_38 {dimension_numbers = #tpu.dot_dimension_numbers<[1], [0], [0], [1], [0, 0, 1, 1], [], []>} : vector<8x8xf32>, vector<8x16xf32>, vector<8x16xf32> -> vector<8x16xf32>
    %cst_39 = arith.constant dense<0.000000e+00> : vector<8x32xf32>
    %68 = tpu.matmul %67, %30, %cst_39 {dimension_numbers = #tpu.dot_dimension_numbers<[1], [0], [0], [1], [0, 0, 1, 1], [], []>} : vector<8x16xf32>, vector<16x32xf32>, vector<8x32xf32> -> vector<8x32xf32>
    %c1 = arith.constant 1 : index
    %c0_40 = arith.constant 0 : index
    %c0_41 = arith.constant 0 : index
    %69 = vector.load %arg2[%c1, %c0_40, %c0_41] : memref<2x32x16xf32, #tpu.memory_space<vmem>>, vector<1x32x16xf32>
    %70 = vector.shape_cast %69 : vector<1x32x16xf32> to vector<32x16xf32>
    %cst_42 = arith.constant dense<0.000000e+00> : vector<16x16xf32>
    %71 = tpu.matmul %0, %70, %cst_42 {dimension_numbers = #tpu.dot_dimension_numbers<[1], [0], [0], [1], [0, 0, 1, 1], [], []>} : vector<16x32xf32>, vector<32x16xf32>, vector<16x16xf32> -> vector<16x16xf32>
    %c1_43 = arith.constant 1 : index
    %c0_44 = arith.constant 0 : index
    %c0_45 = arith.constant 0 : index
    %72 = vector.load %arg3[%c1_43, %c0_44, %c0_45] : memref<2x1x16xf32, #tpu.memory_space<vmem>>, vector<1x1x16xf32>
    %73 = vector.shape_cast %72 : vector<1x1x16xf32> to vector<1x16xf32>
    %74 = vector.broadcast %73 : vector<1x16xf32> to vector<16x16xf32>
    %75 = arith.addf %71, %74 : vector<16x16xf32>
    %c1_46 = arith.constant 1 : index
    %c0_47 = arith.constant 0 : index
    %c0_48 = arith.constant 0 : index
    %76 = vector.load %arg4[%c1_46, %c0_47, %c0_48] : memref<2x32x16xf32, #tpu.memory_space<vmem>>, vector<1x32x16xf32>
    %77 = vector.shape_cast %76 : vector<1x32x16xf32> to vector<32x16xf32>
    %cst_49 = arith.constant dense<0.000000e+00> : vector<16x16xf32>
    %78 = tpu.matmul %0, %77, %cst_49 {dimension_numbers = #tpu.dot_dimension_numbers<[1], [0], [0], [1], [0, 0, 1, 1], [], []>} : vector<16x32xf32>, vector<32x16xf32>, vector<16x16xf32> -> vector<16x16xf32>
    %c1_50 = arith.constant 1 : index
    %c0_51 = arith.constant 0 : index
    %c0_52 = arith.constant 0 : index
    %79 = vector.load %arg5[%c1_50, %c0_51, %c0_52] : memref<2x1x16xf32, #tpu.memory_space<vmem>>, vector<1x1x16xf32>
    %80 = vector.shape_cast %79 : vector<1x1x16xf32> to vector<1x16xf32>
    %81 = vector.broadcast %80 : vector<1x16xf32> to vector<16x16xf32>
    %82 = arith.addf %78, %81 : vector<16x16xf32>
    %c1_53 = arith.constant 1 : index
    %c0_54 = arith.constant 0 : index
    %c0_55 = arith.constant 0 : index
    %83 = vector.load %arg6[%c1_53, %c0_54, %c0_55] : memref<2x32x16xf32, #tpu.memory_space<vmem>>, vector<1x32x16xf32>
    %84 = vector.shape_cast %83 : vector<1x32x16xf32> to vector<32x16xf32>
    %cst_56 = arith.constant dense<0.000000e+00> : vector<16x16xf32>
    %85 = tpu.matmul %0, %84, %cst_56 {dimension_numbers = #tpu.dot_dimension_numbers<[1], [0], [0], [1], [0, 0, 1, 1], [], []>} : vector<16x32xf32>, vector<32x16xf32>, vector<16x16xf32> -> vector<16x16xf32>
    %c1_57 = arith.constant 1 : index
    %c0_58 = arith.constant 0 : index
    %c0_59 = arith.constant 0 : index
    %86 = vector.load %arg7[%c1_57, %c0_58, %c0_59] : memref<2x1x16xf32, #tpu.memory_space<vmem>>, vector<1x1x16xf32>
    %87 = vector.shape_cast %86 : vector<1x1x16xf32> to vector<1x16xf32>
    %88 = vector.broadcast %87 : vector<1x16xf32> to vector<16x16xf32>
    %89 = arith.addf %85, %88 : vector<16x16xf32>
    %c1_60 = arith.constant 1 : index
    %c0_61 = arith.constant 0 : index
    %c0_62 = arith.constant 0 : index
    %90 = vector.load %arg8[%c1_60, %c0_61, %c0_62] : memref<2x16x32xf32, #tpu.memory_space<vmem>>, vector<1x16x32xf32>
    %91 = vector.shape_cast %90 : vector<1x16x32xf32> to vector<16x32xf32>
    %92 = vector.extract_strided_slice %75 {offsets = [0, 0], sizes = [8, 16], strides = [1, 1]} : vector<16x16xf32> to vector<8x16xf32>
    %93 = vector.extract_strided_slice %82 {offsets = [0, 0], sizes = [8, 16], strides = [1, 1]} : vector<16x16xf32> to vector<8x16xf32>
    %94 = vector.extract_strided_slice %89 {offsets = [0, 0], sizes = [8, 16], strides = [1, 1]} : vector<16x16xf32> to vector<8x16xf32>
    %95 = tpu.transpose %93, [1, 0] : vector<8x16xf32> -> vector<16x8xf32>
    %cst_63 = arith.constant dense<0.000000e+00> : vector<8x8xf32>
    %96 = tpu.matmul %92, %95, %cst_63 {dimension_numbers = #tpu.dot_dimension_numbers<[1], [0], [0], [1], [0, 0, 1, 1], [], []>} : vector<8x16xf32>, vector<16x8xf32>, vector<8x8xf32> -> vector<8x8xf32>
    %cst_64 = arith.constant 2.500000e-01 : f32
    %97 = vector.broadcast %cst_64 : f32 to vector<8x8xf32>
    %98 = arith.mulf %96, %97 : vector<8x8xf32>
    %99 = arith.addf %98, %7 : vector<8x8xf32>
    %cst_65 = arith.constant dense<0xFF800000> : vector<8xf32>
    %100 = vector.multi_reduction <maximumf>, %99, %cst_65 [1] : vector<8x8xf32> to vector<8xf32>
    %101 = vector.shape_cast %100 : vector<8xf32> to vector<8x1xf32>
    %102 = vector.broadcast %101 : vector<8x1xf32> to vector<8x8xf32>
    %103 = arith.subf %99, %102 : vector<8x8xf32>
    %104 = math.exp %103 : vector<8x8xf32>
    %cst_66 = arith.constant dense<0.000000e+00> : vector<8xf32>
    %105 = vector.multi_reduction <add>, %104, %cst_66 [1] : vector<8x8xf32> to vector<8xf32>
    %106 = vector.shape_cast %105 : vector<8xf32> to vector<8x1xf32>
    %107 = vector.broadcast %106 : vector<8x1xf32> to vector<8x8xf32>
    %108 = arith.divf %104, %107 : vector<8x8xf32>
    %cst_67 = arith.constant dense<0.000000e+00> : vector<8x16xf32>
    %109 = tpu.matmul %108, %94, %cst_67 {dimension_numbers = #tpu.dot_dimension_numbers<[1], [0], [0], [1], [0, 0, 1, 1], [], []>} : vector<8x8xf32>, vector<8x16xf32>, vector<8x16xf32> -> vector<8x16xf32>
    %cst_68 = arith.constant dense<0.000000e+00> : vector<8x32xf32>
    %110 = tpu.matmul %109, %91, %cst_68 {dimension_numbers = #tpu.dot_dimension_numbers<[1], [0], [0], [1], [0, 0, 1, 1], [], []>} : vector<8x16xf32>, vector<16x32xf32>, vector<8x32xf32> -> vector<8x32xf32>
    %111 = arith.addf %49, %110 : vector<8x32xf32>
    %112 = vector.extract_strided_slice %75 {offsets = [8, 0], sizes = [8, 16], strides = [1, 1]} : vector<16x16xf32> to vector<8x16xf32>
    %113 = vector.extract_strided_slice %82 {offsets = [8, 0], sizes = [8, 16], strides = [1, 1]} : vector<16x16xf32> to vector<8x16xf32>
    %114 = vector.extract_strided_slice %89 {offsets = [8, 0], sizes = [8, 16], strides = [1, 1]} : vector<16x16xf32> to vector<8x16xf32>
    %115 = tpu.transpose %113, [1, 0] : vector<8x16xf32> -> vector<16x8xf32>
    %cst_69 = arith.constant dense<0.000000e+00> : vector<8x8xf32>
    %116 = tpu.matmul %112, %115, %cst_69 {dimension_numbers = #tpu.dot_dimension_numbers<[1], [0], [0], [1], [0, 0, 1, 1], [], []>} : vector<8x16xf32>, vector<16x8xf32>, vector<8x8xf32> -> vector<8x8xf32>
    %cst_70 = arith.constant 2.500000e-01 : f32
    %117 = vector.broadcast %cst_70 : f32 to vector<8x8xf32>
    %118 = arith.mulf %116, %117 : vector<8x8xf32>
    %119 = arith.addf %118, %7 : vector<8x8xf32>
    %cst_71 = arith.constant dense<0xFF800000> : vector<8xf32>
    %120 = vector.multi_reduction <maximumf>, %119, %cst_71 [1] : vector<8x8xf32> to vector<8xf32>
    %121 = vector.shape_cast %120 : vector<8xf32> to vector<8x1xf32>
    %122 = vector.broadcast %121 : vector<8x1xf32> to vector<8x8xf32>
    %123 = arith.subf %119, %122 : vector<8x8xf32>
    %124 = math.exp %123 : vector<8x8xf32>
    %cst_72 = arith.constant dense<0.000000e+00> : vector<8xf32>
    %125 = vector.multi_reduction <add>, %124, %cst_72 [1] : vector<8x8xf32> to vector<8xf32>
    %126 = vector.shape_cast %125 : vector<8xf32> to vector<8x1xf32>
    %127 = vector.broadcast %126 : vector<8x1xf32> to vector<8x8xf32>
    %128 = arith.divf %124, %127 : vector<8x8xf32>
    %cst_73 = arith.constant dense<0.000000e+00> : vector<8x16xf32>
    %129 = tpu.matmul %128, %114, %cst_73 {dimension_numbers = #tpu.dot_dimension_numbers<[1], [0], [0], [1], [0, 0, 1, 1], [], []>} : vector<8x8xf32>, vector<8x16xf32>, vector<8x16xf32> -> vector<8x16xf32>
    %cst_74 = arith.constant dense<0.000000e+00> : vector<8x32xf32>
    %130 = tpu.matmul %129, %91, %cst_74 {dimension_numbers = #tpu.dot_dimension_numbers<[1], [0], [0], [1], [0, 0, 1, 1], [], []>} : vector<8x16xf32>, vector<16x32xf32>, vector<8x32xf32> -> vector<8x32xf32>
    %131 = arith.addf %68, %130 : vector<8x32xf32>
    %132 = tpu.concatenate %111, %131 in 0 : vector<8x32xf32>, vector<8x32xf32> -> vector<16x32xf32>
    %c0_75 = arith.constant 0 : index
    %c0_76 = arith.constant 0 : index
    %133 = vector.load %arg9[%c0_75, %c0_76] : memref<1x32xf32, #tpu.memory_space<vmem>>, vector<1x32xf32>
    %134 = vector.broadcast %133 : vector<1x32xf32> to vector<16x32xf32>
    %135 = arith.addf %132, %134 : vector<16x32xf32>
    %136 = arith.addf %0, %135 : vector<16x32xf32>
    %c0_77 = arith.constant 0 : index
    %c0_78 = arith.constant 0 : index
    %137 = vector.load %arg10[%c0_77, %c0_78] : memref<1x32xf32, #tpu.memory_space<vmem>>, vector<1x32xf32>
    %c0_79 = arith.constant 0 : index
    %c0_80 = arith.constant 0 : index
    %138 = vector.load %arg11[%c0_79, %c0_80] : memref<1x32xf32, #tpu.memory_space<vmem>>, vector<1x32xf32>
    %cst_81 = arith.constant dense<0.000000e+00> : vector<16xf32>
    %139 = vector.multi_reduction <add>, %136, %cst_81 [1] : vector<16x32xf32> to vector<16xf32>
    %140 = vector.shape_cast %139 : vector<16xf32> to vector<16x1xf32>
    %cst_82 = arith.constant 3.200000e+01 : f32
    %141 = vector.broadcast %cst_82 : f32 to vector<16x1xf32>
    %142 = arith.divf %140, %141 : vector<16x1xf32>
    %143 = vector.broadcast %142 : vector<16x1xf32> to vector<16x32xf32>
    %144 = arith.subf %136, %143 : vector<16x32xf32>
    %145 = arith.mulf %144, %144 : vector<16x32xf32>
    %cst_83 = arith.constant dense<0.000000e+00> : vector<16xf32>
    %146 = vector.multi_reduction <add>, %145, %cst_83 [1] : vector<16x32xf32> to vector<16xf32>
    %147 = vector.shape_cast %146 : vector<16xf32> to vector<16x1xf32>
    %cst_84 = arith.constant 3.200000e+01 : f32
    %148 = vector.broadcast %cst_84 : f32 to vector<16x1xf32>
    %149 = arith.divf %147, %148 : vector<16x1xf32>
    %150 = vector.broadcast %142 : vector<16x1xf32> to vector<16x32xf32>
    %151 = arith.subf %136, %150 : vector<16x32xf32>
    %cst_85 = arith.constant 9.99999974E-6 : f32
    %152 = vector.broadcast %cst_85 : f32 to vector<16x1xf32>
    %153 = arith.addf %149, %152 : vector<16x1xf32>
    %154 = math.rsqrt %153 : vector<16x1xf32>
    %155 = vector.broadcast %154 : vector<16x1xf32> to vector<16x32xf32>
    %156 = arith.mulf %151, %155 : vector<16x32xf32>
    %157 = vector.broadcast %137 : vector<1x32xf32> to vector<16x32xf32>
    %158 = arith.mulf %156, %157 : vector<16x32xf32>
    %159 = vector.broadcast %138 : vector<1x32xf32> to vector<16x32xf32>
    %160 = arith.addf %158, %159 : vector<16x32xf32>
    %c0_86 = arith.constant 0 : index
    %c0_87 = arith.constant 0 : index
    %c0_88 = arith.constant 0 : index
    %161 = vector.load %arg12[%c0_86, %c0_87, %c0_88] : memref<2x32x16xf32, #tpu.memory_space<vmem>>, vector<1x32x16xf32>
    %162 = vector.shape_cast %161 : vector<1x32x16xf32> to vector<32x16xf32>
    %cst_89 = arith.constant dense<0.000000e+00> : vector<16x16xf32>
    %163 = tpu.matmul %160, %162, %cst_89 {dimension_numbers = #tpu.dot_dimension_numbers<[1], [0], [0], [1], [0, 0, 1, 1], [], []>} : vector<16x32xf32>, vector<32x16xf32>, vector<16x16xf32> -> vector<16x16xf32>
    %c0_90 = arith.constant 0 : index
    %c0_91 = arith.constant 0 : index
    %c0_92 = arith.constant 0 : index
    %164 = vector.load %arg13[%c0_90, %c0_91, %c0_92] : memref<2x1x16xf32, #tpu.memory_space<vmem>>, vector<1x1x16xf32>
    %165 = vector.shape_cast %164 : vector<1x1x16xf32> to vector<1x16xf32>
    %166 = vector.broadcast %165 : vector<1x16xf32> to vector<16x16xf32>
    %167 = arith.addf %163, %166 : vector<16x16xf32>
    %c0_93 = arith.constant 0 : index
    %c0_94 = arith.constant 0 : index
    %c0_95 = arith.constant 0 : index
    %168 = vector.load %arg14[%c0_93, %c0_94, %c0_95] : memref<2x32x16xf32, #tpu.memory_space<vmem>>, vector<1x32x16xf32>
    %169 = vector.shape_cast %168 : vector<1x32x16xf32> to vector<32x16xf32>
    %cst_96 = arith.constant dense<0.000000e+00> : vector<16x16xf32>
    %170 = tpu.matmul %1, %169, %cst_96 {dimension_numbers = #tpu.dot_dimension_numbers<[1], [0], [0], [1], [0, 0, 1, 1], [], []>} : vector<16x32xf32>, vector<32x16xf32>, vector<16x16xf32> -> vector<16x16xf32>
    %c0_97 = arith.constant 0 : index
    %c0_98 = arith.constant 0 : index
    %c0_99 = arith.constant 0 : index
    %171 = vector.load %arg15[%c0_97, %c0_98, %c0_99] : memref<2x1x16xf32, #tpu.memory_space<vmem>>, vector<1x1x16xf32>
    %172 = vector.shape_cast %171 : vector<1x1x16xf32> to vector<1x16xf32>
    %173 = vector.broadcast %172 : vector<1x16xf32> to vector<16x16xf32>
    %174 = arith.addf %170, %173 : vector<16x16xf32>
    %c0_100 = arith.constant 0 : index
    %c0_101 = arith.constant 0 : index
    %c0_102 = arith.constant 0 : index
    %175 = vector.load %arg16[%c0_100, %c0_101, %c0_102] : memref<2x32x16xf32, #tpu.memory_space<vmem>>, vector<1x32x16xf32>
    %176 = vector.shape_cast %175 : vector<1x32x16xf32> to vector<32x16xf32>
    %cst_103 = arith.constant dense<0.000000e+00> : vector<16x16xf32>
    %177 = tpu.matmul %1, %176, %cst_103 {dimension_numbers = #tpu.dot_dimension_numbers<[1], [0], [0], [1], [0, 0, 1, 1], [], []>} : vector<16x32xf32>, vector<32x16xf32>, vector<16x16xf32> -> vector<16x16xf32>
    %c0_104 = arith.constant 0 : index
    %c0_105 = arith.constant 0 : index
    %c0_106 = arith.constant 0 : index
    %178 = vector.load %arg17[%c0_104, %c0_105, %c0_106] : memref<2x1x16xf32, #tpu.memory_space<vmem>>, vector<1x1x16xf32>
    %179 = vector.shape_cast %178 : vector<1x1x16xf32> to vector<1x16xf32>
    %180 = vector.broadcast %179 : vector<1x16xf32> to vector<16x16xf32>
    %181 = arith.addf %177, %180 : vector<16x16xf32>
    %c0_107 = arith.constant 0 : index
    %c0_108 = arith.constant 0 : index
    %c0_109 = arith.constant 0 : index
    %182 = vector.load %arg18[%c0_107, %c0_108, %c0_109] : memref<2x16x32xf32, #tpu.memory_space<vmem>>, vector<1x16x32xf32>
    %183 = vector.shape_cast %182 : vector<1x16x32xf32> to vector<16x32xf32>
    %184 = vector.extract_strided_slice %167 {offsets = [0, 0], sizes = [8, 16], strides = [1, 1]} : vector<16x16xf32> to vector<8x16xf32>
    %185 = vector.extract_strided_slice %174 {offsets = [0, 0], sizes = [8, 16], strides = [1, 1]} : vector<16x16xf32> to vector<8x16xf32>
    %186 = vector.extract_strided_slice %181 {offsets = [0, 0], sizes = [8, 16], strides = [1, 1]} : vector<16x16xf32> to vector<8x16xf32>
    %187 = tpu.transpose %185, [1, 0] : vector<8x16xf32> -> vector<16x8xf32>
    %cst_110 = arith.constant dense<0.000000e+00> : vector<8x8xf32>
    %188 = tpu.matmul %184, %187, %cst_110 {dimension_numbers = #tpu.dot_dimension_numbers<[1], [0], [0], [1], [0, 0, 1, 1], [], []>} : vector<8x16xf32>, vector<16x8xf32>, vector<8x8xf32> -> vector<8x8xf32>
    %cst_111 = arith.constant 2.500000e-01 : f32
    %189 = vector.broadcast %cst_111 : f32 to vector<8x8xf32>
    %190 = arith.mulf %188, %189 : vector<8x8xf32>
    %cst_112 = arith.constant dense<0xFF800000> : vector<8xf32>
    %191 = vector.multi_reduction <maximumf>, %190, %cst_112 [1] : vector<8x8xf32> to vector<8xf32>
    %192 = vector.shape_cast %191 : vector<8xf32> to vector<8x1xf32>
    %193 = vector.broadcast %192 : vector<8x1xf32> to vector<8x8xf32>
    %194 = arith.subf %190, %193 : vector<8x8xf32>
    %195 = math.exp %194 : vector<8x8xf32>
    %cst_113 = arith.constant dense<0.000000e+00> : vector<8xf32>
    %196 = vector.multi_reduction <add>, %195, %cst_113 [1] : vector<8x8xf32> to vector<8xf32>
    %197 = vector.shape_cast %196 : vector<8xf32> to vector<8x1xf32>
    %198 = vector.broadcast %197 : vector<8x1xf32> to vector<8x8xf32>
    %199 = arith.divf %195, %198 : vector<8x8xf32>
    %cst_114 = arith.constant dense<0.000000e+00> : vector<8x16xf32>
    %200 = tpu.matmul %199, %186, %cst_114 {dimension_numbers = #tpu.dot_dimension_numbers<[1], [0], [0], [1], [0, 0, 1, 1], [], []>} : vector<8x8xf32>, vector<8x16xf32>, vector<8x16xf32> -> vector<8x16xf32>
    %cst_115 = arith.constant dense<0.000000e+00> : vector<8x32xf32>
    %201 = tpu.matmul %200, %183, %cst_115 {dimension_numbers = #tpu.dot_dimension_numbers<[1], [0], [0], [1], [0, 0, 1, 1], [], []>} : vector<8x16xf32>, vector<16x32xf32>, vector<8x32xf32> -> vector<8x32xf32>
    %202 = vector.extract_strided_slice %167 {offsets = [8, 0], sizes = [8, 16], strides = [1, 1]} : vector<16x16xf32> to vector<8x16xf32>
    %203 = vector.extract_strided_slice %174 {offsets = [8, 0], sizes = [8, 16], strides = [1, 1]} : vector<16x16xf32> to vector<8x16xf32>
    %204 = vector.extract_strided_slice %181 {offsets = [8, 0], sizes = [8, 16], strides = [1, 1]} : vector<16x16xf32> to vector<8x16xf32>
    %205 = tpu.transpose %203, [1, 0] : vector<8x16xf32> -> vector<16x8xf32>
    %cst_116 = arith.constant dense<0.000000e+00> : vector<8x8xf32>
    %206 = tpu.matmul %202, %205, %cst_116 {dimension_numbers = #tpu.dot_dimension_numbers<[1], [0], [0], [1], [0, 0, 1, 1], [], []>} : vector<8x16xf32>, vector<16x8xf32>, vector<8x8xf32> -> vector<8x8xf32>
    %cst_117 = arith.constant 2.500000e-01 : f32
    %207 = vector.broadcast %cst_117 : f32 to vector<8x8xf32>
    %208 = arith.mulf %206, %207 : vector<8x8xf32>
    %cst_118 = arith.constant dense<0xFF800000> : vector<8xf32>
    %209 = vector.multi_reduction <maximumf>, %208, %cst_118 [1] : vector<8x8xf32> to vector<8xf32>
    %210 = vector.shape_cast %209 : vector<8xf32> to vector<8x1xf32>
    %211 = vector.broadcast %210 : vector<8x1xf32> to vector<8x8xf32>
    %212 = arith.subf %208, %211 : vector<8x8xf32>
    %213 = math.exp %212 : vector<8x8xf32>
    %cst_119 = arith.constant dense<0.000000e+00> : vector<8xf32>
    %214 = vector.multi_reduction <add>, %213, %cst_119 [1] : vector<8x8xf32> to vector<8xf32>
    %215 = vector.shape_cast %214 : vector<8xf32> to vector<8x1xf32>
    %216 = vector.broadcast %215 : vector<8x1xf32> to vector<8x8xf32>
    %217 = arith.divf %213, %216 : vector<8x8xf32>
    %cst_120 = arith.constant dense<0.000000e+00> : vector<8x16xf32>
    %218 = tpu.matmul %217, %204, %cst_120 {dimension_numbers = #tpu.dot_dimension_numbers<[1], [0], [0], [1], [0, 0, 1, 1], [], []>} : vector<8x8xf32>, vector<8x16xf32>, vector<8x16xf32> -> vector<8x16xf32>
    %cst_121 = arith.constant dense<0.000000e+00> : vector<8x32xf32>
    %219 = tpu.matmul %218, %183, %cst_121 {dimension_numbers = #tpu.dot_dimension_numbers<[1], [0], [0], [1], [0, 0, 1, 1], [], []>} : vector<8x16xf32>, vector<16x32xf32>, vector<8x32xf32> -> vector<8x32xf32>
    %c1_122 = arith.constant 1 : index
    %c0_123 = arith.constant 0 : index
    %c0_124 = arith.constant 0 : index
    %220 = vector.load %arg12[%c1_122, %c0_123, %c0_124] : memref<2x32x16xf32, #tpu.memory_space<vmem>>, vector<1x32x16xf32>
    %221 = vector.shape_cast %220 : vector<1x32x16xf32> to vector<32x16xf32>
    %cst_125 = arith.constant dense<0.000000e+00> : vector<16x16xf32>
    %222 = tpu.matmul %160, %221, %cst_125 {dimension_numbers = #tpu.dot_dimension_numbers<[1], [0], [0], [1], [0, 0, 1, 1], [], []>} : vector<16x32xf32>, vector<32x16xf32>, vector<16x16xf32> -> vector<16x16xf32>
    %c1_126 = arith.constant 1 : index
    %c0_127 = arith.constant 0 : index
    %c0_128 = arith.constant 0 : index
    %223 = vector.load %arg13[%c1_126, %c0_127, %c0_128] : memref<2x1x16xf32, #tpu.memory_space<vmem>>, vector<1x1x16xf32>
    %224 = vector.shape_cast %223 : vector<1x1x16xf32> to vector<1x16xf32>
    %225 = vector.broadcast %224 : vector<1x16xf32> to vector<16x16xf32>
    %226 = arith.addf %222, %225 : vector<16x16xf32>
    %c1_129 = arith.constant 1 : index
    %c0_130 = arith.constant 0 : index
    %c0_131 = arith.constant 0 : index
    %227 = vector.load %arg14[%c1_129, %c0_130, %c0_131] : memref<2x32x16xf32, #tpu.memory_space<vmem>>, vector<1x32x16xf32>
    %228 = vector.shape_cast %227 : vector<1x32x16xf32> to vector<32x16xf32>
    %cst_132 = arith.constant dense<0.000000e+00> : vector<16x16xf32>
    %229 = tpu.matmul %1, %228, %cst_132 {dimension_numbers = #tpu.dot_dimension_numbers<[1], [0], [0], [1], [0, 0, 1, 1], [], []>} : vector<16x32xf32>, vector<32x16xf32>, vector<16x16xf32> -> vector<16x16xf32>
    %c1_133 = arith.constant 1 : index
    %c0_134 = arith.constant 0 : index
    %c0_135 = arith.constant 0 : index
    %230 = vector.load %arg15[%c1_133, %c0_134, %c0_135] : memref<2x1x16xf32, #tpu.memory_space<vmem>>, vector<1x1x16xf32>
    %231 = vector.shape_cast %230 : vector<1x1x16xf32> to vector<1x16xf32>
    %232 = vector.broadcast %231 : vector<1x16xf32> to vector<16x16xf32>
    %233 = arith.addf %229, %232 : vector<16x16xf32>
    %c1_136 = arith.constant 1 : index
    %c0_137 = arith.constant 0 : index
    %c0_138 = arith.constant 0 : index
    %234 = vector.load %arg16[%c1_136, %c0_137, %c0_138] : memref<2x32x16xf32, #tpu.memory_space<vmem>>, vector<1x32x16xf32>
    %235 = vector.shape_cast %234 : vector<1x32x16xf32> to vector<32x16xf32>
    %cst_139 = arith.constant dense<0.000000e+00> : vector<16x16xf32>
    %236 = tpu.matmul %1, %235, %cst_139 {dimension_numbers = #tpu.dot_dimension_numbers<[1], [0], [0], [1], [0, 0, 1, 1], [], []>} : vector<16x32xf32>, vector<32x16xf32>, vector<16x16xf32> -> vector<16x16xf32>
    %c1_140 = arith.constant 1 : index
    %c0_141 = arith.constant 0 : index
    %c0_142 = arith.constant 0 : index
    %237 = vector.load %arg17[%c1_140, %c0_141, %c0_142] : memref<2x1x16xf32, #tpu.memory_space<vmem>>, vector<1x1x16xf32>
    %238 = vector.shape_cast %237 : vector<1x1x16xf32> to vector<1x16xf32>
    %239 = vector.broadcast %238 : vector<1x16xf32> to vector<16x16xf32>
    %240 = arith.addf %236, %239 : vector<16x16xf32>
    %c1_143 = arith.constant 1 : index
    %c0_144 = arith.constant 0 : index
    %c0_145 = arith.constant 0 : index
    %241 = vector.load %arg18[%c1_143, %c0_144, %c0_145] : memref<2x16x32xf32, #tpu.memory_space<vmem>>, vector<1x16x32xf32>
    %242 = vector.shape_cast %241 : vector<1x16x32xf32> to vector<16x32xf32>
    %243 = vector.extract_strided_slice %226 {offsets = [0, 0], sizes = [8, 16], strides = [1, 1]} : vector<16x16xf32> to vector<8x16xf32>
    %244 = vector.extract_strided_slice %233 {offsets = [0, 0], sizes = [8, 16], strides = [1, 1]} : vector<16x16xf32> to vector<8x16xf32>
    %245 = vector.extract_strided_slice %240 {offsets = [0, 0], sizes = [8, 16], strides = [1, 1]} : vector<16x16xf32> to vector<8x16xf32>
    %246 = tpu.transpose %244, [1, 0] : vector<8x16xf32> -> vector<16x8xf32>
    %cst_146 = arith.constant dense<0.000000e+00> : vector<8x8xf32>
    %247 = tpu.matmul %243, %246, %cst_146 {dimension_numbers = #tpu.dot_dimension_numbers<[1], [0], [0], [1], [0, 0, 1, 1], [], []>} : vector<8x16xf32>, vector<16x8xf32>, vector<8x8xf32> -> vector<8x8xf32>
    %cst_147 = arith.constant 2.500000e-01 : f32
    %248 = vector.broadcast %cst_147 : f32 to vector<8x8xf32>
    %249 = arith.mulf %247, %248 : vector<8x8xf32>
    %cst_148 = arith.constant dense<0xFF800000> : vector<8xf32>
    %250 = vector.multi_reduction <maximumf>, %249, %cst_148 [1] : vector<8x8xf32> to vector<8xf32>
    %251 = vector.shape_cast %250 : vector<8xf32> to vector<8x1xf32>
    %252 = vector.broadcast %251 : vector<8x1xf32> to vector<8x8xf32>
    %253 = arith.subf %249, %252 : vector<8x8xf32>
    %254 = math.exp %253 : vector<8x8xf32>
    %cst_149 = arith.constant dense<0.000000e+00> : vector<8xf32>
    %255 = vector.multi_reduction <add>, %254, %cst_149 [1] : vector<8x8xf32> to vector<8xf32>
    %256 = vector.shape_cast %255 : vector<8xf32> to vector<8x1xf32>
    %257 = vector.broadcast %256 : vector<8x1xf32> to vector<8x8xf32>
    %258 = arith.divf %254, %257 : vector<8x8xf32>
    %cst_150 = arith.constant dense<0.000000e+00> : vector<8x16xf32>
    %259 = tpu.matmul %258, %245, %cst_150 {dimension_numbers = #tpu.dot_dimension_numbers<[1], [0], [0], [1], [0, 0, 1, 1], [], []>} : vector<8x8xf32>, vector<8x16xf32>, vector<8x16xf32> -> vector<8x16xf32>
    %cst_151 = arith.constant dense<0.000000e+00> : vector<8x32xf32>
    %260 = tpu.matmul %259, %242, %cst_151 {dimension_numbers = #tpu.dot_dimension_numbers<[1], [0], [0], [1], [0, 0, 1, 1], [], []>} : vector<8x16xf32>, vector<16x32xf32>, vector<8x32xf32> -> vector<8x32xf32>
    %261 = arith.addf %201, %260 : vector<8x32xf32>
    %262 = vector.extract_strided_slice %226 {offsets = [8, 0], sizes = [8, 16], strides = [1, 1]} : vector<16x16xf32> to vector<8x16xf32>
    %263 = vector.extract_strided_slice %233 {offsets = [8, 0], sizes = [8, 16], strides = [1, 1]} : vector<16x16xf32> to vector<8x16xf32>
    %264 = vector.extract_strided_slice %240 {offsets = [8, 0], sizes = [8, 16], strides = [1, 1]} : vector<16x16xf32> to vector<8x16xf32>
    %265 = tpu.transpose %263, [1, 0] : vector<8x16xf32> -> vector<16x8xf32>
    %cst_152 = arith.constant dense<0.000000e+00> : vector<8x8xf32>
    %266 = tpu.matmul %262, %265, %cst_152 {dimension_numbers = #tpu.dot_dimension_numbers<[1], [0], [0], [1], [0, 0, 1, 1], [], []>} : vector<8x16xf32>, vector<16x8xf32>, vector<8x8xf32> -> vector<8x8xf32>
    %cst_153 = arith.constant 2.500000e-01 : f32
    %267 = vector.broadcast %cst_153 : f32 to vector<8x8xf32>
    %268 = arith.mulf %266, %267 : vector<8x8xf32>
    %cst_154 = arith.constant dense<0xFF800000> : vector<8xf32>
    %269 = vector.multi_reduction <maximumf>, %268, %cst_154 [1] : vector<8x8xf32> to vector<8xf32>
    %270 = vector.shape_cast %269 : vector<8xf32> to vector<8x1xf32>
    %271 = vector.broadcast %270 : vector<8x1xf32> to vector<8x8xf32>
    %272 = arith.subf %268, %271 : vector<8x8xf32>
    %273 = math.exp %272 : vector<8x8xf32>
    %cst_155 = arith.constant dense<0.000000e+00> : vector<8xf32>
    %274 = vector.multi_reduction <add>, %273, %cst_155 [1] : vector<8x8xf32> to vector<8xf32>
    %275 = vector.shape_cast %274 : vector<8xf32> to vector<8x1xf32>
    %276 = vector.broadcast %275 : vector<8x1xf32> to vector<8x8xf32>
    %277 = arith.divf %273, %276 : vector<8x8xf32>
    %cst_156 = arith.constant dense<0.000000e+00> : vector<8x16xf32>
    %278 = tpu.matmul %277, %264, %cst_156 {dimension_numbers = #tpu.dot_dimension_numbers<[1], [0], [0], [1], [0, 0, 1, 1], [], []>} : vector<8x8xf32>, vector<8x16xf32>, vector<8x16xf32> -> vector<8x16xf32>
    %cst_157 = arith.constant dense<0.000000e+00> : vector<8x32xf32>
    %279 = tpu.matmul %278, %242, %cst_157 {dimension_numbers = #tpu.dot_dimension_numbers<[1], [0], [0], [1], [0, 0, 1, 1], [], []>} : vector<8x16xf32>, vector<16x32xf32>, vector<8x32xf32> -> vector<8x32xf32>
    %280 = arith.addf %219, %279 : vector<8x32xf32>
    %281 = tpu.concatenate %261, %280 in 0 : vector<8x32xf32>, vector<8x32xf32> -> vector<16x32xf32>
    %c0_158 = arith.constant 0 : index
    %c0_159 = arith.constant 0 : index
    %282 = vector.load %arg19[%c0_158, %c0_159] : memref<1x32xf32, #tpu.memory_space<vmem>>, vector<1x32xf32>
    %283 = vector.broadcast %282 : vector<1x32xf32> to vector<16x32xf32>
    %284 = arith.addf %281, %283 : vector<16x32xf32>
    %285 = arith.addf %160, %284 : vector<16x32xf32>
    %c0_160 = arith.constant 0 : index
    %c0_161 = arith.constant 0 : index
    %286 = vector.load %arg20[%c0_160, %c0_161] : memref<1x32xf32, #tpu.memory_space<vmem>>, vector<1x32xf32>
    %c0_162 = arith.constant 0 : index
    %c0_163 = arith.constant 0 : index
    %287 = vector.load %arg21[%c0_162, %c0_163] : memref<1x32xf32, #tpu.memory_space<vmem>>, vector<1x32xf32>
    %cst_164 = arith.constant dense<0.000000e+00> : vector<16xf32>
    %288 = vector.multi_reduction <add>, %285, %cst_164 [1] : vector<16x32xf32> to vector<16xf32>
    %289 = vector.shape_cast %288 : vector<16xf32> to vector<16x1xf32>
    %cst_165 = arith.constant 3.200000e+01 : f32
    %290 = vector.broadcast %cst_165 : f32 to vector<16x1xf32>
    %291 = arith.divf %289, %290 : vector<16x1xf32>
    %292 = vector.broadcast %291 : vector<16x1xf32> to vector<16x32xf32>
    %293 = arith.subf %285, %292 : vector<16x32xf32>
    %294 = arith.mulf %293, %293 : vector<16x32xf32>
    %cst_166 = arith.constant dense<0.000000e+00> : vector<16xf32>
    %295 = vector.multi_reduction <add>, %294, %cst_166 [1] : vector<16x32xf32> to vector<16xf32>
    %296 = vector.shape_cast %295 : vector<16xf32> to vector<16x1xf32>
    %cst_167 = arith.constant 3.200000e+01 : f32
    %297 = vector.broadcast %cst_167 : f32 to vector<16x1xf32>
    %298 = arith.divf %296, %297 : vector<16x1xf32>
    %299 = vector.broadcast %291 : vector<16x1xf32> to vector<16x32xf32>
    %300 = arith.subf %285, %299 : vector<16x32xf32>
    %cst_168 = arith.constant 9.99999974E-6 : f32
    %301 = vector.broadcast %cst_168 : f32 to vector<16x1xf32>
    %302 = arith.addf %298, %301 : vector<16x1xf32>
    %303 = math.rsqrt %302 : vector<16x1xf32>
    %304 = vector.broadcast %303 : vector<16x1xf32> to vector<16x32xf32>
    %305 = arith.mulf %300, %304 : vector<16x32xf32>
    %306 = vector.broadcast %286 : vector<1x32xf32> to vector<16x32xf32>
    %307 = arith.mulf %305, %306 : vector<16x32xf32>
    %308 = vector.broadcast %287 : vector<1x32xf32> to vector<16x32xf32>
    %309 = arith.addf %307, %308 : vector<16x32xf32>
    %c0_169 = arith.constant 0 : index
    %c0_170 = arith.constant 0 : index
    %310 = vector.load %arg22[%c0_169, %c0_170] : memref<32x64xf32, #tpu.memory_space<vmem>>, vector<32x64xf32>
    %cst_171 = arith.constant dense<0.000000e+00> : vector<16x64xf32>
    %311 = tpu.matmul %309, %310, %cst_171 {dimension_numbers = #tpu.dot_dimension_numbers<[1], [0], [0], [1], [0, 0, 1, 1], [], []>} : vector<16x32xf32>, vector<32x64xf32>, vector<16x64xf32> -> vector<16x64xf32>
    %c0_172 = arith.constant 0 : index
    %c0_173 = arith.constant 0 : index
    %312 = vector.load %arg23[%c0_172, %c0_173] : memref<1x64xf32, #tpu.memory_space<vmem>>, vector<1x64xf32>
    %313 = vector.broadcast %312 : vector<1x64xf32> to vector<16x64xf32>
    %314 = arith.addf %311, %313 : vector<16x64xf32>
    %cst_174 = arith.constant 0.000000e+00 : f32
    %315 = vector.broadcast %cst_174 : f32 to vector<16x64xf32>
    %316 = arith.maximumf %314, %315 : vector<16x64xf32>
    %c0_175 = arith.constant 0 : index
    %c0_176 = arith.constant 0 : index
    %317 = vector.load %arg24[%c0_175, %c0_176] : memref<64x32xf32, #tpu.memory_space<vmem>>, vector<64x32xf32>
    %cst_177 = arith.constant dense<0.000000e+00> : vector<16x32xf32>
    %318 = tpu.matmul %316, %317, %cst_177 {dimension_numbers = #tpu.dot_dimension_numbers<[1], [0], [0], [1], [0, 0, 1, 1], [], []>} : vector<16x64xf32>, vector<64x32xf32>, vector<16x32xf32> -> vector<16x32xf32>
    %c0_178 = arith.constant 0 : index
    %c0_179 = arith.constant 0 : index
    %319 = vector.load %arg25[%c0_178, %c0_179] : memref<1x32xf32, #tpu.memory_space<vmem>>, vector<1x32xf32>
    %320 = vector.broadcast %319 : vector<1x32xf32> to vector<16x32xf32>
    %321 = arith.addf %318, %320 : vector<16x32xf32>
    %322 = arith.addf %309, %321 : vector<16x32xf32>
    %c0_180 = arith.constant 0 : index
    %c0_181 = arith.constant 0 : index
    %323 = vector.load %arg26[%c0_180, %c0_181] : memref<1x32xf32, #tpu.memory_space<vmem>>, vector<1x32xf32>
    %c0_182 = arith.constant 0 : index
    %c0_183 = arith.constant 0 : index
    %324 = vector.load %arg27[%c0_182, %c0_183] : memref<1x32xf32, #tpu.memory_space<vmem>>, vector<1x32xf32>
    %cst_184 = arith.constant dense<0.000000e+00> : vector<16xf32>
    %325 = vector.multi_reduction <add>, %322, %cst_184 [1] : vector<16x32xf32> to vector<16xf32>
    %326 = vector.shape_cast %325 : vector<16xf32> to vector<16x1xf32>
    %cst_185 = arith.constant 3.200000e+01 : f32
    %327 = vector.broadcast %cst_185 : f32 to vector<16x1xf32>
    %328 = arith.divf %326, %327 : vector<16x1xf32>
    %329 = vector.broadcast %328 : vector<16x1xf32> to vector<16x32xf32>
    %330 = arith.subf %322, %329 : vector<16x32xf32>
    %331 = arith.mulf %330, %330 : vector<16x32xf32>
    %cst_186 = arith.constant dense<0.000000e+00> : vector<16xf32>
    %332 = vector.multi_reduction <add>, %331, %cst_186 [1] : vector<16x32xf32> to vector<16xf32>
    %333 = vector.shape_cast %332 : vector<16xf32> to vector<16x1xf32>
    %cst_187 = arith.constant 3.200000e+01 : f32
    %334 = vector.broadcast %cst_187 : f32 to vector<16x1xf32>
    %335 = arith.divf %333, %334 : vector<16x1xf32>
    %336 = vector.broadcast %328 : vector<16x1xf32> to vector<16x32xf32>
    %337 = arith.subf %322, %336 : vector<16x32xf32>
    %cst_188 = arith.constant 9.99999974E-6 : f32
    %338 = vector.broadcast %cst_188 : f32 to vector<16x1xf32>
    %339 = arith.addf %335, %338 : vector<16x1xf32>
    %340 = math.rsqrt %339 : vector<16x1xf32>
    %341 = vector.broadcast %340 : vector<16x1xf32> to vector<16x32xf32>
    %342 = arith.mulf %337, %341 : vector<16x32xf32>
    %343 = vector.broadcast %323 : vector<1x32xf32> to vector<16x32xf32>
    %344 = arith.mulf %342, %343 : vector<16x32xf32>
    %345 = vector.broadcast %324 : vector<1x32xf32> to vector<16x32xf32>
    %346 = arith.addf %344, %345 : vector<16x32xf32>
    %c0_189 = arith.constant 0 : index
    %c0_190 = arith.constant 0 : index
    %347 = vector.load %arg28[%c0_189, %c0_190] : memref<16x32xf32, #tpu.memory_space<vmem>>, vector<16x32xf32>
    tpu.vector_store %arg28[%c0_189, %c0_190], %346 {strides = array<i32>} : memref<16x32xf32, #tpu.memory_space<vmem>>, vector<16x32xf32>,
    return
  }
}

module attributes {stable_mosaic.version = 11 : i64} {
  func.func @_encoder_layer_kernel(%arg0: memref<16x32xf32, #tpu.memory_space<vmem>>, %arg1: memref<2x32x16xf32, #tpu.memory_space<vmem>>, %arg2: memref<2x1x16xf32, #tpu.memory_space<vmem>>, %arg3: memref<2x32x16xf32, #tpu.memory_space<vmem>>, %arg4: memref<2x1x16xf32, #tpu.memory_space<vmem>>, %arg5: memref<2x32x16xf32, #tpu.memory_space<vmem>>, %arg6: memref<2x1x16xf32, #tpu.memory_space<vmem>>, %arg7: memref<2x16x32xf32, #tpu.memory_space<vmem>>, %arg8: memref<1x32xf32, #tpu.memory_space<vmem>>, %arg9: memref<1x32xf32, #tpu.memory_space<vmem>>, %arg10: memref<1x32xf32, #tpu.memory_space<vmem>>, %arg11: memref<32x64xf32, #tpu.memory_space<vmem>>, %arg12: memref<1x64xf32, #tpu.memory_space<vmem>>, %arg13: memref<64x32xf32, #tpu.memory_space<vmem>>, %arg14: memref<1x32xf32, #tpu.memory_space<vmem>>, %arg15: memref<1x32xf32, #tpu.memory_space<vmem>>, %arg16: memref<1x32xf32, #tpu.memory_space<vmem>>, %arg17: memref<16x32xf32, #tpu.memory_space<vmem>>) attributes {dimension_semantics = [], scalar_prefetch = 0 : i64, scratch_operands = 0 : i64, tpu.core_type = #tpu.core_type<tc>} {
    %c0 = arith.constant 0 : index
    %c0_0 = arith.constant 0 : index
    %0 = vector.load %arg0[%c0, %c0_0] : memref<16x32xf32, #tpu.memory_space<vmem>>, vector<16x32xf32>
    %1 = tpu.iota {dimensions = array<i32: 0>} : vector<8x8xi32>
    %2 = tpu.iota {dimensions = array<i32: 1>} : vector<8x8xi32>
    %3 = arith.cmpi sge, %1, %2 : vector<8x8xi32>
    %cst = arith.constant 0.000000e+00 : f32
    %cst_1 = arith.constant -1.000000e+30 : f32
    %4 = vector.broadcast %cst : f32 to vector<8x8xf32>
    %5 = vector.broadcast %cst_1 : f32 to vector<8x8xf32>
    %6 = arith.select %3, %4, %5 : vector<8x8xi1>, vector<8x8xf32>
    %c0_2 = arith.constant 0 : index
    %c0_3 = arith.constant 0 : index
    %c0_4 = arith.constant 0 : index
    %7 = vector.load %arg1[%c0_2, %c0_3, %c0_4] : memref<2x32x16xf32, #tpu.memory_space<vmem>>, vector<1x32x16xf32>
    %8 = vector.shape_cast %7 : vector<1x32x16xf32> to vector<32x16xf32>
    %cst_5 = arith.constant dense<0.000000e+00> : vector<16x16xf32>
    %9 = tpu.matmul %0, %8, %cst_5 {dimension_numbers = #tpu.dot_dimension_numbers<[1], [0], [0], [1], [0, 0, 1, 1], [], []>} : vector<16x32xf32>, vector<32x16xf32>, vector<16x16xf32> -> vector<16x16xf32>
    %c0_6 = arith.constant 0 : index
    %c0_7 = arith.constant 0 : index
    %c0_8 = arith.constant 0 : index
    %10 = vector.load %arg2[%c0_6, %c0_7, %c0_8] : memref<2x1x16xf32, #tpu.memory_space<vmem>>, vector<1x1x16xf32>
    %11 = vector.shape_cast %10 : vector<1x1x16xf32> to vector<1x16xf32>
    %12 = vector.broadcast %11 : vector<1x16xf32> to vector<16x16xf32>
    %13 = arith.addf %9, %12 : vector<16x16xf32>
    %c0_9 = arith.constant 0 : index
    %c0_10 = arith.constant 0 : index
    %c0_11 = arith.constant 0 : index
    %14 = vector.load %arg3[%c0_9, %c0_10, %c0_11] : memref<2x32x16xf32, #tpu.memory_space<vmem>>, vector<1x32x16xf32>
    %15 = vector.shape_cast %14 : vector<1x32x16xf32> to vector<32x16xf32>
    %cst_12 = arith.constant dense<0.000000e+00> : vector<16x16xf32>
    %16 = tpu.matmul %0, %15, %cst_12 {dimension_numbers = #tpu.dot_dimension_numbers<[1], [0], [0], [1], [0, 0, 1, 1], [], []>} : vector<16x32xf32>, vector<32x16xf32>, vector<16x16xf32> -> vector<16x16xf32>
    %c0_13 = arith.constant 0 : index
    %c0_14 = arith.constant 0 : index
    %c0_15 = arith.constant 0 : index
    %17 = vector.load %arg4[%c0_13, %c0_14, %c0_15] : memref<2x1x16xf32, #tpu.memory_space<vmem>>, vector<1x1x16xf32>
    %18 = vector.shape_cast %17 : vector<1x1x16xf32> to vector<1x16xf32>
    %19 = vector.broadcast %18 : vector<1x16xf32> to vector<16x16xf32>
    %20 = arith.addf %16, %19 : vector<16x16xf32>
    %c0_16 = arith.constant 0 : index
    %c0_17 = arith.constant 0 : index
    %c0_18 = arith.constant 0 : index
    %21 = vector.load %arg5[%c0_16, %c0_17, %c0_18] : memref<2x32x16xf32, #tpu.memory_space<vmem>>, vector<1x32x16xf32>
    %22 = vector.shape_cast %21 : vector<1x32x16xf32> to vector<32x16xf32>
    %cst_19 = arith.constant dense<0.000000e+00> : vector<16x16xf32>
    %23 = tpu.matmul %0, %22, %cst_19 {dimension_numbers = #tpu.dot_dimension_numbers<[1], [0], [0], [1], [0, 0, 1, 1], [], []>} : vector<16x32xf32>, vector<32x16xf32>, vector<16x16xf32> -> vector<16x16xf32>
    %c0_20 = arith.constant 0 : index
    %c0_21 = arith.constant 0 : index
    %c0_22 = arith.constant 0 : index
    %24 = vector.load %arg6[%c0_20, %c0_21, %c0_22] : memref<2x1x16xf32, #tpu.memory_space<vmem>>, vector<1x1x16xf32>
    %25 = vector.shape_cast %24 : vector<1x1x16xf32> to vector<1x16xf32>
    %26 = vector.broadcast %25 : vector<1x16xf32> to vector<16x16xf32>
    %27 = arith.addf %23, %26 : vector<16x16xf32>
    %c0_23 = arith.constant 0 : index
    %c0_24 = arith.constant 0 : index
    %c0_25 = arith.constant 0 : index
    %28 = vector.load %arg7[%c0_23, %c0_24, %c0_25] : memref<2x16x32xf32, #tpu.memory_space<vmem>>, vector<1x16x32xf32>
    %29 = vector.shape_cast %28 : vector<1x16x32xf32> to vector<16x32xf32>
    %30 = vector.extract_strided_slice %13 {offsets = [0, 0], sizes = [8, 16], strides = [1, 1]} : vector<16x16xf32> to vector<8x16xf32>
    %31 = vector.extract_strided_slice %20 {offsets = [0, 0], sizes = [8, 16], strides = [1, 1]} : vector<16x16xf32> to vector<8x16xf32>
    %32 = vector.extract_strided_slice %27 {offsets = [0, 0], sizes = [8, 16], strides = [1, 1]} : vector<16x16xf32> to vector<8x16xf32>
    %33 = tpu.transpose %31, [1, 0] : vector<8x16xf32> -> vector<16x8xf32>
    %cst_26 = arith.constant dense<0.000000e+00> : vector<8x8xf32>
    %34 = tpu.matmul %30, %33, %cst_26 {dimension_numbers = #tpu.dot_dimension_numbers<[1], [0], [0], [1], [0, 0, 1, 1], [], []>} : vector<8x16xf32>, vector<16x8xf32>, vector<8x8xf32> -> vector<8x8xf32>
    %cst_27 = arith.constant 2.500000e-01 : f32
    %35 = vector.broadcast %cst_27 : f32 to vector<8x8xf32>
    %36 = arith.mulf %34, %35 : vector<8x8xf32>
    %37 = arith.addf %36, %6 : vector<8x8xf32>
    %cst_28 = arith.constant dense<0xFF800000> : vector<8xf32>
    %38 = vector.multi_reduction <maximumf>, %37, %cst_28 [1] : vector<8x8xf32> to vector<8xf32>
    %39 = vector.shape_cast %38 : vector<8xf32> to vector<8x1xf32>
    %40 = vector.broadcast %39 : vector<8x1xf32> to vector<8x8xf32>
    %41 = arith.subf %37, %40 : vector<8x8xf32>
    %42 = math.exp %41 : vector<8x8xf32>
    %cst_29 = arith.constant dense<0.000000e+00> : vector<8xf32>
    %43 = vector.multi_reduction <add>, %42, %cst_29 [1] : vector<8x8xf32> to vector<8xf32>
    %44 = vector.shape_cast %43 : vector<8xf32> to vector<8x1xf32>
    %45 = vector.broadcast %44 : vector<8x1xf32> to vector<8x8xf32>
    %46 = arith.divf %42, %45 : vector<8x8xf32>
    %cst_30 = arith.constant dense<0.000000e+00> : vector<8x16xf32>
    %47 = tpu.matmul %46, %32, %cst_30 {dimension_numbers = #tpu.dot_dimension_numbers<[1], [0], [0], [1], [0, 0, 1, 1], [], []>} : vector<8x8xf32>, vector<8x16xf32>, vector<8x16xf32> -> vector<8x16xf32>
    %cst_31 = arith.constant dense<0.000000e+00> : vector<8x32xf32>
    %48 = tpu.matmul %47, %29, %cst_31 {dimension_numbers = #tpu.dot_dimension_numbers<[1], [0], [0], [1], [0, 0, 1, 1], [], []>} : vector<8x16xf32>, vector<16x32xf32>, vector<8x32xf32> -> vector<8x32xf32>
    %49 = vector.extract_strided_slice %13 {offsets = [8, 0], sizes = [8, 16], strides = [1, 1]} : vector<16x16xf32> to vector<8x16xf32>
    %50 = vector.extract_strided_slice %20 {offsets = [8, 0], sizes = [8, 16], strides = [1, 1]} : vector<16x16xf32> to vector<8x16xf32>
    %51 = vector.extract_strided_slice %27 {offsets = [8, 0], sizes = [8, 16], strides = [1, 1]} : vector<16x16xf32> to vector<8x16xf32>
    %52 = tpu.transpose %50, [1, 0] : vector<8x16xf32> -> vector<16x8xf32>
    %cst_32 = arith.constant dense<0.000000e+00> : vector<8x8xf32>
    %53 = tpu.matmul %49, %52, %cst_32 {dimension_numbers = #tpu.dot_dimension_numbers<[1], [0], [0], [1], [0, 0, 1, 1], [], []>} : vector<8x16xf32>, vector<16x8xf32>, vector<8x8xf32> -> vector<8x8xf32>
    %cst_33 = arith.constant 2.500000e-01 : f32
    %54 = vector.broadcast %cst_33 : f32 to vector<8x8xf32>
    %55 = arith.mulf %53, %54 : vector<8x8xf32>
    %56 = arith.addf %55, %6 : vector<8x8xf32>
    %cst_34 = arith.constant dense<0xFF800000> : vector<8xf32>
    %57 = vector.multi_reduction <maximumf>, %56, %cst_34 [1] : vector<8x8xf32> to vector<8xf32>
    %58 = vector.shape_cast %57 : vector<8xf32> to vector<8x1xf32>
    %59 = vector.broadcast %58 : vector<8x1xf32> to vector<8x8xf32>
    %60 = arith.subf %56, %59 : vector<8x8xf32>
    %61 = math.exp %60 : vector<8x8xf32>
    %cst_35 = arith.constant dense<0.000000e+00> : vector<8xf32>
    %62 = vector.multi_reduction <add>, %61, %cst_35 [1] : vector<8x8xf32> to vector<8xf32>
    %63 = vector.shape_cast %62 : vector<8xf32> to vector<8x1xf32>
    %64 = vector.broadcast %63 : vector<8x1xf32> to vector<8x8xf32>
    %65 = arith.divf %61, %64 : vector<8x8xf32>
    %cst_36 = arith.constant dense<0.000000e+00> : vector<8x16xf32>
    %66 = tpu.matmul %65, %51, %cst_36 {dimension_numbers = #tpu.dot_dimension_numbers<[1], [0], [0], [1], [0, 0, 1, 1], [], []>} : vector<8x8xf32>, vector<8x16xf32>, vector<8x16xf32> -> vector<8x16xf32>
    %cst_37 = arith.constant dense<0.000000e+00> : vector<8x32xf32>
    %67 = tpu.matmul %66, %29, %cst_37 {dimension_numbers = #tpu.dot_dimension_numbers<[1], [0], [0], [1], [0, 0, 1, 1], [], []>} : vector<8x16xf32>, vector<16x32xf32>, vector<8x32xf32> -> vector<8x32xf32>
    %c1 = arith.constant 1 : index
    %c0_38 = arith.constant 0 : index
    %c0_39 = arith.constant 0 : index
    %68 = vector.load %arg1[%c1, %c0_38, %c0_39] : memref<2x32x16xf32, #tpu.memory_space<vmem>>, vector<1x32x16xf32>
    %69 = vector.shape_cast %68 : vector<1x32x16xf32> to vector<32x16xf32>
    %cst_40 = arith.constant dense<0.000000e+00> : vector<16x16xf32>
    %70 = tpu.matmul %0, %69, %cst_40 {dimension_numbers = #tpu.dot_dimension_numbers<[1], [0], [0], [1], [0, 0, 1, 1], [], []>} : vector<16x32xf32>, vector<32x16xf32>, vector<16x16xf32> -> vector<16x16xf32>
    %c1_41 = arith.constant 1 : index
    %c0_42 = arith.constant 0 : index
    %c0_43 = arith.constant 0 : index
    %71 = vector.load %arg2[%c1_41, %c0_42, %c0_43] : memref<2x1x16xf32, #tpu.memory_space<vmem>>, vector<1x1x16xf32>
    %72 = vector.shape_cast %71 : vector<1x1x16xf32> to vector<1x16xf32>
    %73 = vector.broadcast %72 : vector<1x16xf32> to vector<16x16xf32>
    %74 = arith.addf %70, %73 : vector<16x16xf32>
    %c1_44 = arith.constant 1 : index
    %c0_45 = arith.constant 0 : index
    %c0_46 = arith.constant 0 : index
    %75 = vector.load %arg3[%c1_44, %c0_45, %c0_46] : memref<2x32x16xf32, #tpu.memory_space<vmem>>, vector<1x32x16xf32>
    %76 = vector.shape_cast %75 : vector<1x32x16xf32> to vector<32x16xf32>
    %cst_47 = arith.constant dense<0.000000e+00> : vector<16x16xf32>
    %77 = tpu.matmul %0, %76, %cst_47 {dimension_numbers = #tpu.dot_dimension_numbers<[1], [0], [0], [1], [0, 0, 1, 1], [], []>} : vector<16x32xf32>, vector<32x16xf32>, vector<16x16xf32> -> vector<16x16xf32>
    %c1_48 = arith.constant 1 : index
    %c0_49 = arith.constant 0 : index
    %c0_50 = arith.constant 0 : index
    %78 = vector.load %arg4[%c1_48, %c0_49, %c0_50] : memref<2x1x16xf32, #tpu.memory_space<vmem>>, vector<1x1x16xf32>
    %79 = vector.shape_cast %78 : vector<1x1x16xf32> to vector<1x16xf32>
    %80 = vector.broadcast %79 : vector<1x16xf32> to vector<16x16xf32>
    %81 = arith.addf %77, %80 : vector<16x16xf32>
    %c1_51 = arith.constant 1 : index
    %c0_52 = arith.constant 0 : index
    %c0_53 = arith.constant 0 : index
    %82 = vector.load %arg5[%c1_51, %c0_52, %c0_53] : memref<2x32x16xf32, #tpu.memory_space<vmem>>, vector<1x32x16xf32>
    %83 = vector.shape_cast %82 : vector<1x32x16xf32> to vector<32x16xf32>
    %cst_54 = arith.constant dense<0.000000e+00> : vector<16x16xf32>
    %84 = tpu.matmul %0, %83, %cst_54 {dimension_numbers = #tpu.dot_dimension_numbers<[1], [0], [0], [1], [0, 0, 1, 1], [], []>} : vector<16x32xf32>, vector<32x16xf32>, vector<16x16xf32> -> vector<16x16xf32>
    %c1_55 = arith.constant 1 : index
    %c0_56 = arith.constant 0 : index
    %c0_57 = arith.constant 0 : index
    %85 = vector.load %arg6[%c1_55, %c0_56, %c0_57] : memref<2x1x16xf32, #tpu.memory_space<vmem>>, vector<1x1x16xf32>
    %86 = vector.shape_cast %85 : vector<1x1x16xf32> to vector<1x16xf32>
    %87 = vector.broadcast %86 : vector<1x16xf32> to vector<16x16xf32>
    %88 = arith.addf %84, %87 : vector<16x16xf32>
    %c1_58 = arith.constant 1 : index
    %c0_59 = arith.constant 0 : index
    %c0_60 = arith.constant 0 : index
    %89 = vector.load %arg7[%c1_58, %c0_59, %c0_60] : memref<2x16x32xf32, #tpu.memory_space<vmem>>, vector<1x16x32xf32>
    %90 = vector.shape_cast %89 : vector<1x16x32xf32> to vector<16x32xf32>
    %91 = vector.extract_strided_slice %74 {offsets = [0, 0], sizes = [8, 16], strides = [1, 1]} : vector<16x16xf32> to vector<8x16xf32>
    %92 = vector.extract_strided_slice %81 {offsets = [0, 0], sizes = [8, 16], strides = [1, 1]} : vector<16x16xf32> to vector<8x16xf32>
    %93 = vector.extract_strided_slice %88 {offsets = [0, 0], sizes = [8, 16], strides = [1, 1]} : vector<16x16xf32> to vector<8x16xf32>
    %94 = tpu.transpose %92, [1, 0] : vector<8x16xf32> -> vector<16x8xf32>
    %cst_61 = arith.constant dense<0.000000e+00> : vector<8x8xf32>
    %95 = tpu.matmul %91, %94, %cst_61 {dimension_numbers = #tpu.dot_dimension_numbers<[1], [0], [0], [1], [0, 0, 1, 1], [], []>} : vector<8x16xf32>, vector<16x8xf32>, vector<8x8xf32> -> vector<8x8xf32>
    %cst_62 = arith.constant 2.500000e-01 : f32
    %96 = vector.broadcast %cst_62 : f32 to vector<8x8xf32>
    %97 = arith.mulf %95, %96 : vector<8x8xf32>
    %98 = arith.addf %97, %6 : vector<8x8xf32>
    %cst_63 = arith.constant dense<0xFF800000> : vector<8xf32>
    %99 = vector.multi_reduction <maximumf>, %98, %cst_63 [1] : vector<8x8xf32> to vector<8xf32>
    %100 = vector.shape_cast %99 : vector<8xf32> to vector<8x1xf32>
    %101 = vector.broadcast %100 : vector<8x1xf32> to vector<8x8xf32>
    %102 = arith.subf %98, %101 : vector<8x8xf32>
    %103 = math.exp %102 : vector<8x8xf32>
    %cst_64 = arith.constant dense<0.000000e+00> : vector<8xf32>
    %104 = vector.multi_reduction <add>, %103, %cst_64 [1] : vector<8x8xf32> to vector<8xf32>
    %105 = vector.shape_cast %104 : vector<8xf32> to vector<8x1xf32>
    %106 = vector.broadcast %105 : vector<8x1xf32> to vector<8x8xf32>
    %107 = arith.divf %103, %106 : vector<8x8xf32>
    %cst_65 = arith.constant dense<0.000000e+00> : vector<8x16xf32>
    %108 = tpu.matmul %107, %93, %cst_65 {dimension_numbers = #tpu.dot_dimension_numbers<[1], [0], [0], [1], [0, 0, 1, 1], [], []>} : vector<8x8xf32>, vector<8x16xf32>, vector<8x16xf32> -> vector<8x16xf32>
    %cst_66 = arith.constant dense<0.000000e+00> : vector<8x32xf32>
    %109 = tpu.matmul %108, %90, %cst_66 {dimension_numbers = #tpu.dot_dimension_numbers<[1], [0], [0], [1], [0, 0, 1, 1], [], []>} : vector<8x16xf32>, vector<16x32xf32>, vector<8x32xf32> -> vector<8x32xf32>
    %110 = arith.addf %48, %109 : vector<8x32xf32>
    %111 = vector.extract_strided_slice %74 {offsets = [8, 0], sizes = [8, 16], strides = [1, 1]} : vector<16x16xf32> to vector<8x16xf32>
    %112 = vector.extract_strided_slice %81 {offsets = [8, 0], sizes = [8, 16], strides = [1, 1]} : vector<16x16xf32> to vector<8x16xf32>
    %113 = vector.extract_strided_slice %88 {offsets = [8, 0], sizes = [8, 16], strides = [1, 1]} : vector<16x16xf32> to vector<8x16xf32>
    %114 = tpu.transpose %112, [1, 0] : vector<8x16xf32> -> vector<16x8xf32>
    %cst_67 = arith.constant dense<0.000000e+00> : vector<8x8xf32>
    %115 = tpu.matmul %111, %114, %cst_67 {dimension_numbers = #tpu.dot_dimension_numbers<[1], [0], [0], [1], [0, 0, 1, 1], [], []>} : vector<8x16xf32>, vector<16x8xf32>, vector<8x8xf32> -> vector<8x8xf32>
    %cst_68 = arith.constant 2.500000e-01 : f32
    %116 = vector.broadcast %cst_68 : f32 to vector<8x8xf32>
    %117 = arith.mulf %115, %116 : vector<8x8xf32>
    %118 = arith.addf %117, %6 : vector<8x8xf32>
    %cst_69 = arith.constant dense<0xFF800000> : vector<8xf32>
    %119 = vector.multi_reduction <maximumf>, %118, %cst_69 [1] : vector<8x8xf32> to vector<8xf32>
    %120 = vector.shape_cast %119 : vector<8xf32> to vector<8x1xf32>
    %121 = vector.broadcast %120 : vector<8x1xf32> to vector<8x8xf32>
    %122 = arith.subf %118, %121 : vector<8x8xf32>
    %123 = math.exp %122 : vector<8x8xf32>
    %cst_70 = arith.constant dense<0.000000e+00> : vector<8xf32>
    %124 = vector.multi_reduction <add>, %123, %cst_70 [1] : vector<8x8xf32> to vector<8xf32>
    %125 = vector.shape_cast %124 : vector<8xf32> to vector<8x1xf32>
    %126 = vector.broadcast %125 : vector<8x1xf32> to vector<8x8xf32>
    %127 = arith.divf %123, %126 : vector<8x8xf32>
    %cst_71 = arith.constant dense<0.000000e+00> : vector<8x16xf32>
    %128 = tpu.matmul %127, %113, %cst_71 {dimension_numbers = #tpu.dot_dimension_numbers<[1], [0], [0], [1], [0, 0, 1, 1], [], []>} : vector<8x8xf32>, vector<8x16xf32>, vector<8x16xf32> -> vector<8x16xf32>
    %cst_72 = arith.constant dense<0.000000e+00> : vector<8x32xf32>
    %129 = tpu.matmul %128, %90, %cst_72 {dimension_numbers = #tpu.dot_dimension_numbers<[1], [0], [0], [1], [0, 0, 1, 1], [], []>} : vector<8x16xf32>, vector<16x32xf32>, vector<8x32xf32> -> vector<8x32xf32>
    %130 = arith.addf %67, %129 : vector<8x32xf32>
    %131 = tpu.concatenate %110, %130 in 0 : vector<8x32xf32>, vector<8x32xf32> -> vector<16x32xf32>
    %c0_73 = arith.constant 0 : index
    %c0_74 = arith.constant 0 : index
    %132 = vector.load %arg8[%c0_73, %c0_74] : memref<1x32xf32, #tpu.memory_space<vmem>>, vector<1x32xf32>
    %133 = vector.broadcast %132 : vector<1x32xf32> to vector<16x32xf32>
    %134 = arith.addf %131, %133 : vector<16x32xf32>
    %135 = arith.addf %0, %134 : vector<16x32xf32>
    %c0_75 = arith.constant 0 : index
    %c0_76 = arith.constant 0 : index
    %136 = vector.load %arg9[%c0_75, %c0_76] : memref<1x32xf32, #tpu.memory_space<vmem>>, vector<1x32xf32>
    %c0_77 = arith.constant 0 : index
    %c0_78 = arith.constant 0 : index
    %137 = vector.load %arg10[%c0_77, %c0_78] : memref<1x32xf32, #tpu.memory_space<vmem>>, vector<1x32xf32>
    %cst_79 = arith.constant dense<0.000000e+00> : vector<16xf32>
    %138 = vector.multi_reduction <add>, %135, %cst_79 [1] : vector<16x32xf32> to vector<16xf32>
    %139 = vector.shape_cast %138 : vector<16xf32> to vector<16x1xf32>
    %cst_80 = arith.constant 3.200000e+01 : f32
    %140 = vector.broadcast %cst_80 : f32 to vector<16x1xf32>
    %141 = arith.divf %139, %140 : vector<16x1xf32>
    %142 = vector.broadcast %141 : vector<16x1xf32> to vector<16x32xf32>
    %143 = arith.subf %135, %142 : vector<16x32xf32>
    %144 = arith.mulf %143, %143 : vector<16x32xf32>
    %cst_81 = arith.constant dense<0.000000e+00> : vector<16xf32>
    %145 = vector.multi_reduction <add>, %144, %cst_81 [1] : vector<16x32xf32> to vector<16xf32>
    %146 = vector.shape_cast %145 : vector<16xf32> to vector<16x1xf32>
    %cst_82 = arith.constant 3.200000e+01 : f32
    %147 = vector.broadcast %cst_82 : f32 to vector<16x1xf32>
    %148 = arith.divf %146, %147 : vector<16x1xf32>
    %149 = vector.broadcast %141 : vector<16x1xf32> to vector<16x32xf32>
    %150 = arith.subf %135, %149 : vector<16x32xf32>
    %cst_83 = arith.constant 9.99999974E-6 : f32
    %151 = vector.broadcast %cst_83 : f32 to vector<16x1xf32>
    %152 = arith.addf %148, %151 : vector<16x1xf32>
    %153 = math.rsqrt %152 : vector<16x1xf32>
    %154 = vector.broadcast %153 : vector<16x1xf32> to vector<16x32xf32>
    %155 = arith.mulf %150, %154 : vector<16x32xf32>
    %156 = vector.broadcast %136 : vector<1x32xf32> to vector<16x32xf32>
    %157 = arith.mulf %155, %156 : vector<16x32xf32>
    %158 = vector.broadcast %137 : vector<1x32xf32> to vector<16x32xf32>
    %159 = arith.addf %157, %158 : vector<16x32xf32>
    %c0_84 = arith.constant 0 : index
    %c0_85 = arith.constant 0 : index
    %160 = vector.load %arg11[%c0_84, %c0_85] : memref<32x64xf32, #tpu.memory_space<vmem>>, vector<32x64xf32>
    %cst_86 = arith.constant dense<0.000000e+00> : vector<16x64xf32>
    %161 = tpu.matmul %159, %160, %cst_86 {dimension_numbers = #tpu.dot_dimension_numbers<[1], [0], [0], [1], [0, 0, 1, 1], [], []>} : vector<16x32xf32>, vector<32x64xf32>, vector<16x64xf32> -> vector<16x64xf32>
    %c0_87 = arith.constant 0 : index
    %c0_88 = arith.constant 0 : index
    %162 = vector.load %arg12[%c0_87, %c0_88] : memref<1x64xf32, #tpu.memory_space<vmem>>, vector<1x64xf32>
    %163 = vector.broadcast %162 : vector<1x64xf32> to vector<16x64xf32>
    %164 = arith.addf %161, %163 : vector<16x64xf32>
    %cst_89 = arith.constant 0.000000e+00 : f32
    %165 = vector.broadcast %cst_89 : f32 to vector<16x64xf32>
    %166 = arith.maximumf %164, %165 : vector<16x64xf32>
    %c0_90 = arith.constant 0 : index
    %c0_91 = arith.constant 0 : index
    %167 = vector.load %arg13[%c0_90, %c0_91] : memref<64x32xf32, #tpu.memory_space<vmem>>, vector<64x32xf32>
    %cst_92 = arith.constant dense<0.000000e+00> : vector<16x32xf32>
    %168 = tpu.matmul %166, %167, %cst_92 {dimension_numbers = #tpu.dot_dimension_numbers<[1], [0], [0], [1], [0, 0, 1, 1], [], []>} : vector<16x64xf32>, vector<64x32xf32>, vector<16x32xf32> -> vector<16x32xf32>
    %c0_93 = arith.constant 0 : index
    %c0_94 = arith.constant 0 : index
    %169 = vector.load %arg14[%c0_93, %c0_94] : memref<1x32xf32, #tpu.memory_space<vmem>>, vector<1x32xf32>
    %170 = vector.broadcast %169 : vector<1x32xf32> to vector<16x32xf32>
    %171 = arith.addf %168, %170 : vector<16x32xf32>
    %172 = arith.addf %159, %171 : vector<16x32xf32>
    %c0_95 = arith.constant 0 : index
    %c0_96 = arith.constant 0 : index
    %173 = vector.load %arg15[%c0_95, %c0_96] : memref<1x32xf32, #tpu.memory_space<vmem>>, vector<1x32xf32>
    %c0_97 = arith.constant 0 : index
    %c0_98 = arith.constant 0 : index
    %174 = vector.load %arg16[%c0_97, %c0_98] : memref<1x32xf32, #tpu.memory_space<vmem>>, vector<1x32xf32>
    %cst_99 = arith.constant dense<0.000000e+00> : vector<16xf32>
    %175 = vector.multi_reduction <add>, %172, %cst_99 [1] : vector<16x32xf32> to vector<16xf32>
    %176 = vector.shape_cast %175 : vector<16xf32> to vector<16x1xf32>
    %cst_100 = arith.constant 3.200000e+01 : f32
    %177 = vector.broadcast %cst_100 : f32 to vector<16x1xf32>
    %178 = arith.divf %176, %177 : vector<16x1xf32>
    %179 = vector.broadcast %178 : vector<16x1xf32> to vector<16x32xf32>
    %180 = arith.subf %172, %179 : vector<16x32xf32>
    %181 = arith.mulf %180, %180 : vector<16x32xf32>
    %cst_101 = arith.constant dense<0.000000e+00> : vector<16xf32>
    %182 = vector.multi_reduction <add>, %181, %cst_101 [1] : vector<16x32xf32> to vector<16xf32>
    %183 = vector.shape_cast %182 : vector<16xf32> to vector<16x1xf32>
    %cst_102 = arith.constant 3.200000e+01 : f32
    %184 = vector.broadcast %cst_102 : f32 to vector<16x1xf32>
    %185 = arith.divf %183, %184 : vector<16x1xf32>
    %186 = vector.broadcast %178 : vector<16x1xf32> to vector<16x32xf32>
    %187 = arith.subf %172, %186 : vector<16x32xf32>
    %cst_103 = arith.constant 9.99999974E-6 : f32
    %188 = vector.broadcast %cst_103 : f32 to vector<16x1xf32>
    %189 = arith.addf %185, %188 : vector<16x1xf32>
    %190 = math.rsqrt %189 : vector<16x1xf32>
    %191 = vector.broadcast %190 : vector<16x1xf32> to vector<16x32xf32>
    %192 = arith.mulf %187, %191 : vector<16x32xf32>
    %193 = vector.broadcast %173 : vector<1x32xf32> to vector<16x32xf32>
    %194 = arith.mulf %192, %193 : vector<16x32xf32>
    %195 = vector.broadcast %174 : vector<1x32xf32> to vector<16x32xf32>
    %196 = arith.addf %194, %195 : vector<16x32xf32>
    %c0_104 = arith.constant 0 : index
    %c0_105 = arith.constant 0 : index
    %197 = vector.load %arg17[%c0_104, %c0_105] : memref<16x32xf32, #tpu.memory_space<vmem>>, vector<16x32xf32>
    tpu.vector_store %arg17[%c0_104, %c0_105], %196 {strides = array<i32>} : memref<16x32xf32, #tpu.memory_space<vmem>>, vector<16x32xf32>,
    return
  }
}

module attributes {stable_mosaic.version = 11 : i64} {
  func.func @_final_head_kernel(%arg0: memref<16x32xf32, #tpu.memory_space<vmem>>, %arg1: memref<1x32xf32, #tpu.memory_space<vmem>>, %arg2: memref<1x32xf32, #tpu.memory_space<vmem>>, %arg3: memref<32x128xf32, #tpu.memory_space<vmem>>, %arg4: memref<1x128xf32, #tpu.memory_space<vmem>>, %arg5: memref<16x128xf32, #tpu.memory_space<vmem>>) attributes {dimension_semantics = [], scalar_prefetch = 0 : i64, scratch_operands = 0 : i64, tpu.core_type = #tpu.core_type<tc>} {
    %c0 = arith.constant 0 : index
    %c0_0 = arith.constant 0 : index
    %0 = vector.load %arg0[%c0, %c0_0] : memref<16x32xf32, #tpu.memory_space<vmem>>, vector<16x32xf32>
    %c0_1 = arith.constant 0 : index
    %c0_2 = arith.constant 0 : index
    %1 = vector.load %arg1[%c0_1, %c0_2] : memref<1x32xf32, #tpu.memory_space<vmem>>, vector<1x32xf32>
    %c0_3 = arith.constant 0 : index
    %c0_4 = arith.constant 0 : index
    %2 = vector.load %arg2[%c0_3, %c0_4] : memref<1x32xf32, #tpu.memory_space<vmem>>, vector<1x32xf32>
    %cst = arith.constant dense<0.000000e+00> : vector<16xf32>
    %3 = vector.multi_reduction <add>, %0, %cst [1] : vector<16x32xf32> to vector<16xf32>
    %4 = vector.shape_cast %3 : vector<16xf32> to vector<16x1xf32>
    %cst_5 = arith.constant 3.200000e+01 : f32
    %5 = vector.broadcast %cst_5 : f32 to vector<16x1xf32>
    %6 = arith.divf %4, %5 : vector<16x1xf32>
    %7 = vector.broadcast %6 : vector<16x1xf32> to vector<16x32xf32>
    %8 = arith.subf %0, %7 : vector<16x32xf32>
    %9 = arith.mulf %8, %8 : vector<16x32xf32>
    %cst_6 = arith.constant dense<0.000000e+00> : vector<16xf32>
    %10 = vector.multi_reduction <add>, %9, %cst_6 [1] : vector<16x32xf32> to vector<16xf32>
    %11 = vector.shape_cast %10 : vector<16xf32> to vector<16x1xf32>
    %cst_7 = arith.constant 3.200000e+01 : f32
    %12 = vector.broadcast %cst_7 : f32 to vector<16x1xf32>
    %13 = arith.divf %11, %12 : vector<16x1xf32>
    %14 = vector.broadcast %6 : vector<16x1xf32> to vector<16x32xf32>
    %15 = arith.subf %0, %14 : vector<16x32xf32>
    %cst_8 = arith.constant 9.99999974E-6 : f32
    %16 = vector.broadcast %cst_8 : f32 to vector<16x1xf32>
    %17 = arith.addf %13, %16 : vector<16x1xf32>
    %18 = math.rsqrt %17 : vector<16x1xf32>
    %19 = vector.broadcast %18 : vector<16x1xf32> to vector<16x32xf32>
    %20 = arith.mulf %15, %19 : vector<16x32xf32>
    %21 = vector.broadcast %1 : vector<1x32xf32> to vector<16x32xf32>
    %22 = arith.mulf %20, %21 : vector<16x32xf32>
    %23 = vector.broadcast %2 : vector<1x32xf32> to vector<16x32xf32>
    %24 = arith.addf %22, %23 : vector<16x32xf32>
    %c0_9 = arith.constant 0 : index
    %c0_10 = arith.constant 0 : index
    %25 = vector.load %arg3[%c0_9, %c0_10] : memref<32x128xf32, #tpu.memory_space<vmem>>, vector<32x128xf32>
    %cst_11 = arith.constant dense<0.000000e+00> : vector<16x128xf32>
    %26 = tpu.matmul %24, %25, %cst_11 {dimension_numbers = #tpu.dot_dimension_numbers<[1], [0], [0], [1], [0, 0, 1, 1], [], []>} : vector<16x32xf32>, vector<32x128xf32>, vector<16x128xf32> -> vector<16x128xf32>
    %c0_12 = arith.constant 0 : index
    %c0_13 = arith.constant 0 : index
    %27 = vector.load %arg4[%c0_12, %c0_13] : memref<1x128xf32, #tpu.memory_space<vmem>>, vector<1x128xf32>
    %28 = vector.broadcast %27 : vector<1x128xf32> to vector<16x128xf32>
    %29 = arith.addf %26, %28 : vector<16x128xf32>
    %c0_14 = arith.constant 0 : index
    %c0_15 = arith.constant 0 : index
    %30 = vector.load %arg5[%c0_14, %c0_15] : memref<16x128xf32, #tpu.memory_space<vmem>>, vector<16x128xf32>
    tpu.vector_store %arg5[%c0_14, %c0_15], %29 {strides = array<i32>} : memref<16x128xf32, #tpu.memory_space<vmem>>, vector<16x128xf32>,
    return
  }
}

</mosaic_0001>

<bundles_post_ra>
// kernel: char_transformer_forward.8
= control target key start
LH: loop header
LB: loop body
LE: loop exit
PB: predicated region body
PF: predicated region fallthrough
CT: control target
= control target key end

     0   :  { %vm18_vm0 = vcmask 261120   ;;  %s118_s0 = inlined_call_operand.vmem [shape: f32[16,32], index: 0, kind: input, shape index: {}]   ;;  %s119_s1 = inlined_call_operand.vmem [shape: f32[1,32], index: 1, kind: input, shape index: {}]   ;;  %s120_s2 = inlined_call_operand.vmem [shape: f32[1,32], index: 2, kind: input, shape index: {}]   ;;  %s121_s3 = inlined_call_operand.vmem [shape: f32[16,32], index: 3, kind: output, shape index: {}]  }
   0x1   :  { %v14_v0 = vld [vmem:[%s118_s0] sm:$0xff]  ;;  %v15_v1 = vld [vmem:[%s118_s0 + $0x8] sm:$0xff] }
   0x2   :  { %v19_v2 = vsel %vm18_vm0, %v14_v0, 0.0  ;;  %v22_v3 = vsel %vm18_vm0, %v15_v1, 0.0  ;;  %v68_v21 = vld [vmem:[%s119_s1] ss:$0 sm:$0xff] }
   0x3   :  { %20 = vadd.xlane.f32.xlu0 %v19_v2  ;;  %v69_v23 = vld [vmem:[%s120_s2] ss:$0 sm:$0xff] }
   0x7   :  { %23 = vadd.xlane.f32.xlu0 %v22_v3 }
  0x90   :  { %v21_v4 = vpop.xlane.xlu0 %20 }
  0x91   :  { %v26_v5 = vmul.f32 0.03125, %v21_v4 }
  0x93   :  { %v28_v6 = vsub.f32 %v14_v0, %v26_v5 }
  0x94   :  { %v24_v7 = vpop.xlane.xlu0 %23 }
  0x95   :  { %v27_v8 = vmul.f32 0.03125, %v24_v7  ;;  %v30_v9 = vmul.f32 %v28_v6, %v28_v6 }
  0x97   :  { %v29_v10 = vsub.f32 %v15_v1, %v27_v8  ;;  %v32_v11 = vsel %vm18_vm0, %v30_v9, 0.0 }
  0x98   :  { %33 = vadd.xlane.f32.xlu1 %v32_v11 }
  0x99   :  { %v31_v12 = vmul.f32 %v29_v10, %v29_v10 }
  0x9b   :  { %v35_v13 = vsel %vm18_vm0, %v31_v12, 0.0 }
  0x9c   :  { %36 = vadd.xlane.f32.xlu1 %v35_v13 }
 0x125   :  { %v34_v14 = vpop.xlane.xlu1 %33 }
 0x126   :  { %v38_v15 = vmul.f32 0.03125, %v34_v14 }
 0x128   :  { %v40_v16 = vadd.f32 1e-05, %v38_v15 }
 0x129   :  { %v37_v17 = vpop.xlane.xlu1 %36 }
 0x12a   :  { %70 = vrsqrt.f32 %v40_v16  ;;  %v39_v18 = vmul.f32 0.03125, %v37_v17 }
 0x12c   :  { %v41_v19 = vadd.f32 1e-05, %v39_v18 }
 0x12e   :  { %72 = vrsqrt.f32 %v41_v19 }
 0x134   :  { %v71_v20 = vpop.eup %70 }
 0x135   :  { %v44_v22 = vmul.f32 %v71_v20, %v28_v6 }
 0x137   :  { %v52_v24 = vmul.f32 %v68_v21, %v44_v22 }
 0x138   :  { %v73_v25 = vpop.eup %72 }
 0x139   :  { %v60_v26 = vadd.f32 %v69_v23, %v52_v24  ;;  %v45_v27 = vmul.f32 %v73_v25, %v29_v10 }
 0x13b   :  { %62 = vst.msk [vmem:[%s121_s3] sm:$0xff] %vm18_vm0, %v60_v26  ;;  %v53_v28 = vmul.f32 %v68_v21, %v45_v27 }
 0x13d   :  { %v61_v29 = vadd.f32 %v69_v23, %v53_v28 }
 0x13f   :  { %63 = vst.msk [vmem:[%s121_s3 + $0x8] sm:$0xff] %vm18_vm0, %v61_v29 }

// kernel: char_transformer_forward.11
= control target key start
LH: loop header
LB: loop body
LE: loop exit
PB: predicated region body
PF: predicated region fallthrough
CT: control target
= control target key end

     0   :  { %vm24_vm0 = vcmask 261120   ;;  %s269_s0 = inlined_call_operand.vmem [shape: f32[16,32], index: 0, kind: input, shape index: {}]   ;;  %s270_s3 = inlined_call_operand.vmem [shape: f32[32,128], index: 3, kind: input, shape index: {}]   ;;  %s271_s1 = inlined_call_operand.vmem [shape: f32[1,32], index: 1, kind: input, shape index: {}]   ;;  %s272_s2 = inlined_call_operand.vmem [shape: f32[1,32], index: 2, kind: input, shape index: {}]   ;;  %s273_s4 = inlined_call_operand.vmem [shape: f32[1,128], index: 4, kind: input, shape index: {}]   ;;  %s274_s5 = inlined_call_operand.vmem [shape: f32[16,128], index: 5, kind: output, shape index: {}]  }
   0x1   :  { %v20_v0 = vld [vmem:[%s269_s0] sm:$0xff]  ;;  %v21_v1 = vld [vmem:[%s269_s0 + $0x8] sm:$0xff]  ;;  %v70_v16 = vld [vmem:[%s270_s3 + $0x10] sm:$0xff] }
   0x2   :  { %v25_v2 = vsel %vm24_vm0, %v20_v0, 0.0  ;;  %v28_v3 = vsel %vm24_vm0, %v21_v1, 0.0  ;;  %v68_v14 = vld [vmem:[%s270_s3] sm:$0xff]  ;;  %v69_v15 = vld [vmem:[%s270_s3 + $0x8] sm:$0xff]  ;;  %v71_v18 = vld [vmem:[%s270_s3 + $0x18] sm:$0xff] }
   0x3   :  { %26 = vadd.xlane.f32.xlu0 %v25_v2  ;;  %v188_v17 = vpack.c.bf16 %v69_v15, %v68_v14  ;;  %v192_v19 = vpack.c.bf16 %v71_v18, %v70_v16  ;;  %v166_v27 = vld [vmem:[%s271_s1] ss:$0 sm:$0xff] }
   0x4   :  { %v167_v29 = vld [vmem:[%s272_s2] ss:$0 sm:$0xff] }
   0x5   :  { %189 = vmatprep.subr.bf16.mxu0 %v188_v17  ;;  %v168_v36 = vld [vmem:[%s273_s4] ss:$0 sm:$0xff] }
   0x6   :  { %191 = vmatpush3.bf16.msra.mxu0 %v188_v17 }
   0x7   :  { %29 = vadd.xlane.f32.xlu0 %v28_v3  ;;  %193 = vmatprep.subr.bf16.mxu0 %v192_v19 }
   0xa   :  { %195 = vmatpush3.bf16.msra.mxu0 %v192_v19 }
  0x90   :  { %v27_v4 = vpop.xlane.xlu0 %26 }
  0x91   :  { %v32_v5 = vmul.f32 0.03125, %v27_v4 }
  0x93   :  { %v34_v6 = vsub.f32 %v20_v0, %v32_v5 }
  0x94   :  { %v30_v7 = vpop.xlane.xlu0 %29 }
  0x95   :  { %v33_v8 = vmul.f32 0.03125, %v30_v7  ;;  %v36_v9 = vmul.f32 %v34_v6, %v34_v6 }
  0x97   :  { %v35_v10 = vsub.f32 %v21_v1, %v33_v8  ;;  %v38_v11 = vsel %vm24_vm0, %v36_v9, 0.0 }
  0x98   :  { %39 = vadd.xlane.f32.xlu1 %v38_v11 }
  0x99   :  { %v37_v12 = vmul.f32 %v35_v10, %v35_v10 }
  0x9b   :  { %v41_v13 = vsel %vm24_vm0, %v37_v12, 0.0 }
  0x9c   :  { %42 = vadd.xlane.f32.xlu1 %v41_v13 }
 0x125   :  { %v40_v20 = vpop.xlane.xlu1 %39 }
 0x126   :  { %v44_v21 = vmul.f32 0.03125, %v40_v20 }
 0x128   :  { %v46_v22 = vadd.f32 1e-05, %v44_v21 }
 0x129   :  { %v43_v23 = vpop.xlane.xlu1 %42 }
 0x12a   :  { %196 = vrsqrt.f32 %v46_v22  ;;  %v45_v24 = vmul.f32 0.03125, %v43_v23 }
 0x12c   :  { %v47_v25 = vadd.f32 1e-05, %v45_v24 }
 0x12e   :  { %198 = vrsqrt.f32 %v47_v25 }
 0x134   :  { %v197_v26 = vpop.eup %196 }
 0x135   :  { %v50_v28 = vmul.f32 %v197_v26, %v34_v6 }
 0x137   :  { %v58_v30 = vmul.f32 %v166_v27, %v50_v28 }
 0x138   :  { %v199_v31 = vpop.eup %198 }
 0x139   :  { %v51_v32 = vmul.f32 %v199_v31, %v35_v10  ;;  %v66_v33 = vadd.f32 %v167_v29, %v58_v30 }
 0x13b   :  { %v59_v34 = vmul.f32 %v166_v27, %v51_v32  ;;  %185 = vmatprep.mubr.msk.f32.mxu0 %vm24_vm0, %v66_v33 }
 0x13d   :  { %v67_v35 = vadd.f32 %v167_v29, %v59_v34 }
 0x13f   :  { %186 = vmatmul.mubr.msk.f32.vlgmr.msra.gmra.mrb[0].mxu0 %vm24_vm0, %v67_v35 }
 0x212   :  { %v187_v37 = vpop.f32.mrb[0].mxu0 }
 0x213   :  { %v157_v38 = vadd.f32 %v187_v37, %v168_v36  ;;  %v151_v39 = vpop.f32.mrb[1].mxu0 }
 0x214   :  { %v152_v40 = vadd.f32 %v168_v36, %v151_v39 }
 0x215   :  { %161 = vst [vmem:[%s274_s5 + $0x8] sm:$0xff] %v157_v38 }
 0x216   :  { %160 = vst [vmem:[%s274_s5] sm:$0xff] %v152_v40 }

// kernel: char_transformer_forward.6
= control target key start
LH: loop header
LB: loop body
LE: loop exit
PB: predicated region body
PF: predicated region fallthrough
CT: control target
= control target key end

     0   :  { %vm75_vm0 = vcmask 261120   ;;  %v2257_v20 = vmov 0.0   ;;  %vm2258_vm1 = vmmov 0   ;;  %vm331_vm2 = vcmask 130048   ;;  %s2645_s3 = inlined_call_operand.vmem [shape: f32[2,32,16], index: 3, kind: input, shape index: {}]   ;;  %s2646_s1 = inlined_call_operand.vmem [shape: f32[2,32,16], index: 1, kind: input, shape index: {}]   ;;  %s2647_s0 = inlined_call_operand.vmem [shape: f32[16,32], index: 0, kind: input, shape index: {}]   ;;  %s2648_s5 = inlined_call_operand.vmem [shape: f32[2,32,16], index: 5, kind: input, shape index: {}]   ;;  %s2649_s4 = inlined_call_operand.vmem [shape: f32[2,1,16], index: 4, kind: input, shape index: {}]   ;;  %s2650_s2 = inlined_call_operand.vmem [shape: f32[2,1,16], index: 2, kind: input, shape index: {}]   ;;  %s2651_s6 = inlined_call_operand.vmem [shape: f32[2,1,16], index: 6, kind: input, shape index: {}]   ;;  %s2652_s7 = inlined_call_operand.vmem [shape: f32[2,16,32], index: 7, kind: input, shape index: {}]   ;;  %s2653_s8 = inlined_call_operand.vmem [shape: f32[1,32], index: 8, kind: input, shape index: {}]   ;;  %s2654_s9 = inlined_call_operand.vmem [shape: f32[1,32], index: 9, kind: input, shape index: {}]   ;;  %s2655_s10 = inlined_call_operand.vmem [shape: f32[1,32], index: 10, kind: input, shape index: {}]   ;;  %s2656_s11 = inlined_call_operand.vmem [shape: f32[32,64], index: 11, kind: input, shape index: {}]   ;;  %s2657_s13 = inlined_call_operand.vmem [shape: f32[64,32], index: 13, kind: input, shape index: {}]   ;;  %s2658_s12 = inlined_call_operand.vmem [shape: f32[1,64], index: 12, kind: input, shape index: {}]   ;;  %s2659_s14 = inlined_call_operand.vmem [shape: f32[1,32], index: 14, kind: input, shape index: {}]   ;;  %s2660_s15 = inlined_call_operand.vmem [shape: f32[1,32], index: 15, kind: input, shape index: {}]   ;;  %s2661_s16 = inlined_call_operand.vmem [shape: f32[1,32], index: 16, kind: input, shape index: {}]   ;;  %s2662_s17 = inlined_call_operand.vmem [shape: f32[16,32], index: 17, kind: output, shape index: {}]  }
   0x1   :  { %2665 = sst [smem:[#allocation2_spill]] %s2645_s3  ;;  %v2378_v11 = vld [vmem:[%s2647_s0] sm:$0xff]  ;;  %v244_v14 = vld [vmem:[%s2648_s5 + $0x8] sm:$0xff]  ;;  %v245_v16 = vld [vmem:[%s2648_s5 + $0x10] sm:$0xff]  ;;  %v58_v36 = vlaneseq  ;;  %v2259_v40 = vmov -1e+30  }
   0x2   :  { %2666 = sst [smem:[#allocation3_spill]] %s2646_s1  ;;  %s2667_s26 = sld [smem:[#allocation2_spill]]  ;;  %2000 = vmatprep.mubr.msk.f32.mxu1 %vm75_vm0, %v2378_v11  ;;  %v243_v13 = vld [vmem:[%s2648_s5] sm:$0xff]  ;;  %1989 = vmatprep.mubr.msk.f32.mxu0 %vm75_vm0, %v2378_v11  ;;  %v246_v17 = vld [vmem:[%s2648_s5 + $0x18] sm:$0xff]  ;;  %v2399_v18 = vld [vmem:[%s2647_s0 + $0x8] sm:$0xff]  ;;  %vm410_vm4 = vcmask 64512  }
   0x3   :  { %s2668_s30 = sld [smem:[#allocation3_spill]]  ;;  %v2161_v15 = vpack.c.bf16 %v244_v14, %v243_v13  ;;  %v2165_v19 = vpack.c.bf16 %v246_v17, %v245_v16  ;;  %v1842_v21 = vld [vmem:[%s2649_s4] ss:$0 sm:$0xff]  ;;  %v59_v37 = vshrl.u32 %v58_v36, 7  ;;  %v61_v38 = vand.u32 127, %v58_v36  ;;  %v1873_v36 = vld [vmem:[%s2648_s5 + $0x38] sm:$0xff] }
   0x4   :  { %v1839_v23 = vld [vmem:[%s2650_s2] ss:$0 sm:$0xff]  ;;  %v1859_v17 = vld [vmem:[%s2650_s2 + $0x1] ss:$0 sm:$0xff]  ;;  %vm1705_vm5 = vcmask 523264  }
   0x5   :  { %v1845_v30 = vld [vmem:[%s2651_s6] ss:$0 sm:$0xff]  ;;  %vm62_vm3 = vcmp.ge.s32.totalorder %v59_v37, %v61_v38 }
   0x6   :  { %v2436_v41 = vsel %vm62_vm3, 0.0, %v2259_v40 }
   0x8   :  { %v157_v0 = vld [vmem:[%s2667_s26] sm:$0xff]  ;;  %v158_v1 = vld [vmem:[%s2667_s26 + $0x8] sm:$0xff]  ;;  %v159_v5 = vld [vmem:[%s2667_s26 + $0x10] sm:$0xff] }
   0x9   :  { %v64_v2 = vld [vmem:[%s2668_s30] sm:$0xff]  ;;  %v2153_v3 = vpack.c.bf16 %v158_v1, %v157_v0  ;;  %v65_v4 = vld [vmem:[%s2668_s30 + $0x8] sm:$0xff]  ;;  %v160_v6 = vld [vmem:[%s2667_s26 + $0x18] sm:$0xff] }
   0xa   :  { %v2145_v7 = vpack.c.bf16 %v65_v4, %v64_v2  ;;  %v2157_v8 = vpack.c.bf16 %v160_v6, %v159_v5  ;;  %v66_v9 = vld [vmem:[%s2668_s30 + $0x10] sm:$0xff]  ;;  %v67_v10 = vld [vmem:[%s2668_s30 + $0x18] sm:$0xff]  ;;  %v1854_v61 = vld [vmem:[%s2668_s30 + $0x20] sm:$0xff] }
   0xb   :  { %2154 = vmatprep.subr.bf16.mxu1 %v2153_v3  ;;  %v2149_v12 = vpack.c.bf16 %v67_v10, %v66_v9  ;;  %v1855_v62 = vld [vmem:[%s2668_s30 + $0x28] sm:$0xff]  ;;  %v1856_v0 = vld [vmem:[%s2668_s30 + $0x30] sm:$0xff]  ;;  %v1857_v1 = vld [vmem:[%s2668_s30 + $0x38] sm:$0xff] }
   0xc   :  { %2156 = vmatpush3.bf16.msra.mxu1 %v2153_v3  ;;  %2146 = vmatprep.subr.bf16.mxu0 %v2145_v7  ;;  %v2169_v63 = vpack.c.bf16 %v1855_v62, %v1854_v61  ;;  %v2173_v2 = vpack.c.bf16 %v1857_v1, %v1856_v0  ;;  %v1862_v5 = vld [vmem:[%s2667_s26 + $0x20] sm:$0xff]  ;;  %v1863_v6 = vld [vmem:[%s2667_s26 + $0x28] sm:$0xff]  ;;  %v1864_v10 = vld [vmem:[%s2667_s26 + $0x30] sm:$0xff] }
   0xd   :  { %2148 = vmatpush3.bf16.msra.mxu0 %v2145_v7  ;;  %2158 = vmatprep.subr.bf16.mxu1 %v2157_v8  ;;  %v2177_v9 = vpack.c.bf16 %v1863_v6, %v1862_v5 }
   0xe   :  { %2150 = vmatprep.subr.bf16.mxu0 %v2149_v12 }
  0x10   :  { %2160 = vmatpush3.bf16.msra.mxu1 %v2157_v8 }
  0x11   :  { %2152 = vmatpush3.bf16.msra.mxu0 %v2149_v12  ;;  %2019 = vmatprep.subr.mxu1 %v2257_v20  ;;  %v1865_v12 = vld [vmem:[%s2667_s26 + $0x38] sm:$0xff] }
  0x12   :  { %2162 = vmatprep.subr.bf16.mxu0 %v2161_v15 }
  0x13   :  { %2001 = vmatmul.mubr.msk.f32.vlgmr.msra.gmra.mrb[0].mxu1 %vm75_vm0, %v2399_v18 }
  0x14   :  { %1990 = vmatmul.mubr.msk.f32.vlgmr.msra.gmra.mrb[0].mxu0 %vm75_vm0, %v2399_v18  ;;  %2021 = vmatprep.mubr.msk.f32.mxu1 %vm2258_vm1, %v2257_v20 }
  0x15   :  { %2164 = vmatpush3.bf16.msra.mxu0 %v2161_v15  ;;  %2011 = vmatprep.mubr.msk.f32.mxu0 %vm75_vm0, %v2378_v11  ;;  %v2181_v15 = vpack.c.bf16 %v1865_v12, %v1864_v10 }
  0x16   :  { %2166 = vmatprep.subr.bf16.mxu0 %v2165_v19 }
  0x19   :  { %2168 = vmatpush3.bf16.msra.mxu0 %v2165_v19 }
  0x1a   :  { %2014 = vmatprep.subr.mxu0 %v2257_v20 }
  0x1c   :  { %2012 = vmatmul.mubr.msk.f32.vlgmr.msra.gmra.mrb[2].mxu0 %vm75_vm0, %v2399_v18 }
  0x1d   :  { %2016 = vmatprep.mubr.msk.f32.mxu0 %vm2258_vm1, %v2257_v20 }
  0xe6   :  { %v2002_v22 = vpop.f32.mrb[0].mxu1 }
  0xe7   :  { %v234_v24 = vpop.f32.mrb[1].mxu1  ;;  %v1991_v25 = vpop.f32.mrb[0].mxu0  ;;  %v240_v29 = vadd.f32 %v2002_v22, %v1842_v21 }
  0xe8   :  { %v235_v26 = vadd.f32 %v1842_v21, %v234_v24  ;;  %v148_v27 = vpop.f32.mrb[1].mxu0  ;;  %v154_v31 = vadd.f32 %v1991_v25, %v1839_v23 }
  0xe9   :  { %v149_v28 = vadd.f32 %v1839_v23, %v148_v27 }
  0xea   :  { %2015 = vmatpush3.xpose.msk.msra.mxu0 %vm331_vm2, %v235_v26  ;;  %v1867_v26 = vld [vmem:[%s2649_s4 + $0x1] ss:$0 sm:$0xff] }
  0xeb   :  { %2024 = vmatprep.subr.mxu0 %v2257_v20 }
  0xed   :  { %2017 = vmatmul.mubr.msk.f32.vlgmr.msra.gmra.mrb[4].mxu0 %vm331_vm2, %v149_v28 }
  0xee   :  { %2025 = vmatpush3.xpose.msk.msra.mxu0 %vm331_vm2, %v240_v29  ;;  %2026 = vmatprep.mubr.msk.f32.mxu0 %vm2258_vm1, %v2257_v20 }
  0xef   :  { %v2013_v32 = vpop.f32.mrb[2].mxu0  ;;  %2170 = vmatprep.subr.bf16.mxu0 %v2169_v63 }
  0xf0   :  { %v2430_v33 = vadd.f32 %v2013_v32, %v1845_v30  ;;  %v320_v34 = vpop.f32.mrb[3].mxu0  ;;  %v1870_v32 = vld [vmem:[%s2648_s5 + $0x20] sm:$0xff] }
  0xf1   :  { %2027 = vmatmul.mubr.msk.f32.vlgmr.msra.gmra.mrb[6].mxu0 %vm331_vm2, %v154_v31  ;;  %v321_v35 = vadd.f32 %v1845_v30, %v320_v34  ;;  %v1872_v34 = vld [vmem:[%s2648_s5 + $0x30] sm:$0xff] }
  0xf2   :  { %2042 = vmatprep.mubr.msk.f32.mxu0 %vm75_vm0, %v2378_v11  ;;  %2172 = vmatpush3.bf16.msra.mxu0 %v2169_v63  ;;  %v2189_v37 = vpack.c.bf16 %v1873_v36, %v1872_v34  ;;  %v1891_v36 = vld [vmem:[%s2654_s9] ss:$0 sm:$0xff] }
  0xf3   :  { %2020 = vmatpush3.msra.mxu1 %v321_v35  ;;  %2174 = vmatprep.subr.bf16.mxu0 %v2173_v2 }
  0xf4   :  { %2029 = vmatprep.subr.mxu1 %v2257_v20 }
  0xf6   :  { %2176 = vmatpush3.bf16.msra.mxu0 %v2173_v2 }
  0xf9   :  { %2043 = vmatmul.mubr.msk.f32.vlgmr.msra.gmra.mrb[8].mxu0 %vm75_vm0, %v2399_v18 }
  0xfa   :  { %2064 = vmatprep.mubr.msk.f32.mxu0 %vm75_vm0, %v2378_v11 }
 0x1c0   :  { %v404_v39 = vpop.f32.mrb[4].mxu0 }
 0x1c1   :  { %v408_v42 = vmul.f32 0.25, %v404_v39  ;;  %v2018_v43 = vpop.f32.mrb[5].mxu0 }
 0x1c3   :  { %v409_v44 = vadd.f32 %v408_v42, %v2436_v41 }
 0x1c4   :  { %v567_v45 = vpop.f32.mrb[6].mxu0 }
 0x1c5   :  { %v571_v46 = vmul.f32 0.25, %v567_v45  ;;  %v2028_v47 = vpop.f32.mrb[7].mxu0  ;;  %v411_v48 = vsel %vm410_vm4, %v409_v44, -inf }
 0x1c6   :  { %412 = vmax.xlane.f32.xlu0 %v411_v48 }
 0x1c7   :  { %v572_v49 = vadd.f32 %v571_v46, %v2436_v41 }
 0x1c9   :  { %v573_v50 = vsel %vm410_vm4, %v572_v49, -inf }
 0x1ca   :  { %574 = vmax.xlane.f32.xlu0 %v573_v50  ;;  %v1875_v50 = vld [vmem:[%s2651_s6 + $0x1] ss:$0 sm:$0xff] }
 0x1cc   :  { %v2044_v16 = vpop.f32.mrb[8].mxu0 }
 0x1cd   :  { %v2487_v19 = vadd.f32 %v2044_v16, %v1859_v17  ;;  %v736_v21 = vpop.f32.mrb[9].mxu0 }
 0x1ce   :  { %v737_v31 = vadd.f32 %v1859_v17, %v736_v21 }
 0x253   :  { %v413_v51 = vpop.xlane.xlu0 %412 }
 0x254   :  { %v414_v52 = vsub.f32 %v409_v44, %v413_v51 }
 0x256   :  { %v415_v53 = vmul.f32 1.442695, %v414_v52 }
 0x257   :  { %v575_v54 = vpop.xlane.xlu0 %574 }
 0x258   :  { %2233 = vpow2.f32 %v415_v53  ;;  %v576_v55 = vsub.f32 %v572_v49, %v575_v54  ;;  %v2260_v54 = vmov 0.0|0.0  }
 0x25a   :  { %v577_v56 = vmul.f32 1.442695, %v576_v55  ;;  %v1878_v55 = vld [vmem:[%s2652_s7 + $0x10] sm:$0xff] }
 0x25c   :  { %2235 = vpow2.f32 %v577_v56  ;;  %v1879_v56 = vld [vmem:[%s2652_s7 + $0x18] sm:$0xff] }
 0x262   :  { %v2234_v57 = vpop.eup %2233 }
 0x263   :  { %v417_v58 = vsel %vm410_vm4, %v2234_v57, 0.0 }
 0x264   :  { %418 = vadd.xlane.f32.xlu1 %v417_v58 }
 0x266   :  { %v2236_v59 = vpop.eup %2235 }
 0x267   :  { %v579_v60 = vsel %vm410_vm4, %v2236_v59, 0.0 }
 0x268   :  { %580 = vadd.xlane.f32.xlu1 %v579_v60  ;;  %v330_v60 = vld [vmem:[%s2652_s7 + $0x8] sm:$0xff] }
 0x2f1   :  { %v419_v3 = vpop.xlane.xlu1 %418 }
 0x2f2   :  { %2237 = vrcp.f32 %v419_v3 }
 0x2f5   :  { %v581_v4 = vpop.xlane.xlu1 %580 }
 0x2f6   :  { %2239 = vrcp.f32 %v581_v4 }
 0x2fc   :  { %v2238_v7 = vpop.eup %2237 }
 0x2fd   :  { %v421_v8 = vmul.f32 %v2238_v7, %v2234_v57  ;;  %v2194_v57 = vpack.c.bf16 %v1879_v56, %v1878_v55  ;;  %v1890_v7 = vld [vmem:[%s2653_s8] ss:$0 sm:$0xff]  ;;  %v1597_v55 = vld [vmem:[%s2656_s11 + $0x8] sm:$0xff] }
 0x2ff   :  { %2022 = vmatmul.mubr.msk.f32.vlgmr.msra.gmra.mrb[2].mxu1 %vm410_vm4, %v421_v8 }
 0x300   :  { %v2240_v13 = vpop.eup %2239  ;;  %2030 = vmatpush3.msra.mxu1 %v2430_v33  ;;  %2031 = vmatprep.mubr.msk.f32.mxu1 %vm2258_vm1, %v2257_v20  ;;  %v1871_v33 = vld [vmem:[%s2648_s5 + $0x28] sm:$0xff] }
 0x301   :  { %v583_v14 = vmul.f32 %v2240_v13, %v2236_v59  ;;  %2178 = vmatprep.subr.bf16.mxu1 %v2177_v9  ;;  %v2185_v35 = vpack.c.bf16 %v1871_v33, %v1870_v32  ;;  %v329_v59 = vld [vmem:[%s2652_s7] sm:$0xff] }
 0x302   :  { %v2197_v62 = vpack.c.bf16 %v330_v60, %v329_v59  ;;  %v1690_v59 = vld [vmem:[%s2657_s13] sm:$0xff]  ;;  %v1691_v60 = vld [vmem:[%s2657_s13 + $0x8] sm:$0xff] }
 0x303   :  { %2032 = vmatmul.mubr.msk.f32.vlgmr.msra.gmra.mrb[4].mxu1 %vm410_vm4, %v583_v14  ;;  %2186 = vmatprep.subr.bf16.mxu0 %v2185_v35 }
 0x304   :  { %2180 = vmatpush3.bf16.msra.mxu1 %v2177_v9  ;;  %2053 = vmatprep.mubr.msk.f32.mxu1 %vm75_vm0, %v2378_v11 }
 0x305   :  { %2182 = vmatprep.subr.bf16.mxu1 %v2181_v15  ;;  %2188 = vmatpush3.bf16.msra.mxu0 %v2185_v35 }
 0x306   :  { %2190 = vmatprep.subr.bf16.mxu0 %v2189_v37 }
 0x308   :  { %2184 = vmatpush3.bf16.msra.mxu1 %v2181_v15 }
 0x309   :  { %2067 = vmatprep.subr.mxu1 %v2257_v20  ;;  %2192 = vmatpush3.bf16.msra.mxu0 %v2189_v37 }
 0x30a   :  { %2193 = vmatprep.subr.bf16.mxu0 %v2260_v54 }
 0x30b   :  { %2054 = vmatmul.mubr.msk.f32.vlgmr.msra.gmra.mrb[6].mxu1 %vm75_vm0, %v2399_v18 }
 0x30c   :  { %2069 = vmatprep.mubr.msk.f32.mxu1 %vm2258_vm1, %v2257_v20  ;;  %2065 = vmatmul.mubr.msk.f32.vlgmr.msra.gmra.mrb[10].mxu0 %vm75_vm0, %v2399_v18 }
 0x30d   :  { %2081 = vmatprep.mubr.msk.f32.mxu0 %vm2258_vm1, %v2257_v20  ;;  %2195 = vmatpush3.bf16.msra.mxu0 %v2194_v57 }
 0x30e   :  { %2091 = vmatprep.subr.mxu0 %v2257_v20 }
 0x3d2   :  { %v2489_v22 = vpop.f32.mrb[2].mxu1 }
 0x3d3   :  { %v2023_v23 = vpop.f32.mrb[3].mxu1 }
 0x3d6   :  { %v2491_v24 = vpop.f32.mrb[4].mxu1 }
 0x3d7   :  { %v2033_v25 = vpop.f32.mrb[5].mxu1 }
 0x3de   :  { %v2055_v27 = vpop.f32.mrb[6].mxu1 }
 0x3df   :  { %v2496_v28 = vadd.f32 %v2055_v27, %v1867_v26  ;;  %v824_v29 = vpop.f32.mrb[7].mxu1  ;;  %v2066_v49 = vpop.f32.mrb[10].mxu0 }
 0x3e0   :  { %v825_v30 = vadd.f32 %v1867_v26, %v824_v29  ;;  %v912_v51 = vpop.f32.mrb[11].mxu0  ;;  %v918_v52 = vadd.f32 %v2066_v49, %v1875_v50 }
 0x3e1   :  { %v913_v53 = vadd.f32 %v1875_v50, %v912_v51 }
 0x3e2   :  { %2068 = vmatpush3.xpose.msk.msra.mxu1 %vm331_vm2, %v825_v30 }
 0x3e3   :  { %2072 = vmatprep.subr.mxu1 %v2257_v20 }
 0x3e5   :  { %2070 = vmatmul.mubr.msk.f32.vlgmr.msra.gmra.mrb[8].mxu1 %vm331_vm2, %v737_v31 }
 0x3e6   :  { %2074 = vmatprep.mubr.msk.f32.mxu1 %vm2258_vm1, %v2257_v20  ;;  %2073 = vmatpush3.msra.mxu1 %v913_v53 }
 0x3e7   :  { %2196 = vmatprep.subr.bf16.mxu1 %v2260_v54 }
 0x4b8   :  { %v996_v38 = vpop.f32.mrb[8].mxu1 }
 0x4b9   :  { %v1000_v39 = vmul.f32 0.25, %v996_v38  ;;  %v2071_v40 = vpop.f32.mrb[9].mxu1  ;;  %v1892_v38 = vld [vmem:[%s2655_s10] ss:$0 sm:$0xff] }
 0x4bb   :  { %v1001_v42 = vadd.f32 %v1000_v39, %v2436_v41 }
 0x4bd   :  { %v1002_v43 = vsel %vm410_vm4, %v1001_v42, -inf }
 0x4be   :  { %1003 = vmax.xlane.f32.xlu0 %v1002_v43 }
 0x54b   :  { %v1004_v44 = vpop.xlane.xlu0 %1003 }
 0x54c   :  { %v1005_v45 = vsub.f32 %v1001_v42, %v1004_v44 }
 0x54e   :  { %v1006_v46 = vmul.f32 1.442695, %v1005_v45 }
 0x550   :  { %2241 = vpow2.f32 %v1006_v46 }
 0x55a   :  { %v2242_v47 = vpop.eup %2241 }
 0x55b   :  { %v1008_v48 = vsel %vm410_vm4, %v2242_v47, 0.0 }
 0x55c   :  { %1009 = vadd.xlane.f32.xlu1 %v1008_v48 }
 0x5e9   :  { %v1010_v58 = vpop.xlane.xlu1 %1009 }
 0x5ea   :  { %2243 = vrcp.f32 %v1010_v58 }
 0x5f4   :  { %v2244_v61 = vpop.eup %2243 }
 0x5f5   :  { %v1012_v63 = vmul.f32 %v2244_v61, %v2242_v47  ;;  %v1692_v61 = vld [vmem:[%s2657_s13 + $0x10] sm:$0xff] }
 0x5f7   :  { %2075 = vmatmul.mubr.msk.f32.vlgmr.msra.gmra.mrb[10].mxu1 %vm410_vm4, %v1012_v63  ;;  %v1693_v63 = vld [vmem:[%s2657_s13 + $0x18] sm:$0xff] }
 0x5f8   :  { %2198 = vmatpush3.bf16.msra.mxu1 %v2197_v62  ;;  %2088 = vmatprep.mubr.msk.f32.mxu1 %vm2258_vm1, %v2257_v20 }
 0x5f9   :  { %2096 = vmatprep.subr.mxu1 %v2257_v20 }
 0x5fb   :  { %2089 = vmatmul.mubr.msk.f32.vlgmr.msra.gmra.mrb[12].mxu1 %vm331_vm2, %v2489_v22 }
 0x5fc   :  { %2097 = vmatpush3.msra.mxu1 %v918_v52  ;;  %2098 = vmatprep.mubr.msk.f32.mxu1 %vm2258_vm1, %v2257_v20 }
 0x5fd   :  { %2202 = vmatprep.subr.bf16.mxu1 %v2260_v54 }
 0x6ca   :  { %v1082_v0 = vpop.f32.mrb[10].mxu1 }
 0x6cb   :  { %v2076_v1 = vpop.f32.mrb[11].mxu1  ;;  %2082 = vmatmul.mubr.msk.f32.vlgmr.msra.gmra.mrb[12].mxu0 %vm331_vm2, %v1082_v0  ;;  %v2217_v0 = vpack.c.bf16 %v1693_v63, %v1692_v61 }
 0x6cc   :  { %2092 = vmatpush3.xpose.msk.msra.mxu0 %vm331_vm2, %v2496_v28  ;;  %2093 = vmatprep.mubr.msk.f32.mxu0 %vm2258_vm1, %v2257_v20  ;;  %v1694_v1 = vld [vmem:[%s2657_s13 + $0x20] sm:$0xff] }
 0x6cd   :  { %2199 = vmatprep.subr.bf16.mxu0 %v2260_v54  ;;  %v1596_v54 = vld [vmem:[%s2656_s11] sm:$0xff] }
 0x6ce   :  { %v1228_v2 = vpop.f32.mrb[12].mxu1  ;;  %v2205_v56 = vpack.c.bf16 %v1597_v55, %v1596_v54 }
 0x6cf   :  { %v2090_v3 = vpop.f32.mrb[13].mxu1  ;;  %2094 = vmatmul.mubr.msk.f32.vlgmr.msra.gmra.mrb[14].mxu0 %vm331_vm2, %v2487_v19 }
 0x6d0   :  { %2201 = vmatpush3.bf16.msra.mxu0 %v2194_v57  ;;  %2105 = vmatprep.mubr.msk.f32.mxu0 %vm2258_vm1, %v2257_v20  ;;  %v1599_v57 = vld [vmem:[%s2656_s11 + $0x18] sm:$0xff] }
 0x6d1   :  { %2206 = vmatprep.subr.bf16.mxu0 %v2205_v56 }
 0x79e   :  { %v1155_v4 = vpop.f32.mrb[12].mxu0 }
 0x79f   :  { %v1229_v5 = vadd.f32 %v1228_v2, %v1155_v4  ;;  %v2083_v6 = vpop.f32.mrb[13].mxu0  ;;  %v1695_v2 = vld [vmem:[%s2657_s13 + $0x28] sm:$0xff] }
 0x7a0   :  { %v2221_v3 = vpack.c.bf16 %v1695_v2, %v1694_v1 }
 0x7a1   :  { %v1547_v9 = vadd.f32 %v1890_v7, %v1229_v5 }
 0x7a2   :  { %v1304_v8 = vpop.f32.mrb[14].mxu0 }
 0x7a3   :  { %v1308_v10 = vmul.f32 0.25, %v1304_v8  ;;  %v2095_v12 = vpop.f32.mrb[15].mxu0  ;;  %v1549_v15 = vadd.f32 %v1547_v9, %v2378_v11 }
 0x7a4   :  { %v1696_v12 = vld [vmem:[%s2657_s13 + $0x30] sm:$0xff] }
 0x7a5   :  { %v1309_v13 = vadd.f32 %v1308_v10, %v2436_v41  ;;  %v1553_v16 = vsel %vm75_vm0, %v1549_v15, 0.0 }
 0x7a7   :  { %v1310_v14 = vsel %vm410_vm4, %v1309_v13, -inf }
 0x7a8   :  { %1311 = vmax.xlane.f32.xlu0 %v1310_v14 }
 0x7ac   :  { %1554 = vadd.xlane.f32.xlu0 %v1553_v16 }
 0x835   :  { %v1312_v17 = vpop.xlane.xlu0 %1311 }
 0x836   :  { %v1313_v19 = vsub.f32 %v1309_v13, %v1312_v17  ;;  %v1697_v13 = vld [vmem:[%s2657_s13 + $0x38] sm:$0xff] }
 0x837   :  { %v2225_v14 = vpack.c.bf16 %v1697_v13, %v1696_v12 }
 0x838   :  { %v1314_v21 = vmul.f32 1.442695, %v1313_v19 }
 0x839   :  { %v1555_v22 = vpop.xlane.xlu0 %1554 }
 0x83a   :  { %2245 = vpow2.f32 %v1314_v21  ;;  %v1560_v23 = vmul.f32 0.03125, %v1555_v22 }
 0x83c   :  { %v1562_v25 = vsub.f32 %v1549_v15, %v1560_v23  ;;  %v1893_v15 = vld [vmem:[%s2658_s12] ss:$0 sm:$0xff] }
 0x83e   :  { %v1564_v26 = vmul.f32 %v1562_v25, %v1562_v25 }
 0x840   :  { %v1566_v27 = vsel %vm75_vm0, %v1564_v26, 0.0 }
 0x841   :  { %1567 = vadd.xlane.f32.xlu0 %v1566_v27 }
 0x844   :  { %v2246_v41 = vpop.eup %2245 }
 0x845   :  { %v1316_v28 = vsel %vm410_vm4, %v2246_v41, 0.0 }
 0x846   :  { %1317 = vadd.xlane.f32.xlu1 %v1316_v28 }
 0x8ce   :  { %v1568_v31 = vpop.xlane.xlu0 %1567 }
 0x8cf   :  { %v1572_v32 = vmul.f32 0.03125, %v1568_v31 }
 0x8d1   :  { %v1574_v33 = vadd.f32 1e-05, %v1572_v32 }
 0x8d3   :  { %v1318_v11 = vpop.xlane.xlu1 %1317 }
 0x8d4   :  { %2247 = vrcp.f32 %v1318_v11 }
 0x8d5   :  { %2249 = vrsqrt.f32 %v1574_v33 }
 0x8de   :  { %v2248_v29 = vpop.eup %2247 }
 0x8df   :  { %v1320_v30 = vmul.f32 %v2248_v29, %v2246_v41  ;;  %v2250_v34 = vpop.eup %2249 }
 0x8e0   :  { %v1578_v35 = vmul.f32 %v2250_v34, %v1562_v25  ;;  %v1896_v25 = vld [vmem:[%s2659_s14] ss:$0 sm:$0xff] }
 0x8e1   :  { %2099 = vmatmul.mubr.msk.f32.vlgmr.msra.gmra.mrb[14].mxu1 %vm410_vm4, %v1320_v30 }
 0x8e2   :  { %2204 = vmatpush3.bf16.msra.mxu1 %v2197_v62  ;;  %2112 = vmatprep.mubr.msk.f32.mxu1 %vm2258_vm1, %v2257_v20  ;;  %v1586_v37 = vmul.f32 %v1891_v36, %v1578_v35  ;;  %v2213_v62 = vpack.c.bf16 %v1691_v60, %v1690_v59 }
 0x8e4   :  { %v2575_v20 = vadd.f32 %v1892_v38, %v1586_v37  ;;  %2214 = vmatprep.subr.bf16.mxu1 %v2213_v62 }
 0x8e5   :  { %2113 = vmatmul.mubr.msk.f32.vlgmr.msra.gmra.mrb[16].mxu1 %vm331_vm2, %v2491_v24 }
 0x8e6   :  { %2216 = vmatpush3.bf16.msra.mxu1 %v2213_v62 }
 0x8e7   :  { %2218 = vmatprep.subr.bf16.mxu1 %v2217_v0 }
 0x8ea   :  { %2220 = vmatpush3.bf16.msra.mxu1 %v2217_v0 }
 0x8eb   :  { %2222 = vmatprep.subr.bf16.mxu1 %v2221_v3 }
 0x8ee   :  { %2224 = vmatpush3.bf16.msra.mxu1 %v2221_v3 }
 0x8ef   :  { %2226 = vmatprep.subr.bf16.mxu1 %v2225_v14 }
 0x8f2   :  { %2228 = vmatpush3.bf16.msra.mxu1 %v2225_v14 }
 0x9b4   :  { %v1390_v39 = vpop.f32.mrb[14].mxu1 }
 0x9b5   :  { %v2100_v40 = vpop.f32.mrb[15].mxu1  ;;  %2106 = vmatmul.mubr.msk.f32.vlgmr.msra.gmra.mrb[16].mxu0 %vm331_vm2, %v1390_v39 }
 0x9b6   :  { %2123 = vmatprep.mubr.msk.f32.mxu0 %vm75_vm0, %v2575_v20  ;;  %2208 = vmatpush3.bf16.msra.mxu0 %v2205_v56 }
 0x9b8   :  { %v1536_v24 = vpop.f32.mrb[16].mxu1 }
 0x9b9   :  { %v2114_v42 = vpop.f32.mrb[17].mxu1 }
 0xa88   :  { %v1463_v43 = vpop.f32.mrb[16].mxu0 }
 0xa89   :  { %v1537_v44 = vadd.f32 %v1536_v24, %v1463_v43  ;;  %v2107_v45 = vpop.f32.mrb[17].mxu0 }
 0xa8b   :  { %v1548_v46 = vadd.f32 %v1890_v7, %v1537_v44 }
 0xa8d   :  { %v1550_v47 = vadd.f32 %v1548_v46, %v2399_v18  ;;  %v1598_v18 = vld [vmem:[%s2656_s11 + $0x10] sm:$0xff] }
 0xa8e   :  { %v2209_v58 = vpack.c.bf16 %v1599_v57, %v1598_v18 }
 0xa8f   :  { %v1556_v48 = vsel %vm75_vm0, %v1550_v47, 0.0 }
 0xa90   :  { %1557 = vadd.xlane.f32.xlu1 %v1556_v48  ;;  %2210 = vmatprep.subr.bf16.mxu0 %v2209_v58  ;;  %v1899_v48 = vld [vmem:[%s2660_s15] ss:$0 sm:$0xff] }
 0xa91   :  { %2212 = vmatpush3.bf16.msra.mxu0 %v2209_v58 }
 0xb1d   :  { %v1558_v49 = vpop.xlane.xlu1 %1557 }
 0xb1e   :  { %v1561_v50 = vmul.f32 0.03125, %v1558_v49 }
 0xb20   :  { %v1563_v51 = vsub.f32 %v1550_v47, %v1561_v50 }
 0xb22   :  { %v1565_v52 = vmul.f32 %v1563_v51, %v1563_v51 }
 0xb24   :  { %v1569_v53 = vsel %vm75_vm0, %v1565_v52, 0.0 }
 0xb25   :  { %1570 = vadd.xlane.f32.xlu1 %v1569_v53 }
 0xbb2   :  { %v1571_v4 = vpop.xlane.xlu1 %1570 }
 0xbb3   :  { %v1573_v5 = vmul.f32 0.03125, %v1571_v4 }
 0xbb5   :  { %v1575_v6 = vadd.f32 1e-05, %v1573_v5 }
 0xbb7   :  { %2251 = vrsqrt.f32 %v1575_v6 }
 0xbc1   :  { %v2252_v7 = vpop.eup %2251 }
 0xbc2   :  { %v1579_v8 = vmul.f32 %v2252_v7, %v1563_v51  ;;  %v1900_v51 = vld [vmem:[%s2661_s16] ss:$0 sm:$0xff] }
 0xbc4   :  { %v1587_v9 = vmul.f32 %v1891_v36, %v1579_v8 }
 0xbc6   :  { %v1595_v10 = vadd.f32 %v1892_v38, %v1587_v9 }
 0xbc8   :  { %2124 = vmatmul.mubr.msk.f32.vlgmr.msra.gmra.mrb[18].mxu0 %vm75_vm0, %v1595_v10 }
 0xc9b   :  { %v2125_v16 = vpop.f32.mrb[18].mxu0 }
 0xc9c   :  { %v1685_v17 = vadd.f32 %v2125_v16, %v1893_v15  ;;  %v1679_v19 = vpop.f32.mrb[19].mxu0 }
 0xc9d   :  { %v1680_v21 = vadd.f32 %v1893_v15, %v1679_v19 }
 0xc9e   :  { %v1689_v23 = vmax.f32 %v1685_v17, 0.0 }
 0xc9f   :  { %v1688_v22 = vmax.f32 %v1680_v21, 0.0 }
 0xca1   :  { %2142 = vmatprep.mubr.msk.f32.mxu1 %vm1705_vm5, %v1688_v22 }
 0xca2   :  { %2143 = vmatmul.mubr.msk.f32.vlgmr.msra.gmra.mrb[18].mxu1 %vm1705_vm5, %v1689_v23 }
 0xd75   :  { %v2144_v26 = vpop.f32.mrb[18].mxu1 }
 0xd76   :  { %v1784_v27 = vadd.f32 %v2144_v26, %v1896_v25  ;;  %v1778_v41 = vpop.f32.mrb[19].mxu1 }
 0xd77   :  { %v1779_v28 = vadd.f32 %v1896_v25, %v1778_v41 }
 0xd78   :  { %v1788_v11 = vadd.f32 %v1784_v27, %v1595_v10 }
 0xd79   :  { %v1787_v29 = vadd.f32 %v1779_v28, %v2575_v20 }
 0xd7a   :  { %v1794_v30 = vsel %vm75_vm0, %v1788_v11, 0.0 }
 0xd7b   :  { %1795 = vadd.xlane.f32.xlu1 %v1794_v30  ;;  %v1791_v31 = vsel %vm75_vm0, %v1787_v29, 0.0 }
 0xd7c   :  { %1792 = vadd.xlane.f32.xlu0 %v1791_v31 }
 0xe08   :  { %v1796_v32 = vpop.xlane.xlu1 %1795 }
 0xe09   :  { %v1798_v33 = vmul.f32 0.03125, %v1796_v32  ;;  %v1793_v34 = vpop.xlane.xlu0 %1792 }
 0xe0a   :  { %v1797_v35 = vmul.f32 0.03125, %v1793_v34 }
 0xe0b   :  { %v1800_v36 = vsub.f32 %v1788_v11, %v1798_v33 }
 0xe0c   :  { %v1799_v37 = vsub.f32 %v1787_v29, %v1797_v35 }
 0xe0d   :  { %v1802_v38 = vmul.f32 %v1800_v36, %v1800_v36 }
 0xe0e   :  { %v1801_v39 = vmul.f32 %v1799_v37, %v1799_v37 }
 0xe0f   :  { %v1806_v40 = vsel %vm75_vm0, %v1802_v38, 0.0 }
 0xe10   :  { %1807 = vadd.xlane.f32.xlu1 %v1806_v40  ;;  %v1803_v24 = vsel %vm75_vm0, %v1801_v39, 0.0 }
 0xe11   :  { %1804 = vadd.xlane.f32.xlu0 %v1803_v24 }
 0xe9d   :  { %v1808_v20 = vpop.xlane.xlu1 %1807 }
 0xe9e   :  { %v1810_v42 = vmul.f32 0.03125, %v1808_v20  ;;  %v1805_v43 = vpop.xlane.xlu0 %1804 }
 0xe9f   :  { %v1809_v44 = vmul.f32 0.03125, %v1805_v43 }
 0xea0   :  { %v1812_v45 = vadd.f32 1e-05, %v1810_v42 }
 0xea1   :  { %v1811_v46 = vadd.f32 1e-05, %v1809_v44 }
 0xea2   :  { %2253 = vrsqrt.f32 %v1812_v45 }
 0xea3   :  { %2255 = vrsqrt.f32 %v1811_v46 }
 0xeac   :  { %v2254_v47 = vpop.eup %2253 }
 0xead   :  { %v2256_v49 = vpop.eup %2255  ;;  %v1816_v50 = vmul.f32 %v2254_v47, %v1800_v36 }
 0xeae   :  { %v1815_v52 = vmul.f32 %v2256_v49, %v1799_v37 }
 0xeaf   :  { %v1824_v53 = vmul.f32 %v1899_v48, %v1816_v50 }
 0xeb0   :  { %v1823_v54 = vmul.f32 %v1899_v48, %v1815_v52 }
 0xeb1   :  { %v1832_v55 = vadd.f32 %v1900_v51, %v1824_v53 }
 0xeb2   :  { %v1831_v56 = vadd.f32 %v1900_v51, %v1823_v54 }
 0xeb3   :  { %1834 = vst.msk [vmem:[%s2662_s17 + $0x8] sm:$0xff] %vm75_vm0, %v1832_v55 }
 0xeb4   :  { %1833 = vst.msk [vmem:[%s2662_s17] sm:$0xff] %vm75_vm0, %v1831_v56 }

// kernel: char_transformer_forward.9
= control target key start
LH: loop header
LB: loop body
LE: loop exit
PB: predicated region body
PF: predicated region fallthrough
CT: control target
= control target key end

     0   :  { %vm110_vm0 = vcmask 261120   ;;  %v4154_v20 = vmov 0.0   ;;  %vm4155_vm1 = vmmov 0   ;;  %vm366_vm2 = vcmask 130048   ;;  %s4836_s4 = inlined_call_operand.vmem [shape: f32[2,32,16], index: 4, kind: input, shape index: {}]   ;;  %s4837_s2 = inlined_call_operand.vmem [shape: f32[2,32,16], index: 2, kind: input, shape index: {}]   ;;  %s4838_s0 = inlined_call_operand.vmem [shape: f32[16,32], index: 0, kind: input, shape index: {}]   ;;  %s4839_s6 = inlined_call_operand.vmem [shape: f32[2,32,16], index: 6, kind: input, shape index: {}]   ;;  %s4840_s5 = inlined_call_operand.vmem [shape: f32[2,1,16], index: 5, kind: input, shape index: {}]   ;;  %s4841_s3 = inlined_call_operand.vmem [shape: f32[2,1,16], index: 3, kind: input, shape index: {}]   ;;  %s4842_s7 = inlined_call_operand.vmem [shape: f32[2,1,16], index: 7, kind: input, shape index: {}]   ;;  %s4843_s8 = inlined_call_operand.vmem [shape: f32[2,16,32], index: 8, kind: input, shape index: {}]   ;;  %s4844_s9 = inlined_call_operand.vmem [shape: f32[1,32], index: 9, kind: input, shape index: {}]   ;;  %s4845_s10 = inlined_call_operand.vmem [shape: f32[1,32], index: 10, kind: input, shape index: {}]   ;;  %s4846_s11 = inlined_call_operand.vmem [shape: f32[1,32], index: 11, kind: input, shape index: {}]   ;;  %s4847_s14 = inlined_call_operand.vmem [shape: f32[2,32,16], index: 14, kind: input, shape index: {}]   ;;  %s4848_s12 = inlined_call_operand.vmem [shape: f32[2,32,16], index: 12, kind: input, shape index: {}]   ;;  %s4849_s1 = inlined_call_operand.vmem [shape: f32[16,32], index: 1, kind: input, shape index: {}]   ;;  %s4850_s16 = inlined_call_operand.vmem [shape: f32[2,32,16], index: 16, kind: input, shape index: {}]   ;;  %s4851_s15 = inlined_call_operand.vmem [shape: f32[2,1,16], index: 15, kind: input, shape index: {}]   ;;  %s4852_s13 = inlined_call_operand.vmem [shape: f32[2,1,16], index: 13, kind: input, shape index: {}]   ;;  %s4853_s17 = inlined_call_operand.vmem [shape: f32[2,1,16], index: 17, kind: input, shape index: {}]   ;;  %s4854_s18 = inlined_call_operand.vmem [shape: f32[2,16,32], index: 18, kind: input, shape index: {}]   ;;  %s4855_s19 = inlined_call_operand.vmem [shape: f32[1,32], index: 19, kind: input, shape index: {}]   ;;  %s4856_s20 = inlined_call_operand.vmem [shape: f32[1,32], index: 20, kind: input, shape index: {}]   ;;  %s4857_s21 = inlined_call_operand.vmem [shape: f32[1,32], index: 21, kind: input, shape index: {}]   ;;  %s4858_s22 = inlined_call_operand.vmem [shape: f32[32,64], index: 22, kind: input, shape index: {}]   ;;  %s4859_s24 = inlined_call_operand.vmem [shape: f32[64,32], index: 24, kind: input, shape index: {}]   ;;  %s4860_s23 = inlined_call_operand.vmem [shape: f32[1,64], index: 23, kind: input, shape index: {}]   ;;  %s4861_s25 = inlined_call_operand.vmem [shape: f32[1,32], index: 25, kind: input, shape index: {}]   ;;  %s4862_s26 = inlined_call_operand.vmem [shape: f32[1,32], index: 26, kind: input, shape index: {}]   ;;  %s4863_s27 = inlined_call_operand.vmem [shape: f32[1,32], index: 27, kind: input, shape index: {}]   ;;  %s4864_s28 = inlined_call_operand.vmem [shape: f32[16,32], index: 28, kind: output, shape index: {}]  }
   0x1   :  { %4875 = sst [smem:[#allocation2_spill]] %s4836_s4  ;;  %v93_v36 = vlaneseq  ;;  %v4156_v40 = vmov -1e+30   ;;  %vm445_vm4 = vcmask 64512   ;;  %vm3270_vm5 = vcmask 523264  }
   0x2   :  { %4876 = sst [smem:[#allocation3_spill]] %s4837_s2 }
   0x3   :  { %4877 = sst [smem:[#allocation4_spill]] %s4838_s0  ;;  %s4889_s0 = sld [smem:[#allocation3_spill]]  ;;  %v94_v37 = vshrl.u32 %v93_v36, 7  ;;  %v96_v38 = vand.u32 127, %v93_v36 }
   0x4   :  { %4878 = sst [smem:[#allocation5_spill]] %s4839_s6 }
   0x5   :  { %4879 = sst [smem:[#allocation6_spill]] %s4840_s5  ;;  %s4891_s2 = sld [smem:[#allocation5_spill]]  ;;  %vm97_vm3 = vcmp.ge.s32.totalorder %v94_v37, %v96_v38 }
   0x6   :  { %4880 = sst [smem:[#allocation7_spill]] %s4841_s3  ;;  %v4388_v41 = vsel %vm97_vm3, 0.0, %v4156_v40 }
   0x7   :  { %4881 = sst [smem:[#allocation8_spill]] %s4842_s7 }
   0x8   :  { %4882 = sst [smem:[#allocation9_spill]] %s4843_s8 }
   0x9   :  { %4883 = sst [smem:[#allocation10_spill]] %s4844_s9  ;;  %v99_v2 = vld [vmem:[%s4889_s0] sm:$0xff]  ;;  %v100_v4 = vld [vmem:[%s4889_s0 + $0x8] sm:$0xff]  ;;  %v101_v9 = vld [vmem:[%s4889_s0 + $0x10] sm:$0xff]  ;;  %s4894_s9 = sld [smem:[#allocation8_spill]] }
   0xa   :  { %4884 = sst [smem:[#allocation11_spill]] %s4845_s10  ;;  %s4888_s10 = sld [smem:[#allocation2_spill]]  ;;  %v3962_v7 = vpack.c.bf16 %v100_v4, %v99_v2  ;;  %v102_v10 = vld [vmem:[%s4889_s0 + $0x18] sm:$0xff]  ;;  %v3419_v61 = vld [vmem:[%s4889_s0 + $0x20] sm:$0xff]  ;;  %v3420_v62 = vld [vmem:[%s4889_s0 + $0x28] sm:$0xff] }
   0xb   :  { %4885 = sst [smem:[#allocation12_spill]] %s4846_s11  ;;  %v3966_v12 = vpack.c.bf16 %v102_v10, %v101_v9  ;;  %v278_v13 = vld [vmem:[%s4891_s2] sm:$0xff]  ;;  %v279_v14 = vld [vmem:[%s4891_s2 + $0x8] sm:$0xff]  ;;  %v280_v16 = vld [vmem:[%s4891_s2 + $0x10] sm:$0xff]  ;;  %v3986_v63 = vpack.c.bf16 %v3420_v62, %v3419_v61  ;;  %s4895_s3 = sld [smem:[#allocation9_spill]] }
   0xc   :  { %4886 = sst [smem:[#allocation13_spill]] %s4847_s14  ;;  %s4890_s11 = sld [smem:[#allocation4_spill]]  ;;  %3963 = vmatprep.subr.bf16.mxu0 %v3962_v7  ;;  %v3978_v15 = vpack.c.bf16 %v279_v14, %v278_v13  ;;  %v281_v17 = vld [vmem:[%s4891_s2 + $0x18] sm:$0xff] }
   0xd   :  { %4887 = sst [smem:[#allocation14_spill]] %s4848_s12  ;;  %3965 = vmatpush3.bf16.msra.mxu0 %v3962_v7  ;;  %v3982_v19 = vpack.c.bf16 %v281_v17, %v280_v16  ;;  %s4893_s12 = sld [smem:[#allocation7_spill]]  ;;  %v3438_v36 = vld [vmem:[%s4891_s2 + $0x38] sm:$0xff] }
   0xe   :  { %3967 = vmatprep.subr.bf16.mxu0 %v3966_v12  ;;  %s4892_s14 = sld [smem:[#allocation6_spill]]  ;;  %s4896_s7 = sld [smem:[#allocation10_spill]] }
   0xf   :  { %v3410_v30 = vld [vmem:[%s4894_s9] ss:$0 sm:$0xff]  ;;  %s4897_s29 = sld [smem:[#allocation11_spill]] }
  0x10   :  { %v192_v0 = vld [vmem:[%s4888_s10] sm:$0xff]  ;;  %v193_v1 = vld [vmem:[%s4888_s10 + $0x8] sm:$0xff]  ;;  %v194_v5 = vld [vmem:[%s4888_s10 + $0x10] sm:$0xff] }
  0x11   :  { %v3970_v3 = vpack.c.bf16 %v193_v1, %v192_v0  ;;  %v195_v6 = vld [vmem:[%s4888_s10 + $0x18] sm:$0xff]  ;;  %3969 = vmatpush3.bf16.msra.mxu0 %v3966_v12  ;;  %v3421_v0 = vld [vmem:[%s4889_s0 + $0x30] sm:$0xff] }
  0x12   :  { %v3974_v8 = vpack.c.bf16 %v195_v6, %v194_v5  ;;  %v4330_v11 = vld [vmem:[%s4890_s11] sm:$0xff]  ;;  %v4351_v18 = vld [vmem:[%s4890_s11 + $0x8] sm:$0xff]  ;;  %3979 = vmatprep.subr.bf16.mxu0 %v3978_v15  ;;  %v3422_v1 = vld [vmem:[%s4889_s0 + $0x38] sm:$0xff]  ;;  %s4900_s0 = sld [smem:[#allocation14_spill]] }
  0x13   :  { %3971 = vmatprep.subr.bf16.mxu1 %v3970_v3  ;;  %3683 = vmatprep.mubr.msk.f32.mxu1 %vm110_vm0, %v4330_v11  ;;  %v3404_v23 = vld [vmem:[%s4893_s12] ss:$0 sm:$0xff]  ;;  %v3990_v2 = vpack.c.bf16 %v3422_v1, %v3421_v0  ;;  %v3428_v6 = vld [vmem:[%s4888_s10 + $0x28] sm:$0xff]  ;;  %v3429_v10 = vld [vmem:[%s4888_s10 + $0x30] sm:$0xff] }
  0x14   :  { %3973 = vmatpush3.bf16.msra.mxu1 %v3970_v3  ;;  %3672 = vmatprep.mubr.msk.f32.mxu0 %vm110_vm0, %v4330_v11  ;;  %v3407_v21 = vld [vmem:[%s4892_s14] ss:$0 sm:$0xff]  ;;  %v3430_v12 = vld [vmem:[%s4888_s10 + $0x38] sm:$0xff]  ;;  %v3424_v17 = vld [vmem:[%s4893_s12 + $0x1] ss:$0 sm:$0xff] }
  0x15   :  { %3975 = vmatprep.subr.bf16.mxu1 %v3974_v8  ;;  %3673 = vmatmul.mubr.msk.f32.vlgmr.msra.gmra.mrb[0].mxu0 %vm110_vm0, %v4351_v18  ;;  %v3427_v5 = vld [vmem:[%s4888_s10 + $0x20] sm:$0xff] }
  0x16   :  { %3981 = vmatpush3.bf16.msra.mxu0 %v3978_v15  ;;  %3694 = vmatprep.mubr.msk.f32.mxu0 %vm110_vm0, %v4330_v11  ;;  %v3994_v9 = vpack.c.bf16 %v3428_v6, %v3427_v5  ;;  %v3998_v15 = vpack.c.bf16 %v3430_v12, %v3429_v10 }
  0x17   :  { %3983 = vmatprep.subr.bf16.mxu0 %v3982_v19 }
  0x18   :  { %3977 = vmatpush3.bf16.msra.mxu1 %v3974_v8 }
  0x19   :  { %3702 = vmatprep.subr.mxu1 %v4154_v20 }
  0x1a   :  { %3985 = vmatpush3.bf16.msra.mxu0 %v3982_v19 }
  0x1b   :  { %3684 = vmatmul.mubr.msk.f32.vlgmr.msra.gmra.mrb[0].mxu1 %vm110_vm0, %v4351_v18  ;;  %3697 = vmatprep.subr.mxu0 %v4154_v20 }
  0x1c   :  { %3704 = vmatprep.mubr.msk.f32.mxu1 %vm4155_vm1, %v4154_v20 }
  0x1d   :  { %3695 = vmatmul.mubr.msk.f32.vlgmr.msra.gmra.mrb[2].mxu0 %vm110_vm0, %v4351_v18 }
  0x1e   :  { %3699 = vmatprep.mubr.msk.f32.mxu0 %vm4155_vm1, %v4154_v20 }
  0xe8   :  { %v3674_v25 = vpop.f32.mrb[0].mxu0 }
  0xe9   :  { %v183_v27 = vpop.f32.mrb[1].mxu0  ;;  %v189_v31 = vadd.f32 %v3674_v25, %v3404_v23 }
  0xea   :  { %v184_v28 = vadd.f32 %v3404_v23, %v183_v27 }
  0xee   :  { %v3685_v22 = vpop.f32.mrb[0].mxu1 }
  0xef   :  { %v269_v24 = vpop.f32.mrb[1].mxu1  ;;  %v275_v29 = vadd.f32 %v3685_v22, %v3407_v21 }
  0xf0   :  { %v270_v26 = vadd.f32 %v3407_v21, %v269_v24  ;;  %v3696_v32 = vpop.f32.mrb[2].mxu0 }
  0xf1   :  { %v4382_v33 = vadd.f32 %v3696_v32, %v3410_v30  ;;  %v355_v34 = vpop.f32.mrb[3].mxu0  ;;  %v3435_v32 = vld [vmem:[%s4891_s2 + $0x20] sm:$0xff] }
  0xf2   :  { %3698 = vmatpush3.xpose.msk.msra.mxu0 %vm366_vm2, %v270_v26  ;;  %v356_v35 = vadd.f32 %v3410_v30, %v355_v34  ;;  %v3432_v26 = vld [vmem:[%s4892_s14 + $0x1] ss:$0 sm:$0xff]  ;;  %v3437_v34 = vld [vmem:[%s4891_s2 + $0x30] sm:$0xff] }
  0xf3   :  { %3707 = vmatprep.subr.mxu0 %v4154_v20  ;;  %v4006_v37 = vpack.c.bf16 %v3438_v36, %v3437_v34  ;;  %v4528_v36 = vld [vmem:[%s4897_s29] ss:$0 sm:$0xff] }
  0xf4   :  { %3703 = vmatpush3.msra.mxu1 %v356_v35 }
  0xf5   :  { %3700 = vmatmul.mubr.msk.f32.vlgmr.msra.gmra.mrb[4].mxu0 %vm366_vm2, %v184_v28  ;;  %3712 = vmatprep.subr.mxu1 %v4154_v20 }
  0xf6   :  { %3708 = vmatpush3.xpose.msk.msra.mxu0 %vm366_vm2, %v275_v29  ;;  %3709 = vmatprep.mubr.msk.f32.mxu0 %vm4155_vm1, %v4154_v20 }
  0xf7   :  { %3987 = vmatprep.subr.bf16.mxu0 %v3986_v63 }
  0xf9   :  { %3710 = vmatmul.mubr.msk.f32.vlgmr.msra.gmra.mrb[6].mxu0 %vm366_vm2, %v189_v31 }
  0xfa   :  { %3725 = vmatprep.mubr.msk.f32.mxu0 %vm110_vm0, %v4330_v11  ;;  %3989 = vmatpush3.bf16.msra.mxu0 %v3986_v63 }
  0xfb   :  { %3991 = vmatprep.subr.bf16.mxu0 %v3990_v2 }
  0xfe   :  { %3993 = vmatpush3.bf16.msra.mxu0 %v3990_v2 }
 0x101   :  { %3726 = vmatmul.mubr.msk.f32.vlgmr.msra.gmra.mrb[8].mxu0 %vm110_vm0, %v4351_v18 }
 0x102   :  { %3747 = vmatprep.mubr.msk.f32.mxu0 %vm110_vm0, %v4330_v11 }
 0x1c8   :  { %v439_v39 = vpop.f32.mrb[4].mxu0 }
 0x1c9   :  { %v443_v42 = vmul.f32 0.25, %v439_v39  ;;  %v3701_v43 = vpop.f32.mrb[5].mxu0 }
 0x1cb   :  { %v444_v44 = vadd.f32 %v443_v42, %v4388_v41 }
 0x1cc   :  { %v602_v45 = vpop.f32.mrb[6].mxu0 }
 0x1cd   :  { %v606_v46 = vmul.f32 0.25, %v602_v45  ;;  %v3711_v47 = vpop.f32.mrb[7].mxu0  ;;  %v446_v48 = vsel %vm445_vm4, %v444_v44, -inf }
 0x1ce   :  { %447 = vmax.xlane.f32.xlu0 %v446_v48 }
 0x1cf   :  { %v607_v49 = vadd.f32 %v606_v46, %v4388_v41 }
 0x1d1   :  { %v608_v50 = vsel %vm445_vm4, %v607_v49, -inf }
 0x1d2   :  { %609 = vmax.xlane.f32.xlu0 %v608_v50  ;;  %v3440_v50 = vld [vmem:[%s4894_s9 + $0x1] ss:$0 sm:$0xff]  ;;  %s4899_s9 = sld [smem:[#allocation13_spill]] }
 0x1d4   :  { %v3727_v16 = vpop.f32.mrb[8].mxu0 }
 0x1d5   :  { %v4439_v19 = vadd.f32 %v3727_v16, %v3424_v17  ;;  %v771_v21 = vpop.f32.mrb[9].mxu0 }
 0x1d6   :  { %v772_v31 = vadd.f32 %v3424_v17, %v771_v21 }
 0x25b   :  { %v448_v51 = vpop.xlane.xlu0 %447 }
 0x25c   :  { %v449_v52 = vsub.f32 %v444_v44, %v448_v51 }
 0x25e   :  { %v450_v53 = vmul.f32 1.442695, %v449_v52 }
 0x25f   :  { %v610_v54 = vpop.xlane.xlu0 %609 }
 0x260   :  { %4110 = vpow2.f32 %v450_v53  ;;  %v611_v55 = vsub.f32 %v607_v49, %v610_v54  ;;  %v4157_v54 = vmov 0.0|0.0  }
 0x262   :  { %v612_v56 = vmul.f32 1.442695, %v611_v55  ;;  %v3443_v55 = vld [vmem:[%s4895_s3 + $0x10] sm:$0xff] }
 0x264   :  { %4112 = vpow2.f32 %v612_v56  ;;  %v3444_v56 = vld [vmem:[%s4895_s3 + $0x18] sm:$0xff] }
 0x26a   :  { %v4111_v57 = vpop.eup %4110 }
 0x26b   :  { %v452_v58 = vsel %vm445_vm4, %v4111_v57, 0.0 }
 0x26c   :  { %453 = vadd.xlane.f32.xlu1 %v452_v58 }
 0x26e   :  { %v4113_v59 = vpop.eup %4112 }
 0x26f   :  { %v614_v60 = vsel %vm445_vm4, %v4113_v59, 0.0 }
 0x270   :  { %615 = vadd.xlane.f32.xlu1 %v614_v60  ;;  %v365_v60 = vld [vmem:[%s4895_s3 + $0x8] sm:$0xff] }
 0x2f9   :  { %v454_v3 = vpop.xlane.xlu1 %453 }
 0x2fa   :  { %4114 = vrcp.f32 %v454_v3 }
 0x2fd   :  { %v616_v4 = vpop.xlane.xlu1 %615 }
 0x2fe   :  { %4116 = vrcp.f32 %v616_v4 }
 0x304   :  { %v4115_v7 = vpop.eup %4114 }
 0x305   :  { %v456_v8 = vmul.f32 %v4115_v7, %v4111_v57  ;;  %v4011_v57 = vpack.c.bf16 %v3444_v56, %v3443_v55  ;;  %v3455_v7 = vld [vmem:[%s4896_s7] ss:$0 sm:$0xff] }
 0x306   :  { %v1723_v56 = vld [vmem:[%s4899_s9] sm:$0xff] }
 0x307   :  { %3705 = vmatmul.mubr.msk.f32.vlgmr.msra.gmra.mrb[2].mxu1 %vm445_vm4, %v456_v8 }
 0x308   :  { %v4117_v13 = vpop.eup %4116  ;;  %3713 = vmatpush3.msra.mxu1 %v4382_v33  ;;  %3714 = vmatprep.mubr.msk.f32.mxu1 %vm4155_vm1, %v4154_v20  ;;  %v3436_v33 = vld [vmem:[%s4891_s2 + $0x28] sm:$0xff] }
 0x309   :  { %v618_v14 = vmul.f32 %v4117_v13, %v4113_v59  ;;  %3995 = vmatprep.subr.bf16.mxu1 %v3994_v9  ;;  %v4002_v35 = vpack.c.bf16 %v3436_v33, %v3435_v32  ;;  %v364_v59 = vld [vmem:[%s4895_s3] sm:$0xff]  ;;  %s4898_s3 = sld [smem:[#allocation12_spill]] }
 0x30a   :  { %v4014_v62 = vpack.c.bf16 %v365_v60, %v364_v59  ;;  %v1632_v59 = vld [vmem:[%s4900_s0 + $0x8] sm:$0xff]  ;;  %v1725_v60 = vld [vmem:[%s4899_s9 + $0x10] sm:$0xff] }
 0x30b   :  { %3715 = vmatmul.mubr.msk.f32.vlgmr.msra.gmra.mrb[4].mxu1 %vm445_vm4, %v618_v14  ;;  %4003 = vmatprep.subr.bf16.mxu0 %v4002_v35 }
 0x30c   :  { %3997 = vmatpush3.bf16.msra.mxu1 %v3994_v9  ;;  %3736 = vmatprep.mubr.msk.f32.mxu1 %vm110_vm0, %v4330_v11 }
 0x30d   :  { %3999 = vmatprep.subr.bf16.mxu1 %v3998_v15  ;;  %4005 = vmatpush3.bf16.msra.mxu0 %v4002_v35 }
 0x30e   :  { %4007 = vmatprep.subr.bf16.mxu0 %v4006_v37 }
 0x310   :  { %4001 = vmatpush3.bf16.msra.mxu1 %v3998_v15 }
 0x311   :  { %3750 = vmatprep.subr.mxu1 %v4154_v20  ;;  %4009 = vmatpush3.bf16.msra.mxu0 %v4006_v37 }
 0x312   :  { %4010 = vmatprep.subr.bf16.mxu0 %v4157_v54 }
 0x313   :  { %3737 = vmatmul.mubr.msk.f32.vlgmr.msra.gmra.mrb[6].mxu1 %vm110_vm0, %v4351_v18 }
 0x314   :  { %3752 = vmatprep.mubr.msk.f32.mxu1 %vm4155_vm1, %v4154_v20  ;;  %3748 = vmatmul.mubr.msk.f32.vlgmr.msra.gmra.mrb[10].mxu0 %vm110_vm0, %v4351_v18 }
 0x315   :  { %3764 = vmatprep.mubr.msk.f32.mxu0 %vm4155_vm1, %v4154_v20  ;;  %4012 = vmatpush3.bf16.msra.mxu0 %v4011_v57 }
 0x316   :  { %3774 = vmatprep.subr.mxu0 %v4154_v20 }
 0x3da   :  { %v4441_v22 = vpop.f32.mrb[2].mxu1 }
 0x3db   :  { %v3706_v23 = vpop.f32.mrb[3].mxu1 }
 0x3de   :  { %v4443_v24 = vpop.f32.mrb[4].mxu1 }
 0x3df   :  { %v3716_v25 = vpop.f32.mrb[5].mxu1 }
 0x3e6   :  { %v3738_v27 = vpop.f32.mrb[6].mxu1 }
 0x3e7   :  { %v4448_v28 = vadd.f32 %v3738_v27, %v3432_v26  ;;  %v859_v29 = vpop.f32.mrb[7].mxu1  ;;  %v3749_v49 = vpop.f32.mrb[10].mxu0 }
 0x3e8   :  { %v860_v30 = vadd.f32 %v3432_v26, %v859_v29  ;;  %v947_v51 = vpop.f32.mrb[11].mxu0  ;;  %v953_v52 = vadd.f32 %v3749_v49, %v3440_v50 }
 0x3e9   :  { %v948_v53 = vadd.f32 %v3440_v50, %v947_v51 }
 0x3ea   :  { %3751 = vmatpush3.xpose.msk.msra.mxu1 %vm366_vm2, %v860_v30 }
 0x3eb   :  { %3755 = vmatprep.subr.mxu1 %v4154_v20 }
 0x3ed   :  { %3753 = vmatmul.mubr.msk.f32.vlgmr.msra.gmra.mrb[8].mxu1 %vm366_vm2, %v772_v31 }
 0x3ee   :  { %3757 = vmatprep.mubr.msk.f32.mxu1 %vm4155_vm1, %v4154_v20  ;;  %3756 = vmatpush3.msra.mxu1 %v948_v53 }
 0x3ef   :  { %4013 = vmatprep.subr.bf16.mxu1 %v4157_v54 }
 0x4c0   :  { %v1031_v38 = vpop.f32.mrb[8].mxu1 }
 0x4c1   :  { %v1035_v39 = vmul.f32 0.25, %v1031_v38  ;;  %v3754_v40 = vpop.f32.mrb[9].mxu1  ;;  %v4534_v38 = vld [vmem:[%s4898_s3] ss:$0 sm:$0xff] }
 0x4c3   :  { %v1036_v42 = vadd.f32 %v1035_v39, %v4388_v41 }
 0x4c5   :  { %v1037_v43 = vsel %vm445_vm4, %v1036_v42, -inf }
 0x4c6   :  { %1038 = vmax.xlane.f32.xlu0 %v1037_v43 }
 0x553   :  { %v1039_v44 = vpop.xlane.xlu0 %1038 }
 0x554   :  { %v1040_v45 = vsub.f32 %v1036_v42, %v1039_v44 }
 0x556   :  { %v1041_v46 = vmul.f32 1.442695, %v1040_v45 }
 0x558   :  { %4118 = vpow2.f32 %v1041_v46 }
 0x562   :  { %v4119_v47 = vpop.eup %4118 }
 0x563   :  { %v1043_v48 = vsel %vm445_vm4, %v4119_v47, 0.0 }
 0x564   :  { %1044 = vadd.xlane.f32.xlu1 %v1043_v48 }
 0x5f1   :  { %v1045_v58 = vpop.xlane.xlu1 %1044 }
 0x5f2   :  { %4120 = vrcp.f32 %v1045_v58 }
 0x5fc   :  { %v4121_v61 = vpop.eup %4120 }
 0x5fd   :  { %v1047_v63 = vmul.f32 %v4121_v61, %v4119_v47 }
 0x5ff   :  { %3758 = vmatmul.mubr.msk.f32.vlgmr.msra.gmra.mrb[10].mxu1 %vm445_vm4, %v1047_v63 }
 0x600   :  { %4015 = vmatpush3.bf16.msra.mxu1 %v4014_v62  ;;  %3771 = vmatprep.mubr.msk.f32.mxu1 %vm4155_vm1, %v4154_v20 }
 0x601   :  { %3779 = vmatprep.subr.mxu1 %v4154_v20 }
 0x603   :  { %3772 = vmatmul.mubr.msk.f32.vlgmr.msra.gmra.mrb[12].mxu1 %vm366_vm2, %v4441_v22 }
 0x604   :  { %3780 = vmatpush3.msra.mxu1 %v953_v52  ;;  %3781 = vmatprep.mubr.msk.f32.mxu1 %vm4155_vm1, %v4154_v20 }
 0x605   :  { %4019 = vmatprep.subr.bf16.mxu1 %v4157_v54 }
 0x6d2   :  { %v1117_v0 = vpop.f32.mrb[10].mxu1 }
 0x6d3   :  { %v3759_v1 = vpop.f32.mrb[11].mxu1  ;;  %3765 = vmatmul.mubr.msk.f32.vlgmr.msra.gmra.mrb[12].mxu0 %vm366_vm2, %v1117_v0  ;;  %v1633_v0 = vld [vmem:[%s4900_s0 + $0x10] sm:$0xff] }
 0x6d4   :  { %3775 = vmatpush3.xpose.msk.msra.mxu0 %vm366_vm2, %v4448_v28  ;;  %3776 = vmatprep.mubr.msk.f32.mxu0 %vm4155_vm1, %v4154_v20  ;;  %v1634_v1 = vld [vmem:[%s4900_s0 + $0x18] sm:$0xff] }
 0x6d5   :  { %4016 = vmatprep.subr.bf16.mxu0 %v4157_v54 }
 0x6d6   :  { %v1263_v2 = vpop.f32.mrb[12].mxu1 }
 0x6d7   :  { %v3773_v3 = vpop.f32.mrb[13].mxu1  ;;  %3777 = vmatmul.mubr.msk.f32.vlgmr.msra.gmra.mrb[14].mxu0 %vm366_vm2, %v4439_v19 }
 0x6d8   :  { %4018 = vmatpush3.bf16.msra.mxu0 %v4011_v57  ;;  %3788 = vmatprep.mubr.msk.f32.mxu0 %vm4155_vm1, %v4154_v20  ;;  %v1724_v57 = vld [vmem:[%s4899_s9 + $0x8] sm:$0xff] }
 0x6d9   :  { %v4030_v58 = vpack.c.bf16 %v1724_v57, %v1723_v56  ;;  %v4577_v3 = vld [vmem:[%s4849_s1 + $0x8] sm:$0xff] }
 0x7a6   :  { %v1190_v4 = vpop.f32.mrb[12].mxu0 }
 0x7a7   :  { %v1264_v5 = vadd.f32 %v1263_v2, %v1190_v4  ;;  %v3766_v6 = vpop.f32.mrb[13].mxu0  ;;  %v4572_v2 = vld [vmem:[%s4849_s1] sm:$0xff]  ;;  %v4026_v4 = vpack.c.bf16 %v1634_v1, %v1633_v0 }
 0x7a8   :  { %v1816_v6 = vld [vmem:[%s4850_s16 + $0x8] sm:$0xff] }
 0x7a9   :  { %v1582_v9 = vadd.f32 %v3455_v7, %v1264_v5  ;;  %v1815_v5 = vld [vmem:[%s4850_s16] sm:$0xff] }
 0x7aa   :  { %v1339_v8 = vpop.f32.mrb[14].mxu0 }
 0x7ab   :  { %v1343_v10 = vmul.f32 0.25, %v1339_v8  ;;  %v3778_v12 = vpop.f32.mrb[15].mxu0  ;;  %v1584_v15 = vadd.f32 %v1582_v9, %v4330_v11 }
 0x7ad   :  { %v1344_v13 = vadd.f32 %v1343_v10, %v4388_v41  ;;  %v1588_v16 = vsel %vm110_vm0, %v1584_v15, 0.0 }
 0x7af   :  { %v1345_v14 = vsel %vm445_vm4, %v1344_v13, -inf }
 0x7b0   :  { %1346 = vmax.xlane.f32.xlu0 %v1345_v14  ;;  %v1817_v14 = vld [vmem:[%s4850_s16 + $0x10] sm:$0xff] }
 0x7b4   :  { %1589 = vadd.xlane.f32.xlu0 %v1588_v16 }
 0x83d   :  { %v1347_v17 = vpop.xlane.xlu0 %1346 }
 0x83e   :  { %v1348_v19 = vsub.f32 %v1344_v13, %v1347_v17 }
 0x840   :  { %v1349_v21 = vmul.f32 1.442695, %v1348_v19 }
 0x841   :  { %v1590_v22 = vpop.xlane.xlu0 %1589 }
 0x842   :  { %4122 = vpow2.f32 %v1349_v21  ;;  %v1595_v23 = vmul.f32 0.03125, %v1590_v22  ;;  %v3461_v21 = vld [vmem:[%s4851_s15] ss:$0 sm:$0xff] }
 0x844   :  { %v1597_v25 = vsub.f32 %v1584_v15, %v1595_v23  ;;  %v1818_v15 = vld [vmem:[%s4850_s16 + $0x18] sm:$0xff] }
 0x845   :  { %v4042_v19 = vpack.c.bf16 %v1818_v15, %v1817_v14 }
 0x846   :  { %v1599_v26 = vmul.f32 %v1597_v25, %v1597_v25 }
 0x848   :  { %v1601_v27 = vsel %vm110_vm0, %v1599_v26, 0.0 }
 0x849   :  { %1602 = vadd.xlane.f32.xlu0 %v1601_v27  ;;  %v3473_v27 = vld [vmem:[%s4900_s0 + $0x20] sm:$0xff] }
 0x84c   :  { %v4123_v41 = vpop.eup %4122 }
 0x84d   :  { %v1351_v28 = vsel %vm445_vm4, %v4123_v41, 0.0 }
 0x84e   :  { %1352 = vadd.xlane.f32.xlu1 %v1351_v28 }
 0x8d6   :  { %v1603_v31 = vpop.xlane.xlu0 %1602 }
 0x8d7   :  { %v1607_v32 = vmul.f32 0.03125, %v1603_v31 }
 0x8d9   :  { %v1609_v33 = vadd.f32 1e-05, %v1607_v32 }
 0x8db   :  { %v1353_v11 = vpop.xlane.xlu1 %1352 }
 0x8dc   :  { %4124 = vrcp.f32 %v1353_v11  ;;  %v3458_v11 = vld [vmem:[%s4852_s13] ss:$0 sm:$0xff] }
 0x8dd   :  { %4126 = vrsqrt.f32 %v1609_v33 }
 0x8e6   :  { %v4125_v29 = vpop.eup %4124 }
 0x8e7   :  { %v1355_v30 = vmul.f32 %v4125_v29, %v4123_v41  ;;  %v4127_v34 = vpop.eup %4126  ;;  %v3474_v41 = vld [vmem:[%s4900_s0 + $0x28] sm:$0xff]  ;;  %v3475_v29 = vld [vmem:[%s4900_s0 + $0x30] sm:$0xff] }
 0x8e8   :  { %v1613_v35 = vmul.f32 %v4127_v34, %v1597_v25  ;;  %v4046_v28 = vpack.c.bf16 %v3474_v41, %v3473_v27  ;;  %v3489_v41 = vld [vmem:[%s4850_s16 + $0x20] sm:$0xff] }
 0x8e9   :  { %3782 = vmatmul.mubr.msk.f32.vlgmr.msra.gmra.mrb[14].mxu1 %vm445_vm4, %v1355_v30  ;;  %v3476_v30 = vld [vmem:[%s4900_s0 + $0x38] sm:$0xff] }
 0x8ea   :  { %4021 = vmatpush3.bf16.msra.mxu1 %v4014_v62  ;;  %3795 = vmatprep.mubr.msk.f32.mxu1 %vm4155_vm1, %v4154_v20  ;;  %v1621_v37 = vmul.f32 %v4528_v36, %v1613_v35  ;;  %v1726_v62 = vld [vmem:[%s4899_s9 + $0x18] sm:$0xff]  ;;  %v4050_v34 = vpack.c.bf16 %v3476_v30, %v3475_v29 }
 0x8eb   :  { %4031 = vmatprep.subr.bf16.mxu1 %v4030_v58  ;;  %v4034_v63 = vpack.c.bf16 %v1726_v62, %v1725_v60  ;;  %v3492_v30 = vld [vmem:[%s4850_s16 + $0x38] sm:$0xff] }
 0x8ed   :  { %3796 = vmatmul.mubr.msk.f32.vlgmr.msra.gmra.mrb[16].mxu1 %vm366_vm2, %v4443_v24  ;;  %v4537_v24 = vadd.f32 %v4534_v38, %v1621_v37 }
 0x8ee   :  { %4033 = vmatpush3.bf16.msra.mxu1 %v4030_v58  ;;  %3817 = vmatprep.mubr.msk.f32.mxu1 %vm110_vm0, %v4572_v2 }
 0x8ef   :  { %4035 = vmatprep.subr.bf16.mxu1 %v4034_v63 }
 0x8f2   :  { %4037 = vmatpush3.bf16.msra.mxu1 %v4034_v63 }
 0x8f3   :  { %3831 = vmatprep.subr.mxu1 %v4154_v20 }
 0x8f5   :  { %3818 = vmatmul.mubr.msk.f32.vlgmr.msra.gmra.mrb[18].mxu1 %vm110_vm0, %v4577_v3 }
 0x8f6   :  { %3833 = vmatprep.mubr.msk.f32.mxu1 %vm4155_vm1, %v4154_v20 }
 0x9bc   :  { %v1425_v39 = vpop.f32.mrb[14].mxu1 }
 0x9bd   :  { %v3783_v40 = vpop.f32.mrb[15].mxu1  ;;  %3789 = vmatmul.mubr.msk.f32.vlgmr.msra.gmra.mrb[16].mxu0 %vm366_vm2, %v1425_v39 }
 0x9be   :  { %3806 = vmatprep.mubr.msk.f32.mxu0 %vm110_vm0, %v4537_v24 }
 0x9c0   :  { %v1571_v42 = vpop.f32.mrb[16].mxu1 }
 0x9c1   :  { %v3797_v43 = vpop.f32.mrb[17].mxu1 }
 0x9c8   :  { %v3819_v22 = vpop.f32.mrb[18].mxu1 }
 0x9c9   :  { %v1812_v23 = vadd.f32 %v3819_v22, %v3461_v21  ;;  %v1806_v25 = vpop.f32.mrb[19].mxu1 }
 0x9ca   :  { %v1807_v26 = vadd.f32 %v3461_v21, %v1806_v25 }
 0x9cc   :  { %3832 = vmatpush3.xpose.msk.msra.mxu1 %vm366_vm2, %v1807_v26 }
 0x9cd   :  { %3836 = vmatprep.subr.mxu1 %v4154_v20 }
 0xa90   :  { %v1498_v44 = vpop.f32.mrb[16].mxu0 }
 0xa91   :  { %v1572_v45 = vadd.f32 %v1571_v42, %v1498_v44  ;;  %v3790_v46 = vpop.f32.mrb[17].mxu0 }
 0xa93   :  { %v1583_v47 = vadd.f32 %v3455_v7, %v1572_v45  ;;  %v4038_v7 = vpack.c.bf16 %v1816_v6, %v1815_v5  ;;  %v3482_v5 = vld [vmem:[%s4899_s9 + $0x28] sm:$0xff] }
 0xa95   :  { %v1585_v48 = vadd.f32 %v1583_v47, %v4351_v18  ;;  %v1631_v18 = vld [vmem:[%s4900_s0] sm:$0xff] }
 0xa96   :  { %v4022_v61 = vpack.c.bf16 %v1632_v59, %v1631_v18 }
 0xa97   :  { %v1591_v49 = vsel %vm110_vm0, %v1585_v48, 0.0 }
 0xa98   :  { %1592 = vadd.xlane.f32.xlu1 %v1591_v49  ;;  %4023 = vmatprep.subr.bf16.mxu0 %v4022_v61 }
 0xa99   :  { %4025 = vmatpush3.bf16.msra.mxu0 %v4022_v61 }
 0xa9a   :  { %4027 = vmatprep.subr.bf16.mxu0 %v4026_v4 }
 0xa9d   :  { %4029 = vmatpush3.bf16.msra.mxu0 %v4026_v4  ;;  %v3481_v4 = vld [vmem:[%s4899_s9 + $0x20] sm:$0xff] }
 0xa9e   :  { %4039 = vmatprep.subr.bf16.mxu0 %v4038_v7 }
 0xb25   :  { %v1593_v50 = vpop.xlane.xlu1 %1592 }
 0xb26   :  { %v1596_v51 = vmul.f32 0.03125, %v1593_v50  ;;  %v3478_v50 = vld [vmem:[%s4852_s13 + $0x1] ss:$0 sm:$0xff] }
 0xb28   :  { %v1598_v52 = vsub.f32 %v1585_v48, %v1596_v51 }
 0xb2a   :  { %v1600_v53 = vmul.f32 %v1598_v52, %v1598_v52 }
 0xb2c   :  { %v1604_v55 = vsel %vm110_vm0, %v1600_v53, 0.0 }
 0xb2d   :  { %1605 = vadd.xlane.f32.xlu1 %v1604_v55 }
 0xbba   :  { %v1606_v8 = vpop.xlane.xlu1 %1605 }
 0xbbb   :  { %v1608_v9 = vmul.f32 0.03125, %v1606_v8  ;;  %v4054_v8 = vpack.c.bf16 %v3482_v5, %v3481_v4 }
 0xbbd   :  { %v1610_v10 = vadd.f32 1e-05, %v1608_v9 }
 0xbbf   :  { %4128 = vrsqrt.f32 %v1610_v10  ;;  %v3483_v10 = vld [vmem:[%s4899_s9 + $0x30] sm:$0xff] }
 0xbc9   :  { %v4129_v12 = vpop.eup %4128 }
 0xbca   :  { %v1614_v13 = vmul.f32 %v4129_v12, %v1598_v52  ;;  %v3484_v12 = vld [vmem:[%s4899_s9 + $0x38] sm:$0xff] }
 0xbcb   :  { %v4058_v14 = vpack.c.bf16 %v3484_v12, %v3483_v10 }
 0xbcc   :  { %v1622_v16 = vmul.f32 %v4528_v36, %v1614_v13  ;;  %v3464_v36 = vld [vmem:[%s4853_s17] ss:$0 sm:$0xff] }
 0xbce   :  { %v4600_v17 = vadd.f32 %v4534_v38, %v1622_v16 }
 0xbd0   :  { %3807 = vmatmul.mubr.msk.f32.vlgmr.msra.gmra.mrb[18].mxu0 %vm110_vm0, %v4600_v17 }
 0xbd1   :  { %4041 = vmatpush3.bf16.msra.mxu0 %v4038_v7  ;;  %3828 = vmatprep.mubr.msk.f32.mxu0 %vm110_vm0, %v4572_v2 }
 0xbd2   :  { %4043 = vmatprep.subr.bf16.mxu0 %v4042_v19 }
 0xbd5   :  { %4045 = vmatpush3.bf16.msra.mxu0 %v4042_v19 }
 0xbd6   :  { %3841 = vmatprep.subr.mxu0 %v4154_v20 }
 0xbd8   :  { %3829 = vmatmul.mubr.msk.f32.vlgmr.msra.gmra.mrb[20].mxu0 %vm110_vm0, %v4577_v3 }
 0xbd9   :  { %3843 = vmatprep.mubr.msk.f32.mxu0 %vm4155_vm1, %v4154_v20 }
 0xbde   :  { %3842 = vmatpush3.xpose.msk.msra.mxu0 %vm366_vm2, %v1812_v23 }
 0xbdf   :  { %4047 = vmatprep.subr.bf16.mxu0 %v4046_v28 }
 0xca3   :  { %v3808_v31 = vpop.f32.mrb[18].mxu0 }
 0xca4   :  { %v1720_v32 = vadd.f32 %v3808_v31, %v3458_v11  ;;  %v1714_v33 = vpop.f32.mrb[19].mxu0 }
 0xca5   :  { %v1715_v35 = vadd.f32 %v3458_v11, %v1714_v33  ;;  %v3491_v11 = vld [vmem:[%s4850_s16 + $0x30] sm:$0xff] }
 0xca6   :  { %3844 = vmatmul.mubr.msk.f32.vlgmr.msra.gmra.mrb[22].mxu0 %vm366_vm2, %v1720_v32  ;;  %v4066_v31 = vpack.c.bf16 %v3492_v30, %v3491_v11 }
 0xca7   :  { %4049 = vmatpush3.bf16.msra.mxu0 %v4046_v28  ;;  %3834 = vmatmul.mubr.msk.f32.vlgmr.msra.gmra.mrb[20].mxu1 %vm366_vm2, %v1715_v35  ;;  %v3490_v28 = vld [vmem:[%s4850_s16 + $0x28] sm:$0xff] }
 0xca8   :  { %3859 = vmatprep.mubr.msk.f32.mxu0 %vm110_vm0, %v4537_v24  ;;  %4051 = vmatprep.subr.bf16.mxu0 %v4050_v34  ;;  %v4062_v29 = vpack.c.bf16 %v3490_v28, %v3489_v41  ;;  %v3510_v28 = vld [vmem:[%s4856_s20] ss:$0 sm:$0xff] }
 0xca9   :  { %3838 = vmatprep.mubr.msk.f32.mxu1 %vm4155_vm1, %v4154_v20 }
 0xcab   :  { %4053 = vmatpush3.bf16.msra.mxu0 %v4050_v34  ;;  %v3830_v37 = vpop.f32.mrb[20].mxu0 }
 0xcac   :  { %v1898_v38 = vadd.f32 %v3830_v37, %v3464_v36  ;;  %v1892_v39 = vpop.f32.mrb[21].mxu0  ;;  %4063 = vmatprep.subr.bf16.mxu0 %v4062_v29 }
 0xcad   :  { %v1893_v40 = vadd.f32 %v3464_v36, %v1892_v39 }
 0xcae   :  { %3860 = vmatmul.mubr.msk.f32.vlgmr.msra.gmra.mrb[24].mxu0 %vm110_vm0, %v4600_v17 }
 0xcaf   :  { %3837 = vmatpush3.msra.mxu1 %v1893_v40  ;;  %3881 = vmatprep.mubr.msk.f32.mxu0 %vm110_vm0, %v4572_v2 }
 0xcb0   :  { %3846 = vmatprep.subr.mxu1 %v4154_v20  ;;  %4065 = vmatpush3.bf16.msra.mxu0 %v4062_v29  ;;  %v3511_v29 = vld [vmem:[%s4857_s21] ss:$0 sm:$0xff] }
 0xcb1   :  { %4067 = vmatprep.subr.bf16.mxu0 %v4066_v31 }
 0xcb4   :  { %4069 = vmatpush3.bf16.msra.mxu0 %v4066_v31 }
 0xcb5   :  { %4070 = vmatprep.subr.bf16.mxu0 %v4157_v54 }
 0xcb7   :  { %3882 = vmatmul.mubr.msk.f32.vlgmr.msra.gmra.mrb[26].mxu0 %vm110_vm0, %v4577_v3 }
 0xcb8   :  { %3898 = vmatprep.mubr.msk.f32.mxu0 %vm4155_vm1, %v4154_v20 }
 0xd79   :  { %v2136_v42 = vpop.f32.mrb[22].mxu0 }
 0xd7a   :  { %v2140_v43 = vmul.f32 0.25, %v2136_v42  ;;  %v1975_v44 = vpop.f32.mrb[20].mxu1  ;;  %v3845_v45 = vpop.f32.mrb[23].mxu0 }
 0xd7b   :  { %v1979_v46 = vmul.f32 0.25, %v1975_v44  ;;  %v3835_v47 = vpop.f32.mrb[21].mxu1 }
 0xd7c   :  { %v2141_v48 = vsel %vm445_vm4, %v2140_v43, -inf  ;;  %v3498_v47 = vld [vmem:[%s4854_s18 + $0x18] sm:$0xff] }
 0xd7d   :  { %2142 = vmax.xlane.f32.xlu1 %v2141_v48  ;;  %v1980_v49 = vsel %vm445_vm4, %v1979_v46, -inf }
 0xd7e   :  { %1981 = vmax.xlane.f32.xlu0 %v1980_v49 }
 0xd81   :  { %v3861_v51 = vpop.f32.mrb[24].mxu0 }
 0xd82   :  { %v4651_v52 = vadd.f32 %v3861_v51, %v3478_v50  ;;  %v2304_v53 = vpop.f32.mrb[25].mxu0  ;;  %v1902_v51 = vld [vmem:[%s4854_s18 + $0x8] sm:$0xff] }
 0xd83   :  { %v2305_v27 = vadd.f32 %v3478_v50, %v2304_v53  ;;  %v1901_v50 = vld [vmem:[%s4854_s18] sm:$0xff] }
 0xd8a   :  { %v3883_v42 = vpop.f32.mrb[26].mxu0 }
 0xe0a   :  { %v2143_v55 = vpop.xlane.xlu1 %2142 }
 0xe0b   :  { %v2144_v56 = vsub.f32 %v2140_v43, %v2143_v55  ;;  %v1982_v57 = vpop.xlane.xlu0 %1981  ;;  %v2480_v43 = vpop.f32.mrb[27].mxu0  ;;  %v4074_v55 = vpack.c.bf16 %v1902_v51, %v1901_v50  ;;  %v3256_v50 = vld [vmem:[%s4859_s24 + $0x8] sm:$0xff]  ;;  %v3257_v51 = vld [vmem:[%s4859_s24 + $0x10] sm:$0xff] }
 0xe0c   :  { %v1983_v58 = vsub.f32 %v1979_v46, %v1982_v57  ;;  %v3497_v46 = vld [vmem:[%s4854_s18 + $0x10] sm:$0xff] }
 0xe0d   :  { %v2145_v18 = vmul.f32 1.442695, %v2144_v56  ;;  %v4071_v48 = vpack.c.bf16 %v3498_v47, %v3497_v46  ;;  %v3164_v47 = vld [vmem:[%s4858_s22 + $0x18] sm:$0xff] }
 0xe0e   :  { %v1984_v59 = vmul.f32 1.442695, %v1983_v58 }
 0xe0f   :  { %4130 = vpow2.f32 %v2145_v18  ;;  %4072 = vmatpush3.bf16.msra.mxu0 %v4071_v48 }
 0xe10   :  { %4132 = vpow2.f32 %v1984_v59  ;;  %3908 = vmatprep.subr.mxu0 %v4154_v20 }
 0xe19   :  { %v4131_v60 = vpop.eup %4130 }
 0xe1a   :  { %v4133_v61 = vpop.eup %4132  ;;  %v2147_v62 = vsel %vm445_vm4, %v4131_v60, 0.0 }
 0xe1b   :  { %2148 = vadd.xlane.f32.xlu1 %v2147_v62  ;;  %v1986_v63 = vsel %vm445_vm4, %v4133_v61, 0.0 }
 0xe1c   :  { %1987 = vadd.xlane.f32.xlu0 %v1986_v63 }
 0xea8   :  { %v2149_v0 = vpop.xlane.xlu1 %2148 }
 0xea9   :  { %v1988_v1 = vpop.xlane.xlu0 %1987 }
 0xeaa   :  { %4134 = vrcp.f32 %v1988_v1 }
 0xeab   :  { %4136 = vrcp.f32 %v2149_v0 }
 0xeb4   :  { %v4135_v6 = vpop.eup %4134 }
 0xeb5   :  { %v1990_v7 = vmul.f32 %v4135_v6, %v4133_v61  ;;  %v4137_v9 = vpop.eup %4136  ;;  %v3509_v61 = vld [vmem:[%s4855_s19] ss:$0 sm:$0xff] }
 0xeb6   :  { %v2151_v13 = vmul.f32 %v4137_v9, %v4131_v60 }
 0xeb7   :  { %3839 = vmatmul.mubr.msk.f32.vlgmr.msra.gmra.mrb[22].mxu1 %vm445_vm4, %v1990_v7 }
 0xeb8   :  { %3847 = vmatpush3.msra.mxu1 %v1898_v38  ;;  %3848 = vmatprep.mubr.msk.f32.mxu1 %vm4155_vm1, %v4154_v20 }
 0xeb9   :  { %4055 = vmatprep.subr.bf16.mxu1 %v4054_v8 }
 0xebb   :  { %3849 = vmatmul.mubr.msk.f32.vlgmr.msra.gmra.mrb[24].mxu1 %vm445_vm4, %v2151_v13 }
 0xebc   :  { %4057 = vmatpush3.bf16.msra.mxu1 %v4054_v8  ;;  %3870 = vmatprep.mubr.msk.f32.mxu1 %vm110_vm0, %v4572_v2  ;;  %v3486_v2 = vld [vmem:[%s4851_s15 + $0x1] ss:$0 sm:$0xff] }
 0xebd   :  { %4059 = vmatprep.subr.bf16.mxu1 %v4058_v14 }
 0xec0   :  { %4061 = vmatpush3.bf16.msra.mxu1 %v4058_v14 }
 0xec1   :  { %3884 = vmatprep.subr.mxu1 %v4154_v20 }
 0xec3   :  { %3871 = vmatmul.mubr.msk.f32.vlgmr.msra.gmra.mrb[26].mxu1 %vm110_vm0, %v4577_v3  ;;  %v3494_v3 = vld [vmem:[%s4853_s17 + $0x1] ss:$0 sm:$0xff] }
 0xec4   :  { %3886 = vmatprep.mubr.msk.f32.mxu1 %vm4155_vm1, %v4154_v20  ;;  %v2486_v44 = vadd.f32 %v3883_v42, %v3494_v3  ;;  %v2481_v45 = vadd.f32 %v3494_v3, %v2480_v43 }
 0xf8a   :  { %v4678_v15 = vpop.f32.mrb[22].mxu1 }
 0xf8b   :  { %v3840_v16 = vpop.f32.mrb[23].mxu1 }
 0xf8e   :  { %v4680_v19 = vpop.f32.mrb[24].mxu1 }
 0xf8f   :  { %v3850_v21 = vpop.f32.mrb[25].mxu1 }
 0xf96   :  { %v3872_v22 = vpop.f32.mrb[26].mxu1 }
 0xf97   :  { %v4685_v23 = vadd.f32 %v3872_v22, %v3486_v2  ;;  %v2392_v25 = vpop.f32.mrb[27].mxu1 }
 0xf98   :  { %v2393_v26 = vadd.f32 %v3486_v2, %v2392_v25 }
 0xf9a   :  { %3885 = vmatpush3.xpose.msk.msra.mxu1 %vm366_vm2, %v2393_v26 }
 0xf9b   :  { %3889 = vmatprep.subr.mxu1 %v4154_v20 }
 0xf9d   :  { %3887 = vmatmul.mubr.msk.f32.vlgmr.msra.gmra.mrb[28].mxu1 %vm366_vm2, %v2305_v27 }
 0xf9e   :  { %3891 = vmatprep.mubr.msk.f32.mxu1 %vm4155_vm1, %v4154_v20  ;;  %3890 = vmatpush3.msra.mxu1 %v2481_v45  ;;  %v3162_v45 = vld [vmem:[%s4858_s22 + $0x8] sm:$0xff] }
 0xf9f   :  { %4073 = vmatprep.subr.bf16.mxu1 %v4157_v54 }
0x1070   :  { %v2564_v32 = vpop.f32.mrb[28].mxu1 }
0x1071   :  { %v2568_v33 = vmul.f32 0.25, %v2564_v32  ;;  %v3888_v34 = vpop.f32.mrb[29].mxu1 }
0x1073   :  { %v2569_v35 = vsel %vm445_vm4, %v2568_v33, -inf }
0x1074   :  { %2570 = vmax.xlane.f32.xlu0 %v2569_v35 }
0x1101   :  { %v2571_v36 = vpop.xlane.xlu0 %2570 }
0x1102   :  { %v2572_v37 = vsub.f32 %v2568_v33, %v2571_v36 }
0x1104   :  { %v2573_v38 = vmul.f32 1.442695, %v2572_v37 }
0x1106   :  { %4138 = vpow2.f32 %v2573_v38 }
0x1110   :  { %v4139_v39 = vpop.eup %4138 }
0x1111   :  { %v2575_v40 = vsel %vm445_vm4, %v4139_v39, 0.0 }
0x1112   :  { %2576 = vadd.xlane.f32.xlu1 %v2575_v40 }
0x119f   :  { %v2577_v49 = vpop.xlane.xlu1 %2576 }
0x11a0   :  { %4140 = vrcp.f32 %v2577_v49  ;;  %v3255_v49 = vld [vmem:[%s4859_s24] sm:$0xff] }
0x11aa   :  { %v4141_v53 = vpop.eup %4140 }
0x11ab   :  { %v2579_v56 = vmul.f32 %v4141_v53, %v4139_v39  ;;  %v4090_v53 = vpack.c.bf16 %v3256_v50, %v3255_v49 }
0x11ad   :  { %3892 = vmatmul.mubr.msk.f32.vlgmr.msra.gmra.mrb[30].mxu1 %vm445_vm4, %v2579_v56 }
0x11ae   :  { %4075 = vmatpush3.bf16.msra.mxu1 %v4074_v55  ;;  %3905 = vmatprep.mubr.msk.f32.mxu1 %vm4155_vm1, %v4154_v20 }
0x11af   :  { %3913 = vmatprep.subr.mxu1 %v4154_v20 }
0x11b1   :  { %3906 = vmatmul.mubr.msk.f32.vlgmr.msra.gmra.mrb[32].mxu1 %vm366_vm2, %v4678_v15 }
0x11b2   :  { %3914 = vmatpush3.msra.mxu1 %v2486_v44  ;;  %3915 = vmatprep.mubr.msk.f32.mxu1 %vm4155_vm1, %v4154_v20  ;;  %v3161_v44 = vld [vmem:[%s4858_s22] sm:$0xff] }
0x11b3   :  { %4079 = vmatprep.subr.bf16.mxu1 %v4157_v54  ;;  %v4082_v46 = vpack.c.bf16 %v3162_v45, %v3161_v44 }
0x1280   :  { %v2649_v57 = vpop.f32.mrb[30].mxu1 }
0x1281   :  { %v3893_v58 = vpop.f32.mrb[31].mxu1  ;;  %3899 = vmatmul.mubr.msk.f32.vlgmr.msra.gmra.mrb[28].mxu0 %vm366_vm2, %v2649_v57  ;;  %v3259_v57 = vld [vmem:[%s4859_s24 + $0x20] sm:$0xff] }
0x1282   :  { %3909 = vmatpush3.xpose.msk.msra.mxu0 %vm366_vm2, %v4685_v23  ;;  %3910 = vmatprep.mubr.msk.f32.mxu0 %vm4155_vm1, %v4154_v20  ;;  %v3260_v58 = vld [vmem:[%s4859_s24 + $0x28] sm:$0xff] }
0x1283   :  { %4076 = vmatprep.subr.bf16.mxu0 %v4157_v54 }
0x1284   :  { %v2795_v18 = vpop.f32.mrb[32].mxu1 }
0x1285   :  { %v3907_v59 = vpop.f32.mrb[33].mxu1  ;;  %3911 = vmatmul.mubr.msk.f32.vlgmr.msra.gmra.mrb[30].mxu0 %vm366_vm2, %v4651_v52 }
0x1286   :  { %4078 = vmatpush3.bf16.msra.mxu0 %v4071_v48  ;;  %3922 = vmatprep.mubr.msk.f32.mxu0 %vm4155_vm1, %v4154_v20 }
0x1287   :  { %4083 = vmatprep.subr.bf16.mxu0 %v4082_v46 }
0x1354   :  { %v2722_v60 = vpop.f32.mrb[28].mxu0 }
0x1355   :  { %v2796_v62 = vadd.f32 %v2795_v18, %v2722_v60  ;;  %v3900_v63 = vpop.f32.mrb[29].mxu0  ;;  %v4098_v18 = vpack.c.bf16 %v3260_v58, %v3259_v57 }
0x1357   :  { %v3113_v0 = vadd.f32 %v3509_v61, %v2796_v62 }
0x1358   :  { %v2871_v1 = vpop.f32.mrb[30].mxu0 }
0x1359   :  { %v2875_v4 = vmul.f32 0.25, %v2871_v1  ;;  %v3912_v54 = vpop.f32.mrb[31].mxu0  ;;  %v3115_v6 = vadd.f32 %v3113_v0, %v4537_v24 }
0x135a   :  { %v3262_v54 = vld [vmem:[%s4859_s24 + $0x38] sm:$0xff] }
0x135b   :  { %v2876_v5 = vsel %vm445_vm4, %v2875_v4, -inf  ;;  %v3119_v52 = vsel %vm110_vm0, %v3115_v6, 0.0 }
0x135c   :  { %2877 = vmax.xlane.f32.xlu0 %v2876_v5 }
0x1360   :  { %3120 = vadd.xlane.f32.xlu0 %v3119_v52 }
0x13e9   :  { %v2878_v7 = vpop.xlane.xlu0 %2877 }
0x13ea   :  { %v2879_v8 = vsub.f32 %v2875_v4, %v2878_v7  ;;  %v3261_v4 = vld [vmem:[%s4859_s24 + $0x30] sm:$0xff] }
0x13eb   :  { %v4102_v5 = vpack.c.bf16 %v3262_v54, %v3261_v4 }
0x13ec   :  { %v2880_v9 = vmul.f32 1.442695, %v2879_v8 }
0x13ed   :  { %v3121_v10 = vpop.xlane.xlu0 %3120 }
0x13ee   :  { %4142 = vpow2.f32 %v2880_v9  ;;  %v3125_v12 = vmul.f32 0.03125, %v3121_v10 }
0x13f0   :  { %v3127_v13 = vsub.f32 %v3115_v6, %v3125_v12  ;;  %v3512_v6 = vld [vmem:[%s4860_s23] ss:$0 sm:$0xff] }
0x13f2   :  { %v3129_v14 = vmul.f32 %v3127_v13, %v3127_v13 }
0x13f4   :  { %v3131_v15 = vsel %vm110_vm0, %v3129_v14, 0.0 }
0x13f5   :  { %3132 = vadd.xlane.f32.xlu0 %v3131_v15 }
0x13f8   :  { %v4143_v16 = vpop.eup %4142 }
0x13f9   :  { %v2882_v21 = vsel %vm445_vm4, %v4143_v16, 0.0 }
0x13fa   :  { %2883 = vadd.xlane.f32.xlu1 %v2882_v21 }
0x1482   :  { %v3133_v23 = vpop.xlane.xlu0 %3132 }
0x1483   :  { %v3137_v25 = vmul.f32 0.03125, %v3133_v23 }
0x1485   :  { %v3139_v26 = vadd.f32 1e-05, %v3137_v25 }
0x1487   :  { %v2884_v24 = vpop.xlane.xlu1 %2883 }
0x1488   :  { %4144 = vrcp.f32 %v2884_v24 }
0x1489   :  { %4146 = vrsqrt.f32 %v3139_v26 }
0x1492   :  { %v4145_v2 = vpop.eup %4144 }
0x1493   :  { %v2886_v22 = vmul.f32 %v4145_v2, %v4143_v16  ;;  %v4147_v27 = vpop.eup %4146 }
0x1494   :  { %v3143_v41 = vmul.f32 %v4147_v27, %v3127_v13  ;;  %v3515_v13 = vld [vmem:[%s4861_s25] ss:$0 sm:$0xff] }
0x1495   :  { %3916 = vmatmul.mubr.msk.f32.vlgmr.msra.gmra.mrb[34].mxu1 %vm445_vm4, %v2886_v22 }
0x1496   :  { %4081 = vmatpush3.bf16.msra.mxu1 %v4074_v55  ;;  %3929 = vmatprep.mubr.msk.f32.mxu1 %vm4155_vm1, %v4154_v20  ;;  %v3151_v11 = vmul.f32 %v3510_v28, %v3143_v41  ;;  %v3258_v55 = vld [vmem:[%s4859_s24 + $0x18] sm:$0xff] }
0x1497   :  { %v4094_v56 = vpack.c.bf16 %v3258_v55, %v3257_v51  ;;  %4091 = vmatprep.subr.bf16.mxu1 %v4090_v53 }
0x1498   :  { %v4766_v20 = vadd.f32 %v3511_v29, %v3151_v11 }
0x1499   :  { %3930 = vmatmul.mubr.msk.f32.vlgmr.msra.gmra.mrb[36].mxu1 %vm366_vm2, %v4680_v19 }
0x149a   :  { %4093 = vmatpush3.bf16.msra.mxu1 %v4090_v53 }
0x149b   :  { %4095 = vmatprep.subr.bf16.mxu1 %v4094_v56 }
0x149e   :  { %4097 = vmatpush3.bf16.msra.mxu1 %v4094_v56 }
0x149f   :  { %4099 = vmatprep.subr.bf16.mxu1 %v4098_v18 }
0x14a2   :  { %4101 = vmatpush3.bf16.msra.mxu1 %v4098_v18 }
0x14a3   :  { %4103 = vmatprep.subr.bf16.mxu1 %v4102_v5 }
0x14a6   :  { %4105 = vmatpush3.bf16.msra.mxu1 %v4102_v5 }
0x1568   :  { %v2956_v30 = vpop.f32.mrb[34].mxu1 }
0x1569   :  { %v3917_v31 = vpop.f32.mrb[35].mxu1  ;;  %3923 = vmatmul.mubr.msk.f32.vlgmr.msra.gmra.mrb[32].mxu0 %vm366_vm2, %v2956_v30 }
0x156a   :  { %3940 = vmatprep.mubr.msk.f32.mxu0 %vm110_vm0, %v4766_v20  ;;  %4085 = vmatpush3.bf16.msra.mxu0 %v4082_v46 }
0x156c   :  { %v3102_v19 = vpop.f32.mrb[36].mxu1 }
0x156d   :  { %v3931_v32 = vpop.f32.mrb[37].mxu1 }
0x163c   :  { %v3029_v33 = vpop.f32.mrb[32].mxu0 }
0x163d   :  { %v3103_v34 = vadd.f32 %v3102_v19, %v3029_v33  ;;  %v3924_v35 = vpop.f32.mrb[33].mxu0 }
0x163f   :  { %v3114_v36 = vadd.f32 %v3509_v61, %v3103_v34 }
0x1641   :  { %v3116_v37 = vadd.f32 %v3114_v36, %v4600_v17  ;;  %v3163_v17 = vld [vmem:[%s4858_s22 + $0x10] sm:$0xff] }
0x1642   :  { %v4086_v48 = vpack.c.bf16 %v3164_v47, %v3163_v17 }
0x1643   :  { %v3122_v38 = vsel %vm110_vm0, %v3116_v37, 0.0 }
0x1644   :  { %3123 = vadd.xlane.f32.xlu1 %v3122_v38  ;;  %4087 = vmatprep.subr.bf16.mxu0 %v4086_v48  ;;  %v3518_v38 = vld [vmem:[%s4862_s26] ss:$0 sm:$0xff] }
0x1645   :  { %4089 = vmatpush3.bf16.msra.mxu0 %v4086_v48 }
0x16d1   :  { %v3124_v39 = vpop.xlane.xlu1 %3123 }
0x16d2   :  { %v3126_v40 = vmul.f32 0.03125, %v3124_v39 }
0x16d4   :  { %v3128_v42 = vsub.f32 %v3116_v37, %v3126_v40 }
0x16d6   :  { %v3130_v3 = vmul.f32 %v3128_v42, %v3128_v42 }
0x16d8   :  { %v3134_v43 = vsel %vm110_vm0, %v3130_v3, 0.0 }
0x16d9   :  { %3135 = vadd.xlane.f32.xlu1 %v3134_v43 }
0x1766   :  { %v3136_v59 = vpop.xlane.xlu1 %3135 }
0x1767   :  { %v3138_v60 = vmul.f32 0.03125, %v3136_v59 }
0x1769   :  { %v3140_v61 = vadd.f32 1e-05, %v3138_v60 }
0x176b   :  { %4148 = vrsqrt.f32 %v3140_v61 }
0x1775   :  { %v4149_v62 = vpop.eup %4148 }
0x1776   :  { %v3144_v63 = vmul.f32 %v4149_v62, %v3128_v42  ;;  %v3519_v42 = vld [vmem:[%s4863_s27] ss:$0 sm:$0xff] }
0x1778   :  { %v3152_v0 = vmul.f32 %v3510_v28, %v3144_v63 }
0x177a   :  { %v3160_v1 = vadd.f32 %v3511_v29, %v3152_v0 }
0x177c   :  { %3941 = vmatmul.mubr.msk.f32.vlgmr.msra.gmra.mrb[34].mxu0 %vm110_vm0, %v3160_v1 }
0x184f   :  { %v3942_v52 = vpop.f32.mrb[34].mxu0 }
0x1850   :  { %v3250_v7 = vadd.f32 %v3942_v52, %v3512_v6  ;;  %v3244_v8 = vpop.f32.mrb[35].mxu0 }
0x1851   :  { %v3245_v9 = vadd.f32 %v3512_v6, %v3244_v8 }
0x1852   :  { %v3254_v12 = vmax.f32 %v3250_v7, 0.0 }
0x1853   :  { %v3253_v10 = vmax.f32 %v3245_v9, 0.0 }
0x1855   :  { %3959 = vmatprep.mubr.msk.f32.mxu1 %vm3270_vm5, %v3253_v10 }
0x1856   :  { %3960 = vmatmul.mubr.msk.f32.vlgmr.msra.gmra.mrb[38].mxu1 %vm3270_vm5, %v3254_v12 }
0x1929   :  { %v3961_v14 = vpop.f32.mrb[38].mxu1 }
0x192a   :  { %v3349_v15 = vadd.f32 %v3961_v14, %v3515_v13  ;;  %v3343_v16 = vpop.f32.mrb[39].mxu1 }
0x192b   :  { %v3344_v21 = vadd.f32 %v3515_v13, %v3343_v16 }
0x192c   :  { %v3353_v24 = vadd.f32 %v3349_v15, %v3160_v1 }
0x192d   :  { %v3352_v2 = vadd.f32 %v3344_v21, %v4766_v20 }
0x192e   :  { %v3359_v22 = vsel %vm110_vm0, %v3353_v24, 0.0 }
0x192f   :  { %3360 = vadd.xlane.f32.xlu1 %v3359_v22  ;;  %v3356_v23 = vsel %vm110_vm0, %v3352_v2, 0.0 }
0x1930   :  { %3357 = vadd.xlane.f32.xlu0 %v3356_v23 }
0x19bc   :  { %v3361_v25 = vpop.xlane.xlu1 %3360 }
0x19bd   :  { %v3363_v26 = vmul.f32 0.03125, %v3361_v25  ;;  %v3358_v27 = vpop.xlane.xlu0 %3357 }
0x19be   :  { %v3362_v41 = vmul.f32 0.03125, %v3358_v27 }
0x19bf   :  { %v3365_v28 = vsub.f32 %v3353_v24, %v3363_v26 }
0x19c0   :  { %v3364_v11 = vsub.f32 %v3352_v2, %v3362_v41 }
0x19c1   :  { %v3367_v29 = vmul.f32 %v3365_v28, %v3365_v28 }
0x19c2   :  { %v3366_v30 = vmul.f32 %v3364_v11, %v3364_v11 }
0x19c3   :  { %v3371_v31 = vsel %vm110_vm0, %v3367_v29, 0.0 }
0x19c4   :  { %3372 = vadd.xlane.f32.xlu1 %v3371_v31  ;;  %v3368_v19 = vsel %vm110_vm0, %v3366_v30, 0.0 }
0x19c5   :  { %3369 = vadd.xlane.f32.xlu0 %v3368_v19 }
0x1a51   :  { %v3373_v20 = vpop.xlane.xlu1 %3372 }
0x1a52   :  { %v3375_v32 = vmul.f32 0.03125, %v3373_v20  ;;  %v3370_v33 = vpop.xlane.xlu0 %3369 }
0x1a53   :  { %v3374_v34 = vmul.f32 0.03125, %v3370_v33 }
0x1a54   :  { %v3377_v35 = vadd.f32 1e-05, %v3375_v32 }
0x1a55   :  { %v3376_v36 = vadd.f32 1e-05, %v3374_v34 }
0x1a56   :  { %4150 = vrsqrt.f32 %v3377_v35 }
0x1a57   :  { %4152 = vrsqrt.f32 %v3376_v36 }
0x1a60   :  { %v4151_v37 = vpop.eup %4150 }
0x1a61   :  { %v4153_v39 = vpop.eup %4152  ;;  %v3381_v40 = vmul.f32 %v4151_v37, %v3365_v28 }
0x1a62   :  { %v3380_v3 = vmul.f32 %v4153_v39, %v3364_v11 }
0x1a63   :  { %v3389_v43 = vmul.f32 %v3518_v38, %v3381_v40 }
0x1a64   :  { %v3388_v44 = vmul.f32 %v3518_v38, %v3380_v3 }
0x1a65   :  { %v3397_v45 = vadd.f32 %v3519_v42, %v3389_v43 }
0x1a66   :  { %v3396_v46 = vadd.f32 %v3519_v42, %v3388_v44 }
0x1a67   :  { %3399 = vst.msk [vmem:[%s4864_s28 + $0x8] sm:$0xff] %vm110_vm0, %v3397_v45 }
0x1a68   :  { %3398 = vst.msk [vmem:[%s4864_s28] sm:$0xff] %vm110_vm0, %v3396_v46 }

</bundles_post_ra>
